<compile_context>
chip_gen: v7x
topology: tpu7x:2x2x1
jax: 0.10.0
libtpu: 0.0.40
codegen_flags: <defaults>
</compile_context>

<pallas_src>
import functools

import jax
import jax.numpy as jnp
from jax.experimental import pallas as pl
from jax.experimental.pallas import tpu as pltpu


# ----------------------------- tile selection -------------------------------

def choose_tiles(n):
    # v6e/v7x MXU is 256-wide -> prefer 256-row tiles on large graphs; v5e's
    # 4x128^2 MXU is matched at 128.  Small graphs keep 128 so the grid still
    # has >=2 steps per axis (megacore sharding + exercises the k-pipeline).
    if n >= 2048 and n % 256 == 0:
        return 256, 256
    assert n % 128 == 0, "pad the node count to a multiple of 128"
    return 128, 128


# ----------------------------- Pallas kernels -------------------------------

def _encode_kernel(x_ref, w1_ref, b1_ref, w2_ref, b2_ref, o_ref):
    # encoder Linear (BN already folded into w1/b1) -> feature_embed Linear -> relu
    h = jnp.dot(x_ref[...], w1_ref[...], preferred_element_type=jnp.float32)
    h = h + b1_ref[...]
    y = jnp.dot(h, w2_ref[...], preferred_element_type=jnp.float32)
    y = jnp.maximum(y + b2_ref[...], 0.0)
    o_ref[...] = y.astype(o_ref.dtype)


def encode(x, w1, b1, w2, b2, tile_n):
    n, fin = x.shape
    h = w1.shape[1]
    return pl.pallas_call(
        _encode_kernel,
        out_shape=jax.ShapeDtypeStruct((n, h), jnp.bfloat16),
        grid=(n // tile_n,),
        in_specs=[
            pl.BlockSpec((tile_n, fin), lambda i: (i, 0)),
            pl.BlockSpec((fin, h), lambda i: (0, 0)),
            pl.BlockSpec((1, h), lambda i: (0, 0)),
            pl.BlockSpec((h, h), lambda i: (0, 0)),
            pl.BlockSpec((1, h), lambda i: (0, 0)),
        ],
        out_specs=pl.BlockSpec((tile_n, h), lambda i: (i, 0)),
        compiler_params=pltpu.CompilerParams(dimension_semantics=("parallel",)),
    )(x, w1, b1.reshape(1, h), w2, b2.reshape(1, h))


def _conv_bn_kernel(adjp_ref, x_ref, scale_ref, shift_ref, o_ref, acc_ref):
    # adjp tile holds [adj_rows ; adj2_rows] stacked vertically -> single dot
    # computes both x1 = adj@x and x2 = adj2@x for this row tile.
    k = pl.program_id(1)

    @pl.when(k == 0)
    def _():
        acc_ref[...] = jnp.zeros_like(acc_ref)

    acc_ref[...] += jnp.dot(adjp_ref[...], x_ref[...],
                            preferred_element_type=jnp.float32)

    @pl.when(k == pl.num_programs(1) - 1)
    def _():
        tn = o_ref.shape[0]
        # cat([x1, x2], dim=1) + eval-mode BN epilogue, single lane-dense store
        y = jnp.concatenate([acc_ref[:tn, :], acc_ref[tn:, :]], axis=1)
        y = y * scale_ref[...] + shift_ref[...]
        o_ref[...] = y.astype(o_ref.dtype)


def h2gcn_conv_bn(adjp, x, scale, shift, tile_n, tile_k):
    nt, two_tn, n = adjp.shape
    d = x.shape[1]
    return pl.pallas_call(
        _conv_bn_kernel,
        out_shape=jax.ShapeDtypeStruct((n, 2 * d), jnp.bfloat16),
        grid=(nt, n // tile_k),
        in_specs=[
            pl.BlockSpec((None, two_tn, tile_k), lambda i, k: (i, 0, k)),
            pl.BlockSpec((tile_k, d), lambda i, k: (k, 0)),
            pl.BlockSpec((1, 2 * d), lambda i, k: (0, 0)),
            pl.BlockSpec((1, 2 * d), lambda i, k: (0, 0)),
        ],
        out_specs=pl.BlockSpec((tile_n, 2 * d), lambda i, k: (i, 0)),
        scratch_shapes=[pltpu.VMEM((two_tn, d), jnp.float32)],
        compiler_params=pltpu.CompilerParams(
            dimension_semantics=("parallel", "arbitrary"),
            vmem_limit_bytes=40 * 1024 * 1024),  # fits v7x's 64 MiB with headroom
    )(adjp, x, scale, shift)


def _head_kernel(x0_ref, x1_ref, x2_ref, x3_ref,
                 w0_ref, w1_ref, w2_ref, w3_ref, b_ref, o_ref):
    # JumpingKnowledge('cat') + post_mp Linear as a sum of per-segment matmuls
    # (the N x 15H concat buffer is never materialized in HBM).
    acc = jnp.dot(x0_ref[...], w0_ref[...], preferred_element_type=jnp.float32)
    acc += jnp.dot(x1_ref[...], w1_ref[...], preferred_element_type=jnp.float32)
    acc += jnp.dot(x2_ref[...], w2_ref[...], preferred_element_type=jnp.float32)
    acc += jnp.dot(x3_ref[...], w3_ref[...], preferred_element_type=jnp.float32)
    o_ref[...] = (acc + b_ref[...]).astype(o_ref.dtype)


def jk_head(xs, ws, b, tile_n):
    n = xs[0].shape[0]
    dout = ws[0].shape[1]
    in_specs = [pl.BlockSpec((tile_n, x.shape[1]), lambda i: (i, 0)) for x in xs]
    in_specs += [pl.BlockSpec((w.shape[0], dout), lambda i: (0, 0)) for w in ws]
    in_specs.append(pl.BlockSpec((1, dout), lambda i: (0, 0)))
    return pl.pallas_call(
        _head_kernel,
        out_shape=jax.ShapeDtypeStruct((n, dout), jnp.float32),
        grid=(n // tile_n,),
        in_specs=in_specs,
        out_specs=pl.BlockSpec((tile_n, dout), lambda i: (i, 0)),
        compiler_params=pltpu.CompilerParams(dimension_semantics=("parallel",)),
    )(*xs, *ws, b.reshape(1, dout))


# -------------------------- graph / param plumbing --------------------------

def build_adjs(edge_index, n):
    """Replicates H2GCN.init_adj with dense matrices (one-time preprocessing)."""
    # TODO(synk): production graphs should keep the adjacency sparse; dense is
    # used here so the aggregation can run on the MXU.
    row, col = edge_index
    eye = jnp.eye(n, dtype=jnp.float32)
    # adj_t = SparseTensor(row=col, col=row) -> adj_t[col, row] = 1 ; no self loops
    a = jnp.zeros((n, n), jnp.float32).at[col, row].set(1.0)
    a = a * (1.0 - eye)
    # strict two-hop: (A@A, diag removed) - A, keep strictly positive entries
    a2 = (a @ a) * (1.0 - eye)
    a2 = jnp.where(a2 - a > 0, 1.0, 0.0)

    def gcn_norm(m):  # symmetric norm, no self loops: D^{-1/2} M D^{-1/2}
        deg = m.sum(axis=1)
        dinv = jnp.where(deg > 0, jax.lax.rsqrt(deg), 0.0)
        return dinv[:, None] * m * dinv[None, :]

    return gcn_norm(a), gcn_norm(a2)


def stack_adj_row_tiles(adj, adj2, tile_n):
    """Pre-stack adj/adj2 row-tiles vertically: (N//tile_n, 2*tile_n, N) bf16."""
    n = adj.shape[0]
    assert n % tile_n == 0
    nt = n // tile_n
    a = adj.reshape(nt, tile_n, n)
    b = adj2.reshape(nt, tile_n, n)
    return jnp.concatenate([a, b], axis=1).astype(jnp.bfloat16)


def init_params(key, dim_in, h, dim_out, num_layers=3):
    """PyTorch-Linear-style uniform init; BatchNorm1d defaults (eval mode)."""
    ks = jax.random.split(key, 3)

    def lin(k, fin, fout):
        bound = float(fin) ** -0.5
        kw, kb = jax.random.split(k)
        w = jax.random.uniform(kw, (fin, fout), jnp.float32, -bound, bound)
        b = jax.random.uniform(kb, (fout,), jnp.float32, -bound, bound)
        return w, b

    def bn(c):  # gamma, beta, running_mean, running_var
        return (jnp.ones((c,), jnp.float32), jnp.zeros((c,), jnp.float32),
                jnp.zeros((c,), jnp.float32), jnp.ones((c,), jnp.float32))

    last_dim = h * (2 ** (num_layers + 1) - 1)
    enc_w, enc_b = lin(ks[0], dim_in, h)
    fe_w, fe_b = lin(ks[1], h, h)
    head_w, head_b = lin(ks[2], last_dim, dim_out)
    return dict(enc_w=enc_w, enc_b=enc_b, enc_bn=bn(h),
                fe_w=fe_w, fe_b=fe_b,
                bn1=bn(2 * h), bn2=bn(4 * h),
                head_w=head_w, head_b=head_b)


def _fold_bn_into_linear(w, b, gamma, beta, mean, var, eps=1e-5):
    s = gamma * jax.lax.rsqrt(var + eps)
    return w * s[None, :], (b - mean) * s + beta


def _bn_scale_shift(gamma, beta, mean, var, eps=1e-5):
    s = gamma * jax.lax.rsqrt(var + eps)
    return s.reshape(1, -1), (beta - mean * s).reshape(1, -1)


def prepare_params(params, h):
    """Fold eval-mode BN and pre-slice the JK head for the fused kernels."""
    enc_w, enc_b = _fold_bn_into_linear(params["enc_w"], params["enc_b"],
                                        *params["enc_bn"])
    bn1_scale, bn1_shift = _bn_scale_shift(*params["bn1"])
    bn2_scale, bn2_shift = _bn_scale_shift(*params["bn2"])
    id3_scale = jnp.ones((1, 8 * h), jnp.float32)     # last conv: no BN
    id3_shift = jnp.zeros((1, 8 * h), jnp.float32)
    # head weight split into JumpingKnowledge segments [H, 2H, 4H, 8H]
    segs, offs = [h, 2 * h, 4 * h, 8 * h], [0, h, 3 * h, 7 * h]
    head_ws = [params["head_w"][o:o + s].astype(jnp.bfloat16)
               for o, s in zip(offs, segs)]
    return dict(enc_w=enc_w, enc_b=enc_b,
                fe_w=params["fe_w"], fe_b=params["fe_b"],
                bn1_scale=bn1_scale, bn1_shift=bn1_shift,
                bn2_scale=bn2_scale, bn2_shift=bn2_shift,
                id3_scale=id3_scale, id3_shift=id3_shift,
                head_ws=head_ws, head_b=params["head_b"])


# ------------------------------ forward pass ---------------------------------

@functools.partial(jax.jit, static_argnames=("tile_n", "tile_k"))
def h2gcn_forward(x_raw, adjp, p, tile_n, tile_k):
    # TODO(synk): registry-based FeatureEncoder / GNNHead are approximated as
    # node-level Linear projections (+ eval BatchNorm for the encoder).
    # Dropout is identity in inference mode.
    x0 = encode(x_raw, p["enc_w"], p["enc_b"], p["fe_w"], p["fe_b"], tile_n)
    x1 = h2gcn_conv_bn(adjp, x0, p["bn1_scale"], p["bn1_shift"], tile_n, tile_k)
    x2 = h2gcn_conv_bn(adjp, x1, p["bn2_scale"], p["bn2_shift"], tile_n, tile_k)
    x3 = h2gcn_conv_bn(adjp, x2, p["id3_scale"], p["id3_shift"], tile_n, tile_k)
    return jk_head([x0, x1, x2, x3], p["head_ws"], p["head_b"], tile_n)


# ---------------------------------- main --------------------------------------

if __name__ == "__main__":
    N, E = 256, 1024          # nodes, edges
    DIM_IN, H, DIM_OUT = 32, 64, 8
    NUM_LAYERS = 3

    key = jax.random.PRNGKey(0)
    k_feat, k_row, k_col, k_par = jax.random.split(key, 4)
    x_raw = jax.random.normal(k_feat, (N, DIM_IN), jnp.float32)
    row = jax.random.randint(k_row, (E,), 0, N)
    col = jax.random.randint(k_col, (E,), 0, N)

    tile_n, tile_k = choose_tiles(N)
    adj, adj2 = build_adjs((row, col), N)
    adjp = stack_adj_row_tiles(adj, adj2, tile_n)   # (N//tile_n, 2*tile_n, N) bf16
    params = prepare_params(init_params(k_par, DIM_IN, H, DIM_OUT, NUM_LAYERS), H)

    out = h2gcn_forward(x_raw, adjp, params, tile_n, tile_k)
    jax.block_until_ready(out)
    assert out.shape == (N, DIM_OUT), out.shape
    print("KERNEL_OK")
</pallas_src>

<mosaic_0001>
module attributes {stable_mosaic.version = 11 : i64} {
  func.func @_conv_bn_kernel(%arg0: i32, %arg1: i32, %arg2: memref<1x256x128xbf16, #tpu.memory_space<vmem>>, %arg3: memref<128x64xbf16, #tpu.memory_space<vmem>>, %arg4: memref<1x128xf32, #tpu.memory_space<vmem>>, %arg5: memref<1x128xf32, #tpu.memory_space<vmem>>, %arg6: memref<128x128xbf16, #tpu.memory_space<vmem>>, %arg7: memref<256x64xf32, #tpu.memory_space<vmem>>) attributes {dimension_semantics = [#tpu.dimension_semantics<parallel>, #tpu.dimension_semantics<arbitrary>], iteration_bounds = array<i64: 2, 2>, scalar_prefetch = 0 : i64, scratch_operands = 1 : i64, tpu.core_type = #tpu.core_type<tc>, window_params = [{transform_indices = @transform_0, window_bounds = array<i64: 1, 256, 128>}, {transform_indices = @transform_1, window_bounds = array<i64: 128, 64>}, {pipeline_mode = #tpu.pipeline_mode<synchronous>, transform_indices = @transform_2, window_bounds = array<i64: 1, 128>}, {pipeline_mode = #tpu.pipeline_mode<synchronous>, transform_indices = @transform_3, window_bounds = array<i64: 1, 128>}, {transform_indices = @transform_4, window_bounds = array<i64: 128, 128>}]} {
    %c0_i32 = arith.constant 0 : i32
    %0 = arith.cmpi eq, %arg1, %c0_i32 : i32
    %1 = arith.extui %0 : i1 to i32
    %c0_i32_0 = arith.constant 0 : i32
    %2 = arith.cmpi ne, %1, %c0_i32_0 : i32
    scf.if %2 {
      %cst_10 = arith.constant 0.000000e+00 : f32
      %13 = vector.broadcast %cst_10 : f32 to vector<256x64xf32>
      %c0_11 = arith.constant 0 : index
      %c0_12 = arith.constant 0 : index
      %14 = vector.load %arg7[%c0_11, %c0_12] : memref<256x64xf32, #tpu.memory_space<vmem>>, vector<256x64xf32>
      tpu.vector_store %arg7[%c0_11, %c0_12], %13 {strides = array<i32>} : memref<256x64xf32, #tpu.memory_space<vmem>>, vector<256x64xf32>,
    } else {
    }
    %c0 = arith.constant 0 : index
    %c0_1 = arith.constant 0 : index
    %3 = vector.load %arg7[%c0, %c0_1] : memref<256x64xf32, #tpu.memory_space<vmem>>, vector<256x64xf32>
    %c0_2 = arith.constant 0 : index
    %c0_3 = arith.constant 0 : index
    %c0_4 = arith.constant 0 : index
    %4 = vector.load %arg2[%c0_2, %c0_3, %c0_4] : memref<1x256x128xbf16, #tpu.memory_space<vmem>>, vector<1x256x128xbf16>
    %5 = vector.shape_cast %4 : vector<1x256x128xbf16> to vector<256x128xbf16>
    %c0_5 = arith.constant 0 : index
    %c0_6 = arith.constant 0 : index
    %6 = vector.load %arg3[%c0_5, %c0_6] : memref<128x64xbf16, #tpu.memory_space<vmem>>, vector<128x64xbf16>
    %cst = arith.constant dense<0.000000e+00> : vector<256x64xf32>
    %7 = tpu.matmul %5, %6, %cst {dimension_numbers = #tpu.dot_dimension_numbers<[1], [0], [0], [1], [0, 0, 1, 1], [], []>} : vector<256x128xbf16>, vector<128x64xbf16>, vector<256x64xf32> -> vector<256x64xf32>
    %8 = arith.addf %3, %7 : vector<256x64xf32>
    %c0_7 = arith.constant 0 : index
    %c0_8 = arith.constant 0 : index
    %9 = vector.load %arg7[%c0_7, %c0_8] : memref<256x64xf32, #tpu.memory_space<vmem>>, vector<256x64xf32>
    tpu.vector_store %arg7[%c0_7, %c0_8], %8 {strides = array<i32>} : memref<256x64xf32, #tpu.memory_space<vmem>>, vector<256x64xf32>,
    %c1_i32 = arith.constant 1 : i32
    %10 = arith.cmpi eq, %arg1, %c1_i32 : i32
    %11 = arith.extui %10 : i1 to i32
    %c0_i32_9 = arith.constant 0 : i32
    %12 = arith.cmpi ne, %11, %c0_i32_9 : i32
    scf.if %12 {
      %c0_10 = arith.constant 0 : index
      %c0_11 = arith.constant 0 : index
      %13 = vector.load %arg7[%c0_10, %c0_11] : memref<256x64xf32, #tpu.memory_space<vmem>>, vector<128x64xf32>
      %c128 = arith.constant 128 : index
      %c0_12 = arith.constant 0 : index
      %14 = vector.load %arg7[%c128, %c0_12] : memref<256x64xf32, #tpu.memory_space<vmem>>, vector<128x64xf32>
      %15 = tpu.concatenate %13, %14 in 1 : vector<128x64xf32>, vector<128x64xf32> -> vector<128x128xf32>
      %c0_13 = arith.constant 0 : index
      %c0_14 = arith.constant 0 : index
      %16 = vector.load %arg4[%c0_13, %c0_14] : memref<1x128xf32, #tpu.memory_space<vmem>>, vector<1x128xf32>
      %17 = vector.broadcast %16 : vector<1x128xf32> to vector<128x128xf32>
      %18 = arith.mulf %15, %17 : vector<128x128xf32>
      %c0_15 = arith.constant 0 : index
      %c0_16 = arith.constant 0 : index
      %19 = vector.load %arg5[%c0_15, %c0_16] : memref<1x128xf32, #tpu.memory_space<vmem>>, vector<1x128xf32>
      %20 = vector.broadcast %19 : vector<1x128xf32> to vector<128x128xf32>
      %21 = arith.addf %18, %20 : vector<128x128xf32>
      %22 = arith.truncf %21 : vector<128x128xf32> to vector<128x128xbf16>
      %c0_17 = arith.constant 0 : index
      %c0_18 = arith.constant 0 : index
      %23 = vector.load %arg6[%c0_17, %c0_18] : memref<128x128xbf16, #tpu.memory_space<vmem>>, vector<128x128xbf16>
      tpu.vector_store %arg6[%c0_17, %c0_18], %22 {strides = array<i32>} : memref<128x128xbf16, #tpu.memory_space<vmem>>, vector<128x128xbf16>,
    } else {
    }
    return
  }
  func.func @transform_0(%arg0: i32, %arg1: i32) -> (i32, i32, i32) {
    %c0_i32 = arith.constant 0 : i32
    %c0_i32_0 = arith.constant 0 : i32
    return %arg0, %c0_i32, %arg1 : i32, i32, i32
  }
  func.func @transform_1(%arg0: i32, %arg1: i32) -> (i32, i32) {
    %c0_i32 = arith.constant 0 : i32
    %c0_i32_0 = arith.constant 0 : i32
    return %arg1, %c0_i32 : i32, i32
  }
  func.func @transform_2(%arg0: i32, %arg1: i32) -> (i32, i32) {
    %c0_i32 = arith.constant 0 : i32
    %c0_i32_0 = arith.constant 0 : i32
    %c0_i32_1 = arith.constant 0 : i32
    return %c0_i32, %c0_i32_0 : i32, i32
  }
  func.func @transform_3(%arg0: i32, %arg1: i32) -> (i32, i32) {
    %c0_i32 = arith.constant 0 : i32
    %c0_i32_0 = arith.constant 0 : i32
    %c0_i32_1 = arith.constant 0 : i32
    return %c0_i32, %c0_i32_0 : i32, i32
  }
  func.func @transform_4(%arg0: i32, %arg1: i32) -> (i32, i32) {
    %c0_i32 = arith.constant 0 : i32
    %c0_i32_0 = arith.constant 0 : i32
    return %arg0, %c0_i32 : i32, i32
  }
}

module attributes {stable_mosaic.version = 11 : i64} {
  func.func @_encode_kernel(%arg0: i32, %arg1: memref<128x32xf32, #tpu.memory_space<vmem>>, %arg2: memref<32x64xf32, #tpu.memory_space<vmem>>, %arg3: memref<1x64xf32, #tpu.memory_space<vmem>>, %arg4: memref<64x64xf32, #tpu.memory_space<vmem>>, %arg5: memref<1x64xf32, #tpu.memory_space<vmem>>, %arg6: memref<128x64xbf16, #tpu.memory_space<vmem>>) attributes {dimension_semantics = [#tpu.dimension_semantics<parallel>], iteration_bounds = array<i64: 2>, scalar_prefetch = 0 : i64, scratch_operands = 0 : i64, tpu.core_type = #tpu.core_type<tc>, window_params = [{transform_indices = @transform_0, window_bounds = array<i64: 128, 32>}, {pipeline_mode = #tpu.pipeline_mode<synchronous>, transform_indices = @transform_1, window_bounds = array<i64: 32, 64>}, {pipeline_mode = #tpu.pipeline_mode<synchronous>, transform_indices = @transform_2, window_bounds = array<i64: 1, 64>}, {pipeline_mode = #tpu.pipeline_mode<synchronous>, transform_indices = @transform_3, window_bounds = array<i64: 64, 64>}, {pipeline_mode = #tpu.pipeline_mode<synchronous>, transform_indices = @transform_4, window_bounds = array<i64: 1, 64>}, {transform_indices = @transform_5, window_bounds = array<i64: 128, 64>}]} {
    %c0 = arith.constant 0 : index
    %c0_0 = arith.constant 0 : index
    %0 = vector.load %arg1[%c0, %c0_0] : memref<128x32xf32, #tpu.memory_space<vmem>>, vector<128x32xf32>
    %c0_1 = arith.constant 0 : index
    %c0_2 = arith.constant 0 : index
    %1 = vector.load %arg2[%c0_1, %c0_2] : memref<32x64xf32, #tpu.memory_space<vmem>>, vector<32x64xf32>
    %cst = arith.constant dense<0.000000e+00> : vector<128x64xf32>
    %2 = tpu.matmul %0, %1, %cst {dimension_numbers = #tpu.dot_dimension_numbers<[1], [0], [0], [1], [0, 0, 1, 1], [], []>} : vector<128x32xf32>, vector<32x64xf32>, vector<128x64xf32> -> vector<128x64xf32>
    %c0_3 = arith.constant 0 : index
    %c0_4 = arith.constant 0 : index
    %3 = vector.load %arg3[%c0_3, %c0_4] : memref<1x64xf32, #tpu.memory_space<vmem>>, vector<1x64xf32>
    %4 = vector.broadcast %3 : vector<1x64xf32> to vector<128x64xf32>
    %5 = arith.addf %2, %4 : vector<128x64xf32>
    %c0_5 = arith.constant 0 : index
    %c0_6 = arith.constant 0 : index
    %6 = vector.load %arg4[%c0_5, %c0_6] : memref<64x64xf32, #tpu.memory_space<vmem>>, vector<64x64xf32>
    %cst_7 = arith.constant dense<0.000000e+00> : vector<128x64xf32>
    %7 = tpu.matmul %5, %6, %cst_7 {dimension_numbers = #tpu.dot_dimension_numbers<[1], [0], [0], [1], [0, 0, 1, 1], [], []>} : vector<128x64xf32>, vector<64x64xf32>, vector<128x64xf32> -> vector<128x64xf32>
    %c0_8 = arith.constant 0 : index
    %c0_9 = arith.constant 0 : index
    %8 = vector.load %arg5[%c0_8, %c0_9] : memref<1x64xf32, #tpu.memory_space<vmem>>, vector<1x64xf32>
    %9 = vector.broadcast %8 : vector<1x64xf32> to vector<128x64xf32>
    %10 = arith.addf %7, %9 : vector<128x64xf32>
    %cst_10 = arith.constant 0.000000e+00 : f32
    %11 = vector.broadcast %cst_10 : f32 to vector<128x64xf32>
    %12 = arith.maximumf %10, %11 : vector<128x64xf32>
    %13 = arith.truncf %12 : vector<128x64xf32> to vector<128x64xbf16>
    %c0_11 = arith.constant 0 : index
    %c0_12 = arith.constant 0 : index
    %14 = vector.load %arg6[%c0_11, %c0_12] : memref<128x64xbf16, #tpu.memory_space<vmem>>, vector<128x64xbf16>
    tpu.vector_store %arg6[%c0_11, %c0_12], %13 {strides = array<i32>} : memref<128x64xbf16, #tpu.memory_space<vmem>>, vector<128x64xbf16>,
    return
  }
  func.func @transform_0(%arg0: i32) -> (i32, i32) {
    %c0_i32 = arith.constant 0 : i32
    %c0_i32_0 = arith.constant 0 : i32
    return %arg0, %c0_i32 : i32, i32
  }
  func.func @transform_1(%arg0: i32) -> (i32, i32) {
    %c0_i32 = arith.constant 0 : i32
    %c0_i32_0 = arith.constant 0 : i32
    %c0_i32_1 = arith.constant 0 : i32
    return %c0_i32, %c0_i32_0 : i32, i32
  }
  func.func @transform_2(%arg0: i32) -> (i32, i32) {
    %c0_i32 = arith.constant 0 : i32
    %c0_i32_0 = arith.constant 0 : i32
    %c0_i32_1 = arith.constant 0 : i32
    return %c0_i32, %c0_i32_0 : i32, i32
  }
  func.func @transform_3(%arg0: i32) -> (i32, i32) {
    %c0_i32 = arith.constant 0 : i32
    %c0_i32_0 = arith.constant 0 : i32
    %c0_i32_1 = arith.constant 0 : i32
    return %c0_i32, %c0_i32_0 : i32, i32
  }
  func.func @transform_4(%arg0: i32) -> (i32, i32) {
    %c0_i32 = arith.constant 0 : i32
    %c0_i32_0 = arith.constant 0 : i32
    %c0_i32_1 = arith.constant 0 : i32
    return %c0_i32, %c0_i32_0 : i32, i32
  }
  func.func @transform_5(%arg0: i32) -> (i32, i32) {
    %c0_i32 = arith.constant 0 : i32
    %c0_i32_0 = arith.constant 0 : i32
    return %arg0, %c0_i32 : i32, i32
  }
}

module attributes {stable_mosaic.version = 11 : i64} {
  func.func @_conv_bn_kernel(%arg0: i32, %arg1: i32, %arg2: memref<1x256x128xbf16, #tpu.memory_space<vmem>>, %arg3: memref<128x128xbf16, #tpu.memory_space<vmem>>, %arg4: memref<1x256xf32, #tpu.memory_space<vmem>>, %arg5: memref<1x256xf32, #tpu.memory_space<vmem>>, %arg6: memref<128x256xbf16, #tpu.memory_space<vmem>>, %arg7: memref<256x128xf32, #tpu.memory_space<vmem>>) attributes {dimension_semantics = [#tpu.dimension_semantics<parallel>, #tpu.dimension_semantics<arbitrary>], iteration_bounds = array<i64: 2, 2>, scalar_prefetch = 0 : i64, scratch_operands = 1 : i64, tpu.core_type = #tpu.core_type<tc>, window_params = [{transform_indices = @transform_0, window_bounds = array<i64: 1, 256, 128>}, {transform_indices = @transform_1, window_bounds = array<i64: 128, 128>}, {pipeline_mode = #tpu.pipeline_mode<synchronous>, transform_indices = @transform_2, window_bounds = array<i64: 1, 256>}, {pipeline_mode = #tpu.pipeline_mode<synchronous>, transform_indices = @transform_3, window_bounds = array<i64: 1, 256>}, {transform_indices = @transform_4, window_bounds = array<i64: 128, 256>}]} {
    %c0_i32 = arith.constant 0 : i32
    %0 = arith.cmpi eq, %arg1, %c0_i32 : i32
    %1 = arith.extui %0 : i1 to i32
    %c0_i32_0 = arith.constant 0 : i32
    %2 = arith.cmpi ne, %1, %c0_i32_0 : i32
    scf.if %2 {
      %cst_10 = arith.constant 0.000000e+00 : f32
      %13 = vector.broadcast %cst_10 : f32 to vector<256x128xf32>
      %c0_11 = arith.constant 0 : index
      %c0_12 = arith.constant 0 : index
      %14 = vector.load %arg7[%c0_11, %c0_12] : memref<256x128xf32, #tpu.memory_space<vmem>>, vector<256x128xf32>
      tpu.vector_store %arg7[%c0_11, %c0_12], %13 {strides = array<i32>} : memref<256x128xf32, #tpu.memory_space<vmem>>, vector<256x128xf32>,
    } else {
    }
    %c0 = arith.constant 0 : index
    %c0_1 = arith.constant 0 : index
    %3 = vector.load %arg7[%c0, %c0_1] : memref<256x128xf32, #tpu.memory_space<vmem>>, vector<256x128xf32>
    %c0_2 = arith.constant 0 : index
    %c0_3 = arith.constant 0 : index
    %c0_4 = arith.constant 0 : index
    %4 = vector.load %arg2[%c0_2, %c0_3, %c0_4] : memref<1x256x128xbf16, #tpu.memory_space<vmem>>, vector<1x256x128xbf16>
    %5 = vector.shape_cast %4 : vector<1x256x128xbf16> to vector<256x128xbf16>
    %c0_5 = arith.constant 0 : index
    %c0_6 = arith.constant 0 : index
    %6 = vector.load %arg3[%c0_5, %c0_6] : memref<128x128xbf16, #tpu.memory_space<vmem>>, vector<128x128xbf16>
    %cst = arith.constant dense<0.000000e+00> : vector<256x128xf32>
    %7 = tpu.matmul %5, %6, %cst {dimension_numbers = #tpu.dot_dimension_numbers<[1], [0], [0], [1], [0, 0, 1, 1], [], []>} : vector<256x128xbf16>, vector<128x128xbf16>, vector<256x128xf32> -> vector<256x128xf32>
    %8 = arith.addf %3, %7 : vector<256x128xf32>
    %c0_7 = arith.constant 0 : index
    %c0_8 = arith.constant 0 : index
    %9 = vector.load %arg7[%c0_7, %c0_8] : memref<256x128xf32, #tpu.memory_space<vmem>>, vector<256x128xf32>
    tpu.vector_store %arg7[%c0_7, %c0_8], %8 {strides = array<i32>} : memref<256x128xf32, #tpu.memory_space<vmem>>, vector<256x128xf32>,
    %c1_i32 = arith.constant 1 : i32
    %10 = arith.cmpi eq, %arg1, %c1_i32 : i32
    %11 = arith.extui %10 : i1 to i32
    %c0_i32_9 = arith.constant 0 : i32
    %12 = arith.cmpi ne, %11, %c0_i32_9 : i32
    scf.if %12 {
      %c0_10 = arith.constant 0 : index
      %c0_11 = arith.constant 0 : index
      %13 = vector.load %arg7[%c0_10, %c0_11] : memref<256x128xf32, #tpu.memory_space<vmem>>, vector<128x128xf32>
      %c128 = arith.constant 128 : index
      %c0_12 = arith.constant 0 : index
      %14 = vector.load %arg7[%c128, %c0_12] : memref<256x128xf32, #tpu.memory_space<vmem>>, vector<128x128xf32>
      %15 = tpu.concatenate %13, %14 in 1 : vector<128x128xf32>, vector<128x128xf32> -> vector<128x256xf32>
      %c0_13 = arith.constant 0 : index
      %c0_14 = arith.constant 0 : index
      %16 = vector.load %arg4[%c0_13, %c0_14] : memref<1x256xf32, #tpu.memory_space<vmem>>, vector<1x256xf32>
      %17 = vector.broadcast %16 : vector<1x256xf32> to vector<128x256xf32>
      %18 = arith.mulf %15, %17 : vector<128x256xf32>
      %c0_15 = arith.constant 0 : index
      %c0_16 = arith.constant 0 : index
      %19 = vector.load %arg5[%c0_15, %c0_16] : memref<1x256xf32, #tpu.memory_space<vmem>>, vector<1x256xf32>
      %20 = vector.broadcast %19 : vector<1x256xf32> to vector<128x256xf32>
      %21 = arith.addf %18, %20 : vector<128x256xf32>
      %22 = arith.truncf %21 : vector<128x256xf32> to vector<128x256xbf16>
      %c0_17 = arith.constant 0 : index
      %c0_18 = arith.constant 0 : index
      %23 = vector.load %arg6[%c0_17, %c0_18] : memref<128x256xbf16, #tpu.memory_space<vmem>>, vector<128x256xbf16>
      tpu.vector_store %arg6[%c0_17, %c0_18], %22 {strides = array<i32>} : memref<128x256xbf16, #tpu.memory_space<vmem>>, vector<128x256xbf16>,
    } else {
    }
    return
  }
  func.func @transform_0(%arg0: i32, %arg1: i32) -> (i32, i32, i32) {
    %c0_i32 = arith.constant 0 : i32
    %c0_i32_0 = arith.constant 0 : i32
    return %arg0, %c0_i32, %arg1 : i32, i32, i32
  }
  func.func @transform_1(%arg0: i32, %arg1: i32) -> (i32, i32) {
    %c0_i32 = arith.constant 0 : i32
    %c0_i32_0 = arith.constant 0 : i32
    return %arg1, %c0_i32 : i32, i32
  }
  func.func @transform_2(%arg0: i32, %arg1: i32) -> (i32, i32) {
    %c0_i32 = arith.constant 0 : i32
    %c0_i32_0 = arith.constant 0 : i32
    %c0_i32_1 = arith.constant 0 : i32
    return %c0_i32, %c0_i32_0 : i32, i32
  }
  func.func @transform_3(%arg0: i32, %arg1: i32) -> (i32, i32) {
    %c0_i32 = arith.constant 0 : i32
    %c0_i32_0 = arith.constant 0 : i32
    %c0_i32_1 = arith.constant 0 : i32
    return %c0_i32, %c0_i32_0 : i32, i32
  }
  func.func @transform_4(%arg0: i32, %arg1: i32) -> (i32, i32) {
    %c0_i32 = arith.constant 0 : i32
    %c0_i32_0 = arith.constant 0 : i32
    return %arg0, %c0_i32 : i32, i32
  }
}

module attributes {stable_mosaic.version = 11 : i64} {
  func.func @_conv_bn_kernel(%arg0: i32, %arg1: i32, %arg2: memref<1x256x128xbf16, #tpu.memory_space<vmem>>, %arg3: memref<128x256xbf16, #tpu.memory_space<vmem>>, %arg4: memref<1x512xf32, #tpu.memory_space<vmem>>, %arg5: memref<1x512xf32, #tpu.memory_space<vmem>>, %arg6: memref<128x512xbf16, #tpu.memory_space<vmem>>, %arg7: memref<256x256xf32, #tpu.memory_space<vmem>>) attributes {dimension_semantics = [#tpu.dimension_semantics<parallel>, #tpu.dimension_semantics<arbitrary>], iteration_bounds = array<i64: 2, 2>, scalar_prefetch = 0 : i64, scratch_operands = 1 : i64, tpu.core_type = #tpu.core_type<tc>, window_params = [{transform_indices = @transform_0, window_bounds = array<i64: 1, 256, 128>}, {transform_indices = @transform_1, window_bounds = array<i64: 128, 256>}, {pipeline_mode = #tpu.pipeline_mode<synchronous>, transform_indices = @transform_2, window_bounds = array<i64: 1, 512>}, {pipeline_mode = #tpu.pipeline_mode<synchronous>, transform_indices = @transform_3, window_bounds = array<i64: 1, 512>}, {transform_indices = @transform_4, window_bounds = array<i64: 128, 512>}]} {
    %c0_i32 = arith.constant 0 : i32
    %0 = arith.cmpi eq, %arg1, %c0_i32 : i32
    %1 = arith.extui %0 : i1 to i32
    %c0_i32_0 = arith.constant 0 : i32
    %2 = arith.cmpi ne, %1, %c0_i32_0 : i32
    scf.if %2 {
      %cst_10 = arith.constant 0.000000e+00 : f32
      %13 = vector.broadcast %cst_10 : f32 to vector<256x256xf32>
      %c0_11 = arith.constant 0 : index
      %c0_12 = arith.constant 0 : index
      %14 = vector.load %arg7[%c0_11, %c0_12] : memref<256x256xf32, #tpu.memory_space<vmem>>, vector<256x256xf32>
      tpu.vector_store %arg7[%c0_11, %c0_12], %13 {strides = array<i32>} : memref<256x256xf32, #tpu.memory_space<vmem>>, vector<256x256xf32>,
    } else {
    }
    %c0 = arith.constant 0 : index
    %c0_1 = arith.constant 0 : index
    %3 = vector.load %arg7[%c0, %c0_1] : memref<256x256xf32, #tpu.memory_space<vmem>>, vector<256x256xf32>
    %c0_2 = arith.constant 0 : index
    %c0_3 = arith.constant 0 : index
    %c0_4 = arith.constant 0 : index
    %4 = vector.load %arg2[%c0_2, %c0_3, %c0_4] : memref<1x256x128xbf16, #tpu.memory_space<vmem>>, vector<1x256x128xbf16>
    %5 = vector.shape_cast %4 : vector<1x256x128xbf16> to vector<256x128xbf16>
    %c0_5 = arith.constant 0 : index
    %c0_6 = arith.constant 0 : index
    %6 = vector.load %arg3[%c0_5, %c0_6] : memref<128x256xbf16, #tpu.memory_space<vmem>>, vector<128x256xbf16>
    %cst = arith.constant dense<0.000000e+00> : vector<256x256xf32>
    %7 = tpu.matmul %5, %6, %cst {dimension_numbers = #tpu.dot_dimension_numbers<[1], [0], [0], [1], [0, 0, 1, 1], [], []>} : vector<256x128xbf16>, vector<128x256xbf16>, vector<256x256xf32> -> vector<256x256xf32>
    %8 = arith.addf %3, %7 : vector<256x256xf32>
    %c0_7 = arith.constant 0 : index
    %c0_8 = arith.constant 0 : index
    %9 = vector.load %arg7[%c0_7, %c0_8] : memref<256x256xf32, #tpu.memory_space<vmem>>, vector<256x256xf32>
    tpu.vector_store %arg7[%c0_7, %c0_8], %8 {strides = array<i32>} : memref<256x256xf32, #tpu.memory_space<vmem>>, vector<256x256xf32>,
    %c1_i32 = arith.constant 1 : i32
    %10 = arith.cmpi eq, %arg1, %c1_i32 : i32
    %11 = arith.extui %10 : i1 to i32
    %c0_i32_9 = arith.constant 0 : i32
    %12 = arith.cmpi ne, %11, %c0_i32_9 : i32
    scf.if %12 {
      %c0_10 = arith.constant 0 : index
      %c0_11 = arith.constant 0 : index
      %13 = vector.load %arg7[%c0_10, %c0_11] : memref<256x256xf32, #tpu.memory_space<vmem>>, vector<128x256xf32>
      %c128 = arith.constant 128 : index
      %c0_12 = arith.constant 0 : index
      %14 = vector.load %arg7[%c128, %c0_12] : memref<256x256xf32, #tpu.memory_space<vmem>>, vector<128x256xf32>
      %15 = tpu.concatenate %13, %14 in 1 : vector<128x256xf32>, vector<128x256xf32> -> vector<128x512xf32>
      %c0_13 = arith.constant 0 : index
      %c0_14 = arith.constant 0 : index
      %16 = vector.load %arg4[%c0_13, %c0_14] : memref<1x512xf32, #tpu.memory_space<vmem>>, vector<1x512xf32>
      %17 = vector.broadcast %16 : vector<1x512xf32> to vector<128x512xf32>
      %18 = arith.mulf %15, %17 : vector<128x512xf32>
      %c0_15 = arith.constant 0 : index
      %c0_16 = arith.constant 0 : index
      %19 = vector.load %arg5[%c0_15, %c0_16] : memref<1x512xf32, #tpu.memory_space<vmem>>, vector<1x512xf32>
      %20 = vector.broadcast %19 : vector<1x512xf32> to vector<128x512xf32>
      %21 = arith.addf %18, %20 : vector<128x512xf32>
      %22 = arith.truncf %21 : vector<128x512xf32> to vector<128x512xbf16>
      %c0_17 = arith.constant 0 : index
      %c0_18 = arith.constant 0 : index
      %23 = vector.load %arg6[%c0_17, %c0_18] : memref<128x512xbf16, #tpu.memory_space<vmem>>, vector<128x512xbf16>
      tpu.vector_store %arg6[%c0_17, %c0_18], %22 {strides = array<i32>} : memref<128x512xbf16, #tpu.memory_space<vmem>>, vector<128x512xbf16>,
    } else {
    }
    return
  }
  func.func @transform_0(%arg0: i32, %arg1: i32) -> (i32, i32, i32) {
    %c0_i32 = arith.constant 0 : i32
    %c0_i32_0 = arith.constant 0 : i32
    return %arg0, %c0_i32, %arg1 : i32, i32, i32
  }
  func.func @transform_1(%arg0: i32, %arg1: i32) -> (i32, i32) {
    %c0_i32 = arith.constant 0 : i32
    %c0_i32_0 = arith.constant 0 : i32
    return %arg1, %c0_i32 : i32, i32
  }
  func.func @transform_2(%arg0: i32, %arg1: i32) -> (i32, i32) {
    %c0_i32 = arith.constant 0 : i32
    %c0_i32_0 = arith.constant 0 : i32
    %c0_i32_1 = arith.constant 0 : i32
    return %c0_i32, %c0_i32_0 : i32, i32
  }
  func.func @transform_3(%arg0: i32, %arg1: i32) -> (i32, i32) {
    %c0_i32 = arith.constant 0 : i32
    %c0_i32_0 = arith.constant 0 : i32
    %c0_i32_1 = arith.constant 0 : i32
    return %c0_i32, %c0_i32_0 : i32, i32
  }
  func.func @transform_4(%arg0: i32, %arg1: i32) -> (i32, i32) {
    %c0_i32 = arith.constant 0 : i32
    %c0_i32_0 = arith.constant 0 : i32
    return %arg0, %c0_i32 : i32, i32
  }
}

module attributes {stable_mosaic.version = 11 : i64} {
  func.func @_head_kernel(%arg0: i32, %arg1: memref<128x64xbf16, #tpu.memory_space<vmem>>, %arg2: memref<128x128xbf16, #tpu.memory_space<vmem>>, %arg3: memref<128x256xbf16, #tpu.memory_space<vmem>>, %arg4: memref<128x512xbf16, #tpu.memory_space<vmem>>, %arg5: memref<64x8xbf16, #tpu.memory_space<vmem>>, %arg6: memref<128x8xbf16, #tpu.memory_space<vmem>>, %arg7: memref<256x8xbf16, #tpu.memory_space<vmem>>, %arg8: memref<512x8xbf16, #tpu.memory_space<vmem>>, %arg9: memref<1x8xf32, #tpu.memory_space<vmem>>, %arg10: memref<128x8xf32, #tpu.memory_space<vmem>>) attributes {dimension_semantics = [#tpu.dimension_semantics<parallel>], iteration_bounds = array<i64: 2>, scalar_prefetch = 0 : i64, scratch_operands = 0 : i64, tpu.core_type = #tpu.core_type<tc>, window_params = [{transform_indices = @transform_0, window_bounds = array<i64: 128, 64>}, {transform_indices = @transform_1, window_bounds = array<i64: 128, 128>}, {transform_indices = @transform_2, window_bounds = array<i64: 128, 256>}, {transform_indices = @transform_3, window_bounds = array<i64: 128, 512>}, {pipeline_mode = #tpu.pipeline_mode<synchronous>, transform_indices = @transform_4, window_bounds = array<i64: 64, 8>}, {pipeline_mode = #tpu.pipeline_mode<synchronous>, transform_indices = @transform_5, window_bounds = array<i64: 128, 8>}, {pipeline_mode = #tpu.pipeline_mode<synchronous>, transform_indices = @transform_6, window_bounds = array<i64: 256, 8>}, {pipeline_mode = #tpu.pipeline_mode<synchronous>, transform_indices = @transform_7, window_bounds = array<i64: 512, 8>}, {pipeline_mode = #tpu.pipeline_mode<synchronous>, transform_indices = @transform_8, window_bounds = array<i64: 1, 8>}, {transform_indices = @transform_9, window_bounds = array<i64: 128, 8>}]} {
    %c0 = arith.constant 0 : index
    %c0_0 = arith.constant 0 : index
    %0 = vector.load %arg1[%c0, %c0_0] : memref<128x64xbf16, #tpu.memory_space<vmem>>, vector<128x64xbf16>
    %c0_1 = arith.constant 0 : index
    %c0_2 = arith.constant 0 : index
    %1 = vector.load %arg5[%c0_1, %c0_2] : memref<64x8xbf16, #tpu.memory_space<vmem>>, vector<64x8xbf16>
    %cst = arith.constant dense<0.000000e+00> : vector<128x8xf32>
    %2 = tpu.matmul %0, %1, %cst {dimension_numbers = #tpu.dot_dimension_numbers<[1], [0], [0], [1], [0, 0, 1, 1], [], []>} : vector<128x64xbf16>, vector<64x8xbf16>, vector<128x8xf32> -> vector<128x8xf32>
    %c0_3 = arith.constant 0 : index
    %c0_4 = arith.constant 0 : index
    %3 = vector.load %arg2[%c0_3, %c0_4] : memref<128x128xbf16, #tpu.memory_space<vmem>>, vector<128x128xbf16>
    %c0_5 = arith.constant 0 : index
    %c0_6 = arith.constant 0 : index
    %4 = vector.load %arg6[%c0_5, %c0_6] : memref<128x8xbf16, #tpu.memory_space<vmem>>, vector<128x8xbf16>
    %cst_7 = arith.constant dense<0.000000e+00> : vector<128x8xf32>
    %5 = tpu.matmul %3, %4, %cst_7 {dimension_numbers = #tpu.dot_dimension_numbers<[1], [0], [0], [1], [0, 0, 1, 1], [], []>} : vector<128x128xbf16>, vector<128x8xbf16>, vector<128x8xf32> -> vector<128x8xf32>
    %6 = arith.addf %2, %5 : vector<128x8xf32>
    %c0_8 = arith.constant 0 : index
    %c0_9 = arith.constant 0 : index
    %7 = vector.load %arg3[%c0_8, %c0_9] : memref<128x256xbf16, #tpu.memory_space<vmem>>, vector<128x256xbf16>
    %c0_10 = arith.constant 0 : index
    %c0_11 = arith.constant 0 : index
    %8 = vector.load %arg7[%c0_10, %c0_11] : memref<256x8xbf16, #tpu.memory_space<vmem>>, vector<256x8xbf16>
    %cst_12 = arith.constant dense<0.000000e+00> : vector<128x8xf32>
    %9 = tpu.matmul %7, %8, %cst_12 {dimension_numbers = #tpu.dot_dimension_numbers<[1], [0], [0], [1], [0, 0, 1, 1], [], []>} : vector<128x256xbf16>, vector<256x8xbf16>, vector<128x8xf32> -> vector<128x8xf32>
    %10 = arith.addf %6, %9 : vector<128x8xf32>
    %c0_13 = arith.constant 0 : index
    %c0_14 = arith.constant 0 : index
    %11 = vector.load %arg4[%c0_13, %c0_14] : memref<128x512xbf16, #tpu.memory_space<vmem>>, vector<128x512xbf16>
    %c0_15 = arith.constant 0 : index
    %c0_16 = arith.constant 0 : index
    %12 = vector.load %arg8[%c0_15, %c0_16] : memref<512x8xbf16, #tpu.memory_space<vmem>>, vector<512x8xbf16>
    %cst_17 = arith.constant dense<0.000000e+00> : vector<128x8xf32>
    %13 = tpu.matmul %11, %12, %cst_17 {dimension_numbers = #tpu.dot_dimension_numbers<[1], [0], [0], [1], [0, 0, 1, 1], [], []>} : vector<128x512xbf16>, vector<512x8xbf16>, vector<128x8xf32> -> vector<128x8xf32>
    %14 = arith.addf %10, %13 : vector<128x8xf32>
    %c0_18 = arith.constant 0 : index
    %c0_19 = arith.constant 0 : index
    %15 = vector.load %arg9[%c0_18, %c0_19] : memref<1x8xf32, #tpu.memory_space<vmem>>, vector<1x8xf32>
    %16 = vector.broadcast %15 : vector<1x8xf32> to vector<128x8xf32>
    %17 = arith.addf %14, %16 : vector<128x8xf32>
    %c0_20 = arith.constant 0 : index
    %c0_21 = arith.constant 0 : index
    %18 = vector.load %arg10[%c0_20, %c0_21] : memref<128x8xf32, #tpu.memory_space<vmem>>, vector<128x8xf32>
    tpu.vector_store %arg10[%c0_20, %c0_21], %17 {strides = array<i32>} : memref<128x8xf32, #tpu.memory_space<vmem>>, vector<128x8xf32>,
    return
  }
  func.func @transform_0(%arg0: i32) -> (i32, i32) {
    %c0_i32 = arith.constant 0 : i32
    %c0_i32_0 = arith.constant 0 : i32
    return %arg0, %c0_i32 : i32, i32
  }
  func.func @transform_1(%arg0: i32) -> (i32, i32) {
    %c0_i32 = arith.constant 0 : i32
    %c0_i32_0 = arith.constant 0 : i32
    return %arg0, %c0_i32 : i32, i32
  }
  func.func @transform_2(%arg0: i32) -> (i32, i32) {
    %c0_i32 = arith.constant 0 : i32
    %c0_i32_0 = arith.constant 0 : i32
    return %arg0, %c0_i32 : i32, i32
  }
  func.func @transform_3(%arg0: i32) -> (i32, i32) {
    %c0_i32 = arith.constant 0 : i32
    %c0_i32_0 = arith.constant 0 : i32
    return %arg0, %c0_i32 : i32, i32
  }
  func.func @transform_4(%arg0: i32) -> (i32, i32) {
    %c0_i32 = arith.constant 0 : i32
    %c0_i32_0 = arith.constant 0 : i32
    %c0_i32_1 = arith.constant 0 : i32
    return %c0_i32, %c0_i32_0 : i32, i32
  }
  func.func @transform_5(%arg0: i32) -> (i32, i32) {
    %c0_i32 = arith.constant 0 : i32
    %c0_i32_0 = arith.constant 0 : i32
    %c0_i32_1 = arith.constant 0 : i32
    return %c0_i32, %c0_i32_0 : i32, i32
  }
  func.func @transform_6(%arg0: i32) -> (i32, i32) {
    %c0_i32 = arith.constant 0 : i32
    %c0_i32_0 = arith.constant 0 : i32
    %c0_i32_1 = arith.constant 0 : i32
    return %c0_i32, %c0_i32_0 : i32, i32
  }
  func.func @transform_7(%arg0: i32) -> (i32, i32) {
    %c0_i32 = arith.constant 0 : i32
    %c0_i32_0 = arith.constant 0 : i32
    %c0_i32_1 = arith.constant 0 : i32
    return %c0_i32, %c0_i32_0 : i32, i32
  }
  func.func @transform_8(%arg0: i32) -> (i32, i32) {
    %c0_i32 = arith.constant 0 : i32
    %c0_i32_0 = arith.constant 0 : i32
    %c0_i32_1 = arith.constant 0 : i32
    return %c0_i32, %c0_i32_0 : i32, i32
  }
  func.func @transform_9(%arg0: i32) -> (i32, i32) {
    %c0_i32 = arith.constant 0 : i32
    %c0_i32_0 = arith.constant 0 : i32
    return %arg0, %c0_i32 : i32, i32
  }
}

</mosaic_0001>

<bundles_post_ra>
// kernel: h2gcn_forward.5
= control target key start
LH: loop header
LB: loop body
LE: loop exit
PB: predicated region body
PF: predicated region fallthrough
CT: control target
= control target key end

     0   :  { %s1082_s18 = smov 0   ;;  %s1247_s0 = inlined_call_operand.vmem [shape: f32[256,32], index: 0, kind: input, shape index: {}]   ;;  %s1248_s1 = inlined_call_operand.vmem [shape: f32[32,64], index: 1, kind: input, shape index: {}]   ;;  %s1249_s2 = inlined_call_operand.vmem [shape: f32[1,64], index: 2, kind: input, shape index: {}]   ;;  %s1250_s3 = inlined_call_operand.vmem [shape: f32[64,64], index: 3, kind: input, shape index: {}]   ;;  %s1251_s4 = inlined_call_operand.vmem [shape: f32[1,64], index: 4, kind: input, shape index: {}]   ;;  %s1252_s5 = inlined_call_operand.vmem [shape: bf16[256,64], index: 5, kind: output, shape index: {}]  }
   0x1 LB: > { %s811_s19 = sadd.s32 4294967295, %s1050_s18   ;;  %p815_p0 = scmp.ge.s32.totalorder %s1050_s18, 1  ;;  %s1050_s18 = sphi %s1082_s18, %s15_s18  }
   0x2   : > { %p188_p1 = scmp.lt.s32.totalorder %s1050_s18, 3 }
   0x4   : > { %p189_p2 = pnand %p815_p0, %p188_p1 }
   0x5   : > { %v244_v0 = vld [vmem:[%s1248_s1] sm:$0xff] (!%p189_p2)  ;;  %v245_v1 = vld [vmem:[%s1248_s1 + $0x8] sm:$0xff] (!%p189_p2)  ;;  %v246_v2 = vld [vmem:[%s1248_s1 + $0x10] sm:$0xff] (!%p189_p2)  ;;  %s816_s26 = sshll.u32 (!%p189_p2), %s811_s19, 4  ;;  %vm255_vm0 = vcmask (!%p189_p2), 261120   ;;  %vm464_vm1 = vcmask (!%p189_p2), 523264  }
   0x6   : > { %192 = sbr.rel (%p189_p2) target bundleno = 482 (0x1e2), region = 40  ;;  %v1004_v3 = vpack.c.bf16 (!%p189_p2), %v245_v1, %v244_v0  ;;  %v247_v4 = vld [vmem:[%s1248_s1 + $0x18] sm:$0xff] (!%p189_p2)  ;;  %p217_p3 = scmp.lt.s32.totalorder (!%p189_p2), %s816_s26, 31  ;;  %v449_v5 = vld [vmem:[%s1250_s3] sm:$0xff] (!%p189_p2)  ;;  %v450_v6 = vld [vmem:[%s1250_s3 + $0x8] sm:$0xff] (!%p189_p2)  ;;  %vm738_vm2 = vcmask (!%p189_p2), 519168  }
   0x7   : > { %v1008_v7 = vpack.c.bf16 (!%p189_p2), %v247_v4, %v246_v2  ;;  %v1012_v8 = vpack.c.bf16 (!%p189_p2), %v450_v6, %v449_v5  ;;  %v451_v9 = vld [vmem:[%s1250_s3 + $0x10] sm:$0xff] (!%p189_p2)  ;;  %v452_v10 = vld [vmem:[%s1250_s3 + $0x18] sm:$0xff] (!%p189_p2)  ;;  %v453_v12 = vld [vmem:[%s1250_s3 + $0x20] sm:$0xff] (!%p189_p2) }
   0x8   : > { %1005 = vmatprep.subr.bf16.mxu0 (!%p189_p2), %v1004_v3  ;;  %v1016_v11 = vpack.c.bf16 (!%p189_p2), %v452_v10, %v451_v9  ;;  %v454_v13 = vld [vmem:[%s1250_s3 + $0x28] sm:$0xff] (!%p189_p2)  ;;  %v455_v31 = vld [vmem:[%s1250_s3 + $0x30] sm:$0xff] (!%p189_p2)  ;;  %v456_v32 = vld [vmem:[%s1250_s3 + $0x38] sm:$0xff] (!%p189_p2) }
   0x9   : > { %1007 = vmatpush3.bf16.msra.mxu0 (!%p189_p2), %v1004_v3  ;;  %1028 = vmatprep.subr.bf16.mxu1 (!%p189_p2), %v1012_v8  ;;  %v1020_v16 = vpack.c.bf16 (!%p189_p2), %v454_v13, %v453_v12  ;;  %v1024_v33 = vpack.c.bf16 (!%p189_p2), %v456_v32, %v455_v31  ;;  %v820_v34 = vld [vmem:[%s1249_s2] ss:$0 sm:$0xff] (!%p189_p2) }
   0xa   : > { %1009 = vmatprep.subr.bf16.mxu0 (!%p189_p2), %v1008_v7  ;;  %1032 = vmatpush3.bf16.msra.mxu1 (!%p189_p2), %v1012_v8  ;;  %v1188_v3 = vld [vmem:[%s1251_s4] ss:$0 sm:$0xff] (!%p189_p2) }
   0xb   : > { %1029 = vmatprep.subr.bf16.mxu1 (!%p189_p2), %v1016_v11 }
   0xd   : > { %s1254_s26 = smov (!%p217_p3, %s816_s26), 31  ;;  %1011 = vmatpush3.bf16.msra.mxu0 %v1008_v7 }
   0xe   : > { %s817_s12 = sshll.u32 %s1254_s26, 3  ;;  %1013 = vmatprep.subr.bf16.mxu0 %v1012_v8  ;;  %1033 = vmatpush3.bf16.msra.mxu1 %v1016_v11  ;;  %s819_s30 = sshll.u32 %s1254_s26, 2 }
   0xf   : > { %s1126_s20 = scalar_lea.vmem %s1247_s0, %s817_s12  ;;  %1030 = vmatprep.subr.bf16.mxu1 %v1020_v16  ;;  %s1196_s8 = scalar_lea.vmem %s1252_s5, %s819_s30 }
  0x10   : > { %v228_v14 = vld [vmem:[%s1126_s20] sm:$0xff]  ;;  %v229_v15 = vld [vmem:[%s1126_s20 + $0x8] sm:$0xff]  ;;  %v230_v17 = vld [vmem:[%s1126_s20 + $0x10] sm:$0xff] }
  0x11   : > { %940 = vmatprep.mubr.msk.f32.mxu0 %vm255_vm0, %v228_v14  ;;  %v231_v18 = vld [vmem:[%s1126_s20 + $0x18] sm:$0xff]  ;;  %v232_v19 = vld [vmem:[%s1126_s20 + $0x20] sm:$0xff]  ;;  %v233_v20 = vld [vmem:[%s1126_s20 + $0x28] sm:$0xff] }
  0x12   : > { %941 = vmatmul.mubr.msk.f32.vlgmr.msra.gmra.mrb[0].mxu0 %vm255_vm0, %v229_v15  ;;  %1034 = vmatpush3.bf16.msra.mxu1 %v1020_v16  ;;  %v234_v21 = vld [vmem:[%s1126_s20 + $0x30] sm:$0xff]  ;;  %v235_v22 = vld [vmem:[%s1126_s20 + $0x38] sm:$0xff]  ;;  %v236_v23 = vld [vmem:[%s1126_s20 + $0x40] sm:$0xff] }
  0x13   : > { %943 = vmatprep.mubr.msk.f32.mxu0 %vm255_vm0, %v230_v17  ;;  %1015 = vmatpush3.bf16.msra.mxu0 %v1012_v8  ;;  %v237_v24 = vld [vmem:[%s1126_s20 + $0x48] sm:$0xff]  ;;  %v238_v25 = vld [vmem:[%s1126_s20 + $0x50] sm:$0xff]  ;;  %v239_v26 = vld [vmem:[%s1126_s20 + $0x58] sm:$0xff] }
  0x14   : > { %1017 = vmatprep.subr.bf16.mxu0 %v1016_v11  ;;  %v240_v27 = vld [vmem:[%s1126_s20 + $0x60] sm:$0xff]  ;;  %v241_v28 = vld [vmem:[%s1126_s20 + $0x68] sm:$0xff]  ;;  %v242_v29 = vld [vmem:[%s1126_s20 + $0x70] sm:$0xff]  ;;  %1031 = vmatprep.subr.bf16.mxu1 %v1024_v33 }
  0x15   : > { %v243_v30 = vld [vmem:[%s1126_s20 + $0x78] sm:$0xff] }
  0x16   : > { %944 = vmatmul.mubr.msk.f32.gmra.mrb[2].mxu0 %vm255_vm0, %v231_v18  ;;  %1035 = vmatpush3.bf16.msra.mxu1 %v1024_v33 }
  0x17   : > { %946 = vmatprep.mubr.msk.f32.mxu0 %vm255_vm0, %v232_v19  ;;  %1019 = vmatpush3.bf16.msra.mxu0 %v1016_v11 }
  0x18   : > { %1021 = vmatprep.subr.bf16.mxu0 %v1020_v16 }
  0x1a   : > { %947 = vmatmul.mubr.msk.f32.gmra.mrb[4].mxu0 %vm255_vm0, %v233_v20 }
  0x1b   : > { %949 = vmatprep.mubr.msk.f32.mxu0 %vm255_vm0, %v234_v21  ;;  %1023 = vmatpush3.bf16.msra.mxu0 %v1020_v16 }
  0x1c   : > { %1025 = vmatprep.subr.bf16.mxu0 %v1024_v33 }
  0x1e   : > { %950 = vmatmul.mubr.msk.f32.gmra.mrb[6].mxu0 %vm255_vm0, %v235_v22 }
  0x1f   : > { %952 = vmatprep.mubr.msk.f32.mxu0 %vm255_vm0, %v236_v23  ;;  %1027 = vmatpush3.bf16.msra.mxu0 %v1024_v33 }
  0x22   : > { %953 = vmatmul.mubr.msk.f32.gmra.mrb[8].mxu0 %vm255_vm0, %v237_v24 }
  0x23   : > { %955 = vmatprep.mubr.msk.f32.mxu0 %vm255_vm0, %v238_v25 }
  0x26   : > { %956 = vmatmul.mubr.msk.f32.gmra.mrb[10].mxu0 %vm255_vm0, %v239_v26 }
  0x27   : > { %958 = vmatprep.mubr.msk.f32.mxu0 %vm255_vm0, %v240_v27 }
  0x2a   : > { %959 = vmatmul.mubr.msk.f32.gmra.mrb[12].mxu0 %vm255_vm0, %v241_v28 }
  0x2b   : > { %961 = vmatprep.mubr.msk.f32.mxu0 %vm255_vm0, %v242_v29 }
  0x2e   : > { %962 = vmatmul.mubr.msk.f32.gmra.mrb[14].mxu0 %vm255_vm0, %v243_v30 }
  0xe5   : > { %v942_v35 = vpop.f32.mrb[0].mxu0 }
  0xe6   : > { %v370_v36 = vpop.f32.mrb[1].mxu0  ;;  %v376_v38 = vadd.f32 %v942_v35, %v820_v34 }
  0xe7   : > { %v371_v37 = vadd.f32 %v820_v34, %v370_v36 }
  0xe9   : > { %v945_v39 = vpop.f32.mrb[2].mxu0  ;;  %980 = vmatprep.mubr.msk.f32.mxu0 %vm464_vm1, %v371_v37 }
  0xea   : > { %v380_v40 = vpop.f32.mrb[3].mxu0  ;;  %981 = vmatmul.mubr.msk.f32.vlgmr.msra.gmra.mrb[16].mxu0 %vm464_vm1, %v376_v38  ;;  %v386_v42 = vadd.f32 %v945_v39, %v820_v34 }
  0xeb   : > { %v381_v41 = vadd.f32 %v820_v34, %v380_v40 }
  0xed   : > { %v948_v43 = vpop.f32.mrb[4].mxu0  ;;  %983 = vmatprep.mubr.msk.f32.mxu1 %vm464_vm1, %v381_v41 }
  0xee   : > { %v390_v44 = vpop.f32.mrb[5].mxu0  ;;  %984 = vmatmul.mubr.msk.f32.vlgmr.msra.gmra.mrb[0].mxu1 %vm464_vm1, %v386_v42  ;;  %v396_v46 = vadd.f32 %v948_v43, %v820_v34 }
  0xef   : > { %v391_v45 = vadd.f32 %v820_v34, %v390_v44 }
  0xf1   : > { %v951_v47 = vpop.f32.mrb[6].mxu0  ;;  %986 = vmatprep.mubr.msk.f32.mxu1 %vm464_vm1, %v391_v45 }
  0xf2   : > { %v400_v48 = vpop.f32.mrb[7].mxu0  ;;  %987 = vmatmul.mubr.msk.f32.gmra.mrb[2].mxu1 %vm464_vm1, %v396_v46  ;;  %v406_v50 = vadd.f32 %v951_v47, %v820_v34 }
  0xf3   : > { %v401_v49 = vadd.f32 %v820_v34, %v400_v48 }
  0xf5   : > { %v954_v51 = vpop.f32.mrb[8].mxu0  ;;  %989 = vmatprep.mubr.msk.f32.mxu1 %vm464_vm1, %v401_v49 }
  0xf6   : > { %v410_v52 = vpop.f32.mrb[9].mxu0  ;;  %990 = vmatmul.mubr.msk.f32.gmra.mrb[4].mxu1 %vm464_vm1, %v406_v50  ;;  %v416_v54 = vadd.f32 %v954_v51, %v820_v34 }
  0xf7   : > { %v411_v53 = vadd.f32 %v820_v34, %v410_v52 }
  0xf9   : > { %v957_v55 = vpop.f32.mrb[10].mxu0  ;;  %992 = vmatprep.mubr.msk.f32.mxu1 %vm464_vm1, %v411_v53 }
  0xfa   : > { %v420_v56 = vpop.f32.mrb[11].mxu0  ;;  %993 = vmatmul.mubr.msk.f32.gmra.mrb[6].mxu1 %vm464_vm1, %v416_v54  ;;  %v426_v58 = vadd.f32 %v957_v55, %v820_v34 }
  0xfb   : > { %v421_v57 = vadd.f32 %v820_v34, %v420_v56 }
  0xfd   : > { %v960_v59 = vpop.f32.mrb[12].mxu0  ;;  %995 = vmatprep.mubr.msk.f32.mxu1 %vm464_vm1, %v421_v57 }
  0xfe   : > { %v430_v60 = vpop.f32.mrb[13].mxu0  ;;  %996 = vmatmul.mubr.msk.f32.gmra.mrb[8].mxu1 %vm464_vm1, %v426_v58  ;;  %v436_v62 = vadd.f32 %v960_v59, %v820_v34 }
  0xff   : > { %v431_v61 = vadd.f32 %v820_v34, %v430_v60 }
 0x101   : > { %v963_v63 = vpop.f32.mrb[14].mxu0  ;;  %998 = vmatprep.mubr.msk.f32.mxu1 %vm464_vm1, %v431_v61 }
 0x102   : > { %v440_v0 = vpop.f32.mrb[15].mxu0  ;;  %999 = vmatmul.mubr.msk.f32.gmra.mrb[10].mxu1 %vm464_vm1, %v436_v62  ;;  %v446_v2 = vadd.f32 %v963_v63, %v820_v34 }
 0x103   : > { %v441_v1 = vadd.f32 %v820_v34, %v440_v0 }
 0x105   : > { %1001 = vmatprep.mubr.msk.f32.mxu1 %vm464_vm1, %v441_v1 }
 0x106   : > { %1002 = vmatmul.mubr.msk.f32.gmra.mrb[12].mxu1 %vm464_vm1, %v446_v2 }
 0x1bd   : > { %v982_v4 = vpop.f32.mrb[16].mxu0 }
 0x1be   : > { %v585_v5 = vadd.f32 %v982_v4, %v1188_v3  ;;  %v579_v6 = vpop.f32.mrb[17].mxu0 }
 0x1bf   : > { %v580_v7 = vadd.f32 %v1188_v3, %v579_v6 }
 0x1c0   : > { %v659_v8 = vmax.f32 %v585_v5, 0.0 }
 0x1c1   : > { %v658_v9 = vmax.f32 %v580_v7, 0.0  ;;  %v985_v10 = vpop.f32.mrb[0].mxu1 }
 0x1c2   : > { %v873_v11 = vpack.c.bf16 %v659_v8, %v659_v8  ;;  %v595_v12 = vadd.f32 %v985_v10, %v1188_v3  ;;  %v589_v13 = vpop.f32.mrb[1].mxu1 }
 0x1c3   : > { %v872_v14 = vpack.c.bf16 %v658_v9, %v658_v9  ;;  %v590_v15 = vadd.f32 %v1188_v3, %v589_v13 }
 0x1c4   : > { %740 = vst.msk [vmem:[%s1196_s8 + $0x4] sm:$0xf] %vm738_vm2, %v873_v11  ;;  %v661_v16 = vmax.f32 %v595_v12, 0.0 }
 0x1c5   : > { %739 = vst.msk [vmem:[%s1196_s8] sm:$0xf] %vm738_vm2, %v872_v14  ;;  %v660_v17 = vmax.f32 %v590_v15, 0.0  ;;  %v988_v18 = vpop.f32.mrb[2].mxu1 }
 0x1c6   : > { %v875_v19 = vpack.c.bf16 %v661_v16, %v661_v16  ;;  %v605_v20 = vadd.f32 %v988_v18, %v1188_v3  ;;  %v599_v21 = vpop.f32.mrb[3].mxu1 }
 0x1c7   : > { %v874_v22 = vpack.c.bf16 %v660_v17, %v660_v17  ;;  %v600_v23 = vadd.f32 %v1188_v3, %v599_v21 }
 0x1c8   : > { %742 = vst.msk [vmem:[%s1196_s8 + $0xc] sm:$0xf] %vm738_vm2, %v875_v19  ;;  %v663_v24 = vmax.f32 %v605_v20, 0.0 }
 0x1c9   : > { %741 = vst.msk [vmem:[%s1196_s8 + $0x8] sm:$0xf] %vm738_vm2, %v874_v22  ;;  %v662_v25 = vmax.f32 %v600_v23, 0.0  ;;  %v991_v26 = vpop.f32.mrb[4].mxu1 }
 0x1ca   : > { %v877_v27 = vpack.c.bf16 %v663_v24, %v663_v24  ;;  %v615_v28 = vadd.f32 %v991_v26, %v1188_v3  ;;  %v609_v29 = vpop.f32.mrb[5].mxu1 }
 0x1cb   : > { %v876_v30 = vpack.c.bf16 %v662_v25, %v662_v25  ;;  %v610_v31 = vadd.f32 %v1188_v3, %v609_v29 }
 0x1cc   : > { %744 = vst.msk [vmem:[%s1196_s8 + $0x14] sm:$0xf] %vm738_vm2, %v877_v27  ;;  %v665_v32 = vmax.f32 %v615_v28, 0.0 }
 0x1cd   : > { %743 = vst.msk [vmem:[%s1196_s8 + $0x10] sm:$0xf] %vm738_vm2, %v876_v30  ;;  %v664_v33 = vmax.f32 %v610_v31, 0.0  ;;  %v994_v34 = vpop.f32.mrb[6].mxu1 }
 0x1ce   : > { %v879_v35 = vpack.c.bf16 %v665_v32, %v665_v32  ;;  %v625_v36 = vadd.f32 %v994_v34, %v1188_v3  ;;  %v619_v37 = vpop.f32.mrb[7].mxu1 }
 0x1cf   : > { %v878_v38 = vpack.c.bf16 %v664_v33, %v664_v33  ;;  %v620_v39 = vadd.f32 %v1188_v3, %v619_v37 }
 0x1d0   : > { %746 = vst.msk [vmem:[%s1196_s8 + $0x1c] sm:$0xf] %vm738_vm2, %v879_v35  ;;  %v667_v40 = vmax.f32 %v625_v36, 0.0 }
 0x1d1   : > { %745 = vst.msk [vmem:[%s1196_s8 + $0x18] sm:$0xf] %vm738_vm2, %v878_v38  ;;  %v666_v41 = vmax.f32 %v620_v39, 0.0  ;;  %v997_v42 = vpop.f32.mrb[8].mxu1 }
 0x1d2   : > { %v881_v43 = vpack.c.bf16 %v667_v40, %v667_v40  ;;  %v635_v44 = vadd.f32 %v997_v42, %v1188_v3  ;;  %v629_v45 = vpop.f32.mrb[9].mxu1 }
 0x1d3   : > { %v880_v46 = vpack.c.bf16 %v666_v41, %v666_v41  ;;  %v630_v47 = vadd.f32 %v1188_v3, %v629_v45 }
 0x1d4   : > { %748 = vst.msk [vmem:[%s1196_s8 + $0x24] sm:$0xf] %vm738_vm2, %v881_v43  ;;  %v669_v48 = vmax.f32 %v635_v44, 0.0 }
 0x1d5   : > { %747 = vst.msk [vmem:[%s1196_s8 + $0x20] sm:$0xf] %vm738_vm2, %v880_v46  ;;  %v668_v49 = vmax.f32 %v630_v47, 0.0  ;;  %v1000_v50 = vpop.f32.mrb[10].mxu1 }
 0x1d6   : > { %v883_v51 = vpack.c.bf16 %v669_v48, %v669_v48  ;;  %v645_v52 = vadd.f32 %v1000_v50, %v1188_v3  ;;  %v639_v53 = vpop.f32.mrb[11].mxu1 }
 0x1d7   : > { %v882_v54 = vpack.c.bf16 %v668_v49, %v668_v49  ;;  %v640_v55 = vadd.f32 %v1188_v3, %v639_v53 }
 0x1d8   : > { %750 = vst.msk [vmem:[%s1196_s8 + $0x2c] sm:$0xf] %vm738_vm2, %v883_v51  ;;  %v671_v56 = vmax.f32 %v645_v52, 0.0 }
 0x1d9   : > { %749 = vst.msk [vmem:[%s1196_s8 + $0x28] sm:$0xf] %vm738_vm2, %v882_v54  ;;  %v670_v57 = vmax.f32 %v640_v55, 0.0  ;;  %v1003_v58 = vpop.f32.mrb[12].mxu1 }
 0x1da   : > { %v885_v59 = vpack.c.bf16 %v671_v56, %v671_v56  ;;  %v655_v60 = vadd.f32 %v1003_v58, %v1188_v3  ;;  %v649_v61 = vpop.f32.mrb[13].mxu1 }
 0x1db   : > { %v884_v62 = vpack.c.bf16 %v670_v57, %v670_v57  ;;  %v650_v63 = vadd.f32 %v1188_v3, %v649_v61 }
 0x1dc   : > { %752 = vst.msk [vmem:[%s1196_s8 + $0x34] sm:$0xf] %vm738_vm2, %v885_v59  ;;  %v673_v0 = vmax.f32 %v655_v60, 0.0 }
 0x1dd   : > { %751 = vst.msk [vmem:[%s1196_s8 + $0x30] sm:$0xf] %vm738_vm2, %v884_v62  ;;  %v672_v1 = vmax.f32 %v650_v63, 0.0 }
 0x1de   : > { %v887_v2 = vpack.c.bf16 %v673_v0, %v673_v0 }
 0x1df   : > { %v886_v4 = vpack.c.bf16 %v672_v1, %v672_v1 }
 0x1e0   : > { %754 = vst.msk [vmem:[%s1196_s8 + $0x3c] sm:$0xf] %vm738_vm2, %v887_v2 }
 0x1e1   : > { %753 = vst.msk [vmem:[%s1196_s8 + $0x38] sm:$0xf] %vm738_vm2, %v886_v4 }
 0x1e2 PF: > { %s15_s18 = sadd.s32 1, %s1050_s18  }
 0x1e3   : > { %p12_p4 = scmp.ge.s32.totalorder %s15_s18, 4  }
 0x1e5   :  { %14 = sbr.rel (!%p12_p4) target bundleno = 1 (0x1), region = 70 }

// kernel: h2gcn_forward.7
= control target key start
LH: loop header
LB: loop body
LE: loop exit
PB: predicated region body
PF: predicated region fallthrough
CT: control target
= control target key end

     0   :  { %s1542_s15 = smov 0   ;;  %s1544_s16 = smov 0   ;;  %s1828_s0 = inlined_call_operand.vmem [shape: bf16[2,256,256], index: 0, kind: input, shape index: {}]   ;;  %s1829_s1 = inlined_call_operand.vmem [shape: bf16[256,128], index: 1, kind: input, shape index: {}]   ;;  %s1830_s2 = inlined_call_operand.vmem [shape: f32[1,256], index: 2, kind: input, shape index: {}]   ;;  %s1831_s3 = inlined_call_operand.vmem [shape: f32[1,256], index: 3, kind: input, shape index: {}]   ;;  %s1832_s4 = inlined_call_operand.vmem [shape: bf16[256,256], index: 4, kind: output, shape index: {}]  }
   0x1   :  { %s1546_s17 = smov 0   ;;  %s1548_s18 = smov 0  }
   0x2   :  { %s1550_s19 = smov 0   ;;  %s1552_s20 = smov 0  }
   0x3   :  { %s1554_s21 = smov 0  }
   0x4 LB: > { %s23_s22 = sadd.s32 1, %s1506_s19  ;;  %s26_s23 = sadd.s32 1, %s1510_s20  ;;  %s1514_s21 = sphi %s1554_s21, %s14_s21   ;;  %s1510_s20 = sphi %s1552_s20, %s1838_s20   ;;  %s1506_s19 = sphi %s1550_s19, %s1837_s19   ;;  %s1502_s18 = sphi %s1548_s18, %s1836_s18   ;;  %s1498_s17 = sphi %s1546_s17, %s1835_s17   ;;  %s1494_s16 = sphi %s1544_s16, %s1834_s16   ;;  %s1490_s15 = sphi %s1542_s15, %s1833_s15  }
   0x5   : > { %p24_p0 = scmp.ge.s32.totalorder %s23_s22, 2  ;;  %p42_p1 = scmp.ne.s32.totalorder %s1494_s16, %s1490_s15 }
   0x6   : > { %p43_p2 = scmp.eq.s32.totalorder %s1514_s21, 0  ;;  %s35_s27 = sadd.s32 1, %s1494_s16 }
   0x7   : > { %s1840_s22 = smov (%p24_p0, %s23_s22), 0  ;;  %s1842_s23 = smov (!%p24_p0, %s26_s23), %s1510_s20 }
   0x8   : > { %p44_p3 = por %p43_p2, %p42_p1  ;;  %p28_p4 = scmp.ge.s32.totalorder %s1842_s23, 2 }
   0x9   : > { %s31_s24 = ssub.s32 %s1506_s19, %s1840_s22  ;;  %p1219_p6 = scmp.ge.s32.totalorder %s1514_s21, 4 }
   0xa   : > { %s1844_s23 = smov (%p28_p4, %s1842_s23), 0 }
   0xb   : > { %s30_s25 = ssub.s32 %s1510_s20, %s1844_s23  ;;  %168 = sbr.rel (%p1219_p6) target bundleno = 45 (0x2d), region = 24 }
   0xc   : > { %s32_s26 = sor.u32 %s31_s24, %s30_s25 }
   0xd   : > { %p33_p5 = scmp.eq.s32.totalorder %s32_s26, 0 }
   0xf   : > { %s1593_s28 = scalar_select %p33_p5, %s1494_s16, %s35_s27  }
  0x12   : > { %171 = sbr.rel (!%p44_p3) target bundleno = 45 (0x2d), region = 28  ;;  %s173_s29 = sand.u32 (%p44_p3), 1, %s1494_s16  }
  0x13   : > { %s1221_s30 = sshll.u32 (%p44_p3), %s1510_s20, 6  ;;  %s1220_s5 = sshll.u32 (%p44_p3), %s173_s29, 7 }
  0x14   : > { %s177_s6 = sadd.s32 (%p44_p3), %s1506_s19, %s1221_s30  ;;  %s1607_s11 = scalar_lea.vmem (%p44_p3), [#allocation3], %s1220_s5 }
  0x15   : > { %s1222_s7 = sshll.u32 (%p44_p3), %s177_s6, 2 }
  0x16   : > { %s1602_s10 = scalar_lea.vmem (%p44_p3), %s1828_s0, %s1222_s7 }
  0x17   : > { %v195_v0 = vld [vmem:[%s1602_s10] sm:$0xf] (%p44_p3)  ;;  %v197_v1 = vld [vmem:[%s1602_s10 + $0x8] sm:$0xf] (%p44_p3)  ;;  %v199_v2 = vld [vmem:[%s1602_s10 + $0x10] sm:$0xf] (%p44_p3) }
  0x18   : > { %196 = vst [vmem:[%s1607_s11] sm:$0xf] (%p44_p3), %v195_v0  ;;  %198 = vst [vmem:[%s1607_s11 + $0x4] sm:$0xf] (%p44_p3), %v197_v1  ;;  %v201_v3 = vld [vmem:[%s1602_s10 + $0x18] sm:$0xf] (%p44_p3) }
  0x19   : > { %200 = vst [vmem:[%s1607_s11 + $0x8] sm:$0xf] %v199_v2  ;;  %v203_v4 = vld [vmem:[%s1602_s10 + $0x20] sm:$0xf]  ;;  %v205_v5 = vld [vmem:[%s1602_s10 + $0x28] sm:$0xf] }
  0x1a   : > { %202 = vst [vmem:[%s1607_s11 + $0xc] sm:$0xf] %v201_v3  ;;  %204 = vst [vmem:[%s1607_s11 + $0x10] sm:$0xf] %v203_v4  ;;  %v207_v6 = vld [vmem:[%s1602_s10 + $0x30] sm:$0xf] }
  0x1b   : > { %206 = vst [vmem:[%s1607_s11 + $0x14] sm:$0xf] %v205_v5  ;;  %v209_v7 = vld [vmem:[%s1602_s10 + $0x38] sm:$0xf]  ;;  %v211_v8 = vld [vmem:[%s1602_s10 + $0x40] sm:$0xf] }
  0x1c   : > { %208 = vst [vmem:[%s1607_s11 + $0x18] sm:$0xf] %v207_v6  ;;  %210 = vst [vmem:[%s1607_s11 + $0x1c] sm:$0xf] %v209_v7  ;;  %v213_v9 = vld [vmem:[%s1602_s10 + $0x48] sm:$0xf] }
  0x1d   : > { %212 = vst [vmem:[%s1607_s11 + $0x20] sm:$0xf] %v211_v8  ;;  %v215_v10 = vld [vmem:[%s1602_s10 + $0x50] sm:$0xf]  ;;  %v217_v11 = vld [vmem:[%s1602_s10 + $0x58] sm:$0xf] }
  0x1e   : > { %214 = vst [vmem:[%s1607_s11 + $0x24] sm:$0xf] %v213_v9  ;;  %216 = vst [vmem:[%s1607_s11 + $0x28] sm:$0xf] %v215_v10  ;;  %v219_v12 = vld [vmem:[%s1602_s10 + $0x60] sm:$0xf] }
  0x1f   : > { %218 = vst [vmem:[%s1607_s11 + $0x2c] sm:$0xf] %v217_v11  ;;  %v221_v13 = vld [vmem:[%s1602_s10 + $0x68] sm:$0xf]  ;;  %v223_v14 = vld [vmem:[%s1602_s10 + $0x70] sm:$0xf] }
  0x20   : > { %220 = vst [vmem:[%s1607_s11 + $0x30] sm:$0xf] %v219_v12  ;;  %222 = vst [vmem:[%s1607_s11 + $0x34] sm:$0xf] %v221_v13  ;;  %v225_v15 = vld [vmem:[%s1602_s10 + $0x78] sm:$0xf] }
  0x21   : > { %224 = vst [vmem:[%s1607_s11 + $0x38] sm:$0xf] %v223_v14  ;;  %v227_v16 = vld [vmem:[%s1602_s10 + $0x80] sm:$0xf]  ;;  %v229_v17 = vld [vmem:[%s1602_s10 + $0x88] sm:$0xf] }
  0x22   : > { %226 = vst [vmem:[%s1607_s11 + $0x3c] sm:$0xf] %v225_v15  ;;  %228 = vst [vmem:[%s1607_s11 + $0x40] sm:$0xf] %v227_v16  ;;  %v231_v18 = vld [vmem:[%s1602_s10 + $0x90] sm:$0xf] }
  0x23   : > { %230 = vst [vmem:[%s1607_s11 + $0x44] sm:$0xf] %v229_v17  ;;  %v233_v19 = vld [vmem:[%s1602_s10 + $0x98] sm:$0xf]  ;;  %v235_v20 = vld [vmem:[%s1602_s10 + $0xa0] sm:$0xf] }
  0x24   : > { %232 = vst [vmem:[%s1607_s11 + $0x48] sm:$0xf] %v231_v18  ;;  %234 = vst [vmem:[%s1607_s11 + $0x4c] sm:$0xf] %v233_v19  ;;  %v237_v21 = vld [vmem:[%s1602_s10 + $0xa8] sm:$0xf] }
  0x25   : > { %236 = vst [vmem:[%s1607_s11 + $0x50] sm:$0xf] %v235_v20  ;;  %v239_v22 = vld [vmem:[%s1602_s10 + $0xb0] sm:$0xf]  ;;  %v241_v23 = vld [vmem:[%s1602_s10 + $0xb8] sm:$0xf] }
  0x26   : > { %238 = vst [vmem:[%s1607_s11 + $0x54] sm:$0xf] %v237_v21  ;;  %240 = vst [vmem:[%s1607_s11 + $0x58] sm:$0xf] %v239_v22  ;;  %v243_v24 = vld [vmem:[%s1602_s10 + $0xc0] sm:$0xf] }
  0x27   : > { %242 = vst [vmem:[%s1607_s11 + $0x5c] sm:$0xf] %v241_v23  ;;  %v245_v25 = vld [vmem:[%s1602_s10 + $0xc8] sm:$0xf]  ;;  %v247_v26 = vld [vmem:[%s1602_s10 + $0xd0] sm:$0xf] }
  0x28   : > { %244 = vst [vmem:[%s1607_s11 + $0x60] sm:$0xf] %v243_v24  ;;  %246 = vst [vmem:[%s1607_s11 + $0x64] sm:$0xf] %v245_v25  ;;  %v249_v27 = vld [vmem:[%s1602_s10 + $0xd8] sm:$0xf] }
  0x29   : > { %248 = vst [vmem:[%s1607_s11 + $0x68] sm:$0xf] %v247_v26  ;;  %v251_v28 = vld [vmem:[%s1602_s10 + $0xe0] sm:$0xf]  ;;  %v253_v29 = vld [vmem:[%s1602_s10 + $0xe8] sm:$0xf] }
  0x2a   : > { %250 = vst [vmem:[%s1607_s11 + $0x6c] sm:$0xf] %v249_v27  ;;  %252 = vst [vmem:[%s1607_s11 + $0x70] sm:$0xf] %v251_v28  ;;  %v255_v30 = vld [vmem:[%s1602_s10 + $0xf0] sm:$0xf] }
  0x2b   : > { %254 = vst [vmem:[%s1607_s11 + $0x74] sm:$0xf] %v253_v29  ;;  %v257_v31 = vld [vmem:[%s1602_s10 + $0xf8] sm:$0xf]  ;;  %256 = vst [vmem:[%s1607_s11 + $0x78] sm:$0xf] %v255_v30 }
  0x2c   : > { %258 = vst [vmem:[%s1607_s11 + $0x7c] sm:$0xf] %v257_v31 }
  0x2d PF: > { %p1223_p7 = scmp.ge.s32.totalorder %s1514_s21, 1  ;;  %p353_p8 = scmp.lt.s32.totalorder %s1514_s21, 5 }
  0x2f   : > { %p354_p9 = pnand %p1223_p7, %p353_p8 }
  0x30   : > { %s360_s12 = sand.u32 (!%p354_p9), 1, %s1490_s15   ;;  %s1225_s13 = sshll.u32 (!%p354_p9), %s1498_s17, 4 }
  0x31   : > { %357 = sbr.rel (%p354_p9) target bundleno = 367 (0x16f), region = 73  ;;  %s1224_s14 = sshll.u32 (!%p354_p9), %s360_s12, 7 }
  0x32   : > { %p392_p10 = scmp.lt.s32.totalorder (!%p354_p9), %s1225_s13, 31  ;;  %s1227_s24 = sshll.u32 (!%p354_p9), %s1502_s18, 4 }
  0x33   : > { %p398_p11 = scmp.lt.s32.totalorder (!%p354_p9), %s1227_s24, 31  ;;  %s1685_s15 = scalar_lea.vmem (!%p354_p9), [#allocation3], %s1224_s14 }
  0x34   : > { %p1230_p12 = scmp.ne.s32.totalorder (!%p354_p9), %s1498_s17, 0 }
  0x38   : > { %s1846_s13 = smov (!%p392_p10, %s1225_s13), 31  ;;  %s1848_s24 = smov (!%p398_p11, %s1227_s24), 31 }
  0x39   : > { %s1226_s25 = sshll.u32 %s1846_s13, 2  ;;  %s1274_s30 = sshll.u32 %s1848_s24, 3  ;;  %v1516_v32 = vmov (!%p1230_p12), 0.0  }
  0x3a   : > { %s1678_s29 = scalar_lea.vmem %s1829_s1, %s1226_s25  ;;  %s1683_s7 = scalar_lea.vmem %s1832_s4, %s1274_s30  ;;  %409 = vst [vmem:[#allocation2] sm:$0xff] (!%p1230_p12), %v1516_v32  ;;  %410 = vst [vmem:[#allocation2 + $0x8] sm:$0xff] (!%p1230_p12), %v1516_v32 }
  0x3b   : > { %408 = sbr.rel (%p1230_p12) target bundleno = 74 (0x4a), region = 81  ;;  %411 = vst [vmem:[#allocation2 + $0x10] sm:$0xff] (!%p1230_p12), %v1516_v32  ;;  %412 = vst [vmem:[#allocation2 + $0x18] sm:$0xff] (!%p1230_p12), %v1516_v32 }
  0x3c   : > { %413 = vst [vmem:[#allocation2 + $0x20] sm:$0xff] (!%p1230_p12), %v1516_v32  ;;  %414 = vst [vmem:[#allocation2 + $0x28] sm:$0xff] (!%p1230_p12), %v1516_v32 }
  0x3d   : > { %415 = vst [vmem:[#allocation2 + $0x30] sm:$0xff] (!%p1230_p12), %v1516_v32  ;;  %416 = vst [vmem:[#allocation2 + $0x38] sm:$0xff] (!%p1230_p12), %v1516_v32 }
  0x3e   : > { %417 = vst [vmem:[#allocation2 + $0x40] sm:$0xff] (!%p1230_p12), %v1516_v32  ;;  %418 = vst [vmem:[#allocation2 + $0x48] sm:$0xff] (!%p1230_p12), %v1516_v32 }
  0x3f   : > { %419 = vst [vmem:[#allocation2 + $0x50] sm:$0xff] (!%p1230_p12), %v1516_v32  ;;  %420 = vst [vmem:[#allocation2 + $0x58] sm:$0xff] (!%p1230_p12), %v1516_v32 }
  0x40   : > { %421 = vst [vmem:[#allocation2 + $0x60] sm:$0xff] (!%p1230_p12), %v1516_v32  ;;  %422 = vst [vmem:[#allocation2 + $0x68] sm:$0xff] (!%p1230_p12), %v1516_v32 }
  0x41   : > { %423 = vst [vmem:[#allocation2 + $0x70] sm:$0xff] (!%p1230_p12), %v1516_v32  ;;  %424 = vst [vmem:[#allocation2 + $0x78] sm:$0xff] (!%p1230_p12), %v1516_v32 }
  0x42   : > { %425 = vst [vmem:[#allocation2 + $0x80] sm:$0xff] %v1516_v32  ;;  %426 = vst [vmem:[#allocation2 + $0x88] sm:$0xff] %v1516_v32 }
  0x43   : > { %427 = vst [vmem:[#allocation2 + $0x90] sm:$0xff] %v1516_v32  ;;  %428 = vst [vmem:[#allocation2 + $0x98] sm:$0xff] %v1516_v32 }
  0x44   : > { %429 = vst [vmem:[#allocation2 + $0xa0] sm:$0xff] %v1516_v32  ;;  %430 = vst [vmem:[#allocation2 + $0xa8] sm:$0xff] %v1516_v32 }
  0x45   : > { %431 = vst [vmem:[#allocation2 + $0xb0] sm:$0xff] %v1516_v32  ;;  %432 = vst [vmem:[#allocation2 + $0xb8] sm:$0xff] %v1516_v32 }
  0x46   : > { %433 = vst [vmem:[#allocation2 + $0xc0] sm:$0xff] %v1516_v32  ;;  %434 = vst [vmem:[#allocation2 + $0xc8] sm:$0xff] %v1516_v32 }
  0x47   : > { %435 = vst [vmem:[#allocation2 + $0xd0] sm:$0xff] %v1516_v32  ;;  %436 = vst [vmem:[#allocation2 + $0xd8] sm:$0xff] %v1516_v32 }
  0x48   : > { %437 = vst [vmem:[#allocation2 + $0xe0] sm:$0xff] %v1516_v32  ;;  %438 = vst [vmem:[#allocation2 + $0xe8] sm:$0xff] %v1516_v32 }
  0x49   : > { %439 = vst [vmem:[#allocation2 + $0xf0] sm:$0xff] %v1516_v32  ;;  %440 = vst [vmem:[#allocation2 + $0xf8] sm:$0xff] %v1516_v32 }
  0x4a PF: > { %v1436_v33 = vld [vmem:[%s1678_s29] sm:$0xff]   ;;  %v1437_v34 = vld [vmem:[%s1678_s29 + $0x8] sm:$0xff]   ;;  %v1438_v35 = vld [vmem:[%s1678_s29 + $0x10] sm:$0xff]   ;;  %p1255_p13 = scmp.ne.s32.totalorder %s1498_s17, 1 }
  0x4b   : > { %1315 = vmatprep.subr.bf16.mxu0 %v1436_v33  ;;  %1363 = vmatprep.subr.bf16.mxu1 %v1436_v33  ;;  %v1439_v36 = vld [vmem:[%s1678_s29 + $0x18] sm:$0xff]   ;;  %v1444_v37 = vld [vmem:[%s1685_s15] sm:$0xff]   ;;  %v1441_v40 = vld [vmem:[%s1678_s29 + $0x28] sm:$0xff]  }
  0x4c   : > { %1316 = vmatpush3.bf16.msra.mxu0 %v1436_v33  ;;  %1371 = vmatpush3.bf16.msra.mxu1 %v1436_v33  ;;  %v1445_v38 = vld [vmem:[%s1685_s15 + $0x40] sm:$0xff]   ;;  %v1442_v41 = vld [vmem:[%s1678_s29 + $0x30] sm:$0xff]   ;;  %v1443_v42 = vld [vmem:[%s1678_s29 + $0x38] sm:$0xff]  }
  0x4d   : > { %1317 = vmatprep.subr.bf16.mxu0 %v1437_v34  ;;  %1364 = vmatprep.subr.bf16.mxu1 %v1437_v34  ;;  %v1440_v39 = vld [vmem:[%s1678_s29 + $0x20] sm:$0xff]   ;;  %v1446_v43 = vld [vmem:[%s1685_s15 + $0x8] sm:$0xff]   ;;  %v1448_v45 = vld [vmem:[%s1685_s15 + $0x10] sm:$0xff]  }
  0x4e   : > { %1331 = vmatprep.mubr.bf16.mxu0 %v1444_v37  ;;  %1347 = vmatprep.mubr.bf16.mxu1 %v1445_v38  ;;  %v1447_v44 = vld [vmem:[%s1685_s15 + $0x48] sm:$0xff]   ;;  %v1449_v46 = vld [vmem:[%s1685_s15 + $0x50] sm:$0xff]   ;;  %v1450_v47 = vld [vmem:[%s1685_s15 + $0x18] sm:$0xff]  }
  0x4f   : > { %v1451_v48 = vld [vmem:[%s1685_s15 + $0x58] sm:$0xff]   ;;  %v1452_v49 = vld [vmem:[%s1685_s15 + $0x20] sm:$0xff]   ;;  %v1454_v51 = vld [vmem:[%s1685_s15 + $0x28] sm:$0xff]  }
  0x50   : > { %1318 = vmatpush3.bf16.msra.mxu0 %v1437_v34  ;;  %1372 = vmatpush3.bf16.msra.mxu1 %v1437_v34  ;;  %v1453_v50 = vld [vmem:[%s1685_s15 + $0x60] sm:$0xff]   ;;  %v1455_v52 = vld [vmem:[%s1685_s15 + $0x68] sm:$0xff]   ;;  %v1456_v53 = vld [vmem:[%s1685_s15 + $0x30] sm:$0xff]  }
  0x51   : > { %1319 = vmatprep.subr.bf16.mxu0 %v1438_v35  ;;  %1365 = vmatprep.subr.bf16.mxu1 %v1438_v35  ;;  %v1457_v54 = vld [vmem:[%s1685_s15 + $0x70] sm:$0xff]   ;;  %v1458_v55 = vld [vmem:[%s1685_s15 + $0x38] sm:$0xff]   ;;  %v441_v59 = vld [vmem:[#allocation2] sm:$0xff] }
  0x52   : > { %v1459_v56 = vld [vmem:[%s1685_s15 + $0x78] sm:$0xff]   ;;  %v443_v57 = vld [vmem:[#allocation2 + $0x10] sm:$0xff]  ;;  %v457_v60 = vld [vmem:[#allocation2 + $0x80] sm:$0xff] }
  0x53   : > { %v459_v58 = vld [vmem:[#allocation2 + $0x90] sm:$0xff]  ;;  %v444_v63 = vld [vmem:[#allocation2 + $0x18] sm:$0xff]  ;;  %v442_v5 = vld [vmem:[#allocation2 + $0x8] sm:$0xff] }
  0x54   : > { %1320 = vmatpush3.bf16.msra.mxu0 %v1438_v35  ;;  %1373 = vmatpush3.bf16.msra.mxu1 %v1438_v35  ;;  %v460_v0 = vld [vmem:[#allocation2 + $0x98] sm:$0xff]  ;;  %v458_v6 = vld [vmem:[#allocation2 + $0x88] sm:$0xff]  ;;  %v447_v17 = vld [vmem:[#allocation2 + $0x30] sm:$0xff] }
  0x55   : > { %1321 = vmatprep.subr.bf16.mxu0 %v1439_v36  ;;  %1366 = vmatprep.subr.bf16.mxu1 %v1439_v36  ;;  %v463_v18 = vld [vmem:[#allocation2 + $0xb0] sm:$0xff]  ;;  %v445_v19 = vld [vmem:[#allocation2 + $0x20] sm:$0xff]  ;;  %v448_v23 = vld [vmem:[#allocation2 + $0x38] sm:$0xff] }
  0x56   : > { %v461_v20 = vld [vmem:[#allocation2 + $0xa0] sm:$0xff]  ;;  %v464_v24 = vld [vmem:[#allocation2 + $0xb8] sm:$0xff]  ;;  %v446_v29 = vld [vmem:[#allocation2 + $0x28] sm:$0xff] }
  0x57   : > { %v462_v30 = vld [vmem:[#allocation2 + $0xa8] sm:$0xff] }
  0x58   : > { %1322 = vmatpush3.bf16.msra.mxu0 %v1439_v36  ;;  %1374 = vmatpush3.bf16.msra.mxu1 %v1439_v36 }
  0x59   : > { %1323 = vmatprep.subr.bf16.mxu0 %v1440_v39  ;;  %1367 = vmatprep.subr.bf16.mxu1 %v1440_v39 }
  0x5c   : > { %1324 = vmatpush3.bf16.msra.mxu0 %v1440_v39  ;;  %1375 = vmatpush3.bf16.msra.mxu1 %v1440_v39 }
  0x5d   : > { %1325 = vmatprep.subr.bf16.mxu0 %v1441_v40  ;;  %1368 = vmatprep.subr.bf16.mxu1 %v1441_v40 }
  0x60   : > { %1326 = vmatpush3.bf16.msra.mxu0 %v1441_v40  ;;  %1376 = vmatpush3.bf16.msra.mxu1 %v1441_v40 }
  0x61   : > { %1327 = vmatprep.subr.bf16.mxu0 %v1442_v41  ;;  %1369 = vmatprep.subr.bf16.mxu1 %v1442_v41 }
  0x64   : > { %1328 = vmatpush3.bf16.msra.mxu0 %v1442_v41  ;;  %1377 = vmatpush3.bf16.msra.mxu1 %v1442_v41  ;;  %v451_v41 = vld [vmem:[#allocation2 + $0x50] sm:$0xff] }
  0x65   : > { %1329 = vmatprep.subr.bf16.mxu0 %v1443_v42  ;;  %1370 = vmatprep.subr.bf16.mxu1 %v1443_v42 }
  0x68   : > { %1330 = vmatpush3.bf16.msra.mxu0 %v1443_v42  ;;  %1378 = vmatpush3.bf16.msra.mxu1 %v1443_v42  ;;  %v467_v42 = vld [vmem:[#allocation2 + $0xd0] sm:$0xff] }
  0x6b   : > { %1332 = vmatmul.mubr.bf16.vlgmr.msra.gmra.mrb[0].mxu0 %v1446_v43  ;;  %1348 = vmatmul.mubr.bf16.vlgmr.msra.gmra.mrb[0].mxu1 %v1447_v44  ;;  %v449_v43 = vld [vmem:[#allocation2 + $0x40] sm:$0xff] }
  0x6c   : > { %1335 = vmatprep.mubr.bf16.mxu0 %v1448_v45  ;;  %1351 = vmatprep.mubr.bf16.mxu1 %v1449_v46  ;;  %v465_v44 = vld [vmem:[#allocation2 + $0xc0] sm:$0xff] }
  0x73   : > { %1336 = vmatmul.mubr.bf16.gmra.mrb[4].mxu0 %v1450_v47  ;;  %1352 = vmatmul.mubr.bf16.gmra.mrb[4].mxu1 %v1451_v48  ;;  %v452_v47 = vld [vmem:[#allocation2 + $0x58] sm:$0xff] }
  0x74   : > { %1339 = vmatprep.mubr.bf16.mxu0 %v1452_v49  ;;  %1355 = vmatprep.mubr.bf16.mxu1 %v1453_v50  ;;  %v468_v48 = vld [vmem:[#allocation2 + $0xd8] sm:$0xff] }
  0x7b   : > { %1340 = vmatmul.mubr.bf16.gmra.mrb[8].mxu0 %v1454_v51  ;;  %1356 = vmatmul.mubr.bf16.gmra.mrb[8].mxu1 %v1455_v52 }
  0x7c   : > { %1343 = vmatprep.mubr.bf16.mxu0 %v1456_v53  ;;  %1359 = vmatprep.mubr.bf16.mxu1 %v1457_v54  ;;  %v450_v53 = vld [vmem:[#allocation2 + $0x48] sm:$0xff] }
  0x7d   : > { %v466_v54 = vld [vmem:[#allocation2 + $0xc8] sm:$0xff] }
  0x83   : > { %1344 = vmatmul.mubr.bf16.gmra.mrb[12].mxu0 %v1458_v55  ;;  %1360 = vmatmul.mubr.bf16.gmra.mrb[12].mxu1 %v1459_v56 }
 0x13e   : > { %v1333_v61 = vpop.f32.mrb[0].mxu0  ;;  %v1349_v62 = vpop.f32.mrb[0].mxu1 }
 0x13f   : > { %v828_v1 = vadd.f32 %v1333_v61, %v443_v57  ;;  %v844_v2 = vadd.f32 %v1349_v62, %v459_v58  ;;  %v699_v3 = vpop.f32.mrb[1].mxu0  ;;  %v763_v4 = vpop.f32.mrb[1].mxu1 }
 0x140   : > { %v826_v7 = vadd.f32 %v699_v3, %v441_v59  ;;  %v842_v8 = vadd.f32 %v763_v4, %v457_v60  ;;  %v1334_v9 = vpop.f32.mrb[2].mxu0  ;;  %v1350_v10 = vpop.f32.mrb[2].mxu1  ;;  %v453_v3 = vld [vmem:[#allocation2 + $0x60] sm:$0xff] }
 0x141   : > { %860 = vst [vmem:[#allocation2 + $0x10] sm:$0xff] %v828_v1  ;;  %876 = vst [vmem:[#allocation2 + $0x90] sm:$0xff] %v844_v2  ;;  %v829_v11 = vadd.f32 %v1334_v9, %v444_v63  ;;  %v845_v12 = vadd.f32 %v1350_v10, %v460_v0  ;;  %v702_v13 = vpop.f32.mrb[3].mxu0  ;;  %v766_v14 = vpop.f32.mrb[3].mxu1  ;;  %v455_v1 = vld [vmem:[#allocation2 + $0x70] sm:$0xff]  ;;  %v469_v4 = vld [vmem:[#allocation2 + $0xe0] sm:$0xff] }
 0x142   : > { %858 = vst [vmem:[#allocation2] sm:$0xff] %v826_v7  ;;  %874 = vst [vmem:[#allocation2 + $0x80] sm:$0xff] %v842_v8  ;;  %v827_v15 = vadd.f32 %v702_v13, %v442_v5  ;;  %v843_v16 = vadd.f32 %v766_v14, %v458_v6  ;;  %v471_v2 = vld [vmem:[#allocation2 + $0xf0] sm:$0xff]  ;;  %v456_v7 = vld [vmem:[#allocation2 + $0x78] sm:$0xff] }
 0x143   : > { %861 = vst [vmem:[#allocation2 + $0x18] sm:$0xff] %v829_v11  ;;  %877 = vst [vmem:[#allocation2 + $0x98] sm:$0xff] %v845_v12  ;;  %v472_v8 = vld [vmem:[#allocation2 + $0xf8] sm:$0xff]  ;;  %v454_v13 = vld [vmem:[#allocation2 + $0x68] sm:$0xff] }
 0x144   : > { %859 = vst [vmem:[#allocation2 + $0x8] sm:$0xff] %v827_v15  ;;  %875 = vst [vmem:[#allocation2 + $0x88] sm:$0xff] %v843_v16  ;;  %v470_v14 = vld [vmem:[#allocation2 + $0xe8] sm:$0xff] }
 0x146   : > { %v1337_v21 = vpop.f32.mrb[4].mxu0  ;;  %v1353_v22 = vpop.f32.mrb[4].mxu1 }
 0x147   : > { %v832_v25 = vadd.f32 %v1337_v21, %v447_v17  ;;  %v848_v26 = vadd.f32 %v1353_v22, %v463_v18  ;;  %v715_v27 = vpop.f32.mrb[5].mxu0  ;;  %v779_v28 = vpop.f32.mrb[5].mxu1 }
 0x148   : > { %v830_v31 = vadd.f32 %v715_v27, %v445_v19  ;;  %v846_v32 = vadd.f32 %v779_v28, %v461_v20  ;;  %v1338_v33 = vpop.f32.mrb[6].mxu0  ;;  %v1354_v34 = vpop.f32.mrb[6].mxu1  ;;  %v926_v27 = vld [vmem:[%s1830_s2] sm:$0x3] (!%p1255_p13) }
 0x149   : > { %864 = vst [vmem:[#allocation2 + $0x30] sm:$0xff] %v832_v25  ;;  %880 = vst [vmem:[#allocation2 + $0xb0] sm:$0xff] %v848_v26  ;;  %v833_v35 = vadd.f32 %v1338_v33, %v448_v23  ;;  %v849_v36 = vadd.f32 %v1354_v34, %v464_v24  ;;  %v718_v37 = vpop.f32.mrb[7].mxu0  ;;  %v782_v38 = vpop.f32.mrb[7].mxu1  ;;  %v928_v25 = vlaneseq (!%p1255_p13)  ;;  %v970_v28 = vld [vmem:[%s1831_s3] sm:$0x3] (!%p1255_p13) }
 0x14a   : > { %862 = vst [vmem:[#allocation2 + $0x20] sm:$0xff] %v830_v31  ;;  %878 = vst [vmem:[#allocation2 + $0xa0] sm:$0xff] %v846_v32  ;;  %v831_v39 = vadd.f32 %v718_v37, %v446_v29  ;;  %v847_v40 = vadd.f32 %v782_v38, %v462_v30  ;;  %v894_v29 = vld [vmem:[#allocation2] sm:$0xff] (!%p1255_p13) }
 0x14b   : > { %865 = vst [vmem:[#allocation2 + $0x38] sm:$0xff] %v833_v35  ;;  %881 = vst [vmem:[#allocation2 + $0xb8] sm:$0xff] %v849_v36  ;;  %v929_v26 = vshrl.u32 (!%p1255_p13), %v928_v25, 7  ;;  %v910_v30 = vld [vmem:[#allocation2 + $0x80] sm:$0xff] (!%p1255_p13)  ;;  %v895_v33 = vld [vmem:[#allocation2 + $0x8] sm:$0xff] (!%p1255_p13) }
 0x14c   : > { %863 = vst [vmem:[#allocation2 + $0x28] sm:$0xff] %v831_v39  ;;  %879 = vst [vmem:[#allocation2 + $0xa8] sm:$0xff] %v847_v40  ;;  %v911_v34 = vld [vmem:[#allocation2 + $0x88] sm:$0xff] (!%p1255_p13)  ;;  %v896_v35 = vld [vmem:[#allocation2 + $0x10] sm:$0xff] (!%p1255_p13) }
 0x14d   : > { %v930_v31 = vsub.s32 (!%p1255_p13), 0, %v929_v26  ;;  %v934_v32 = vsub.s32 (!%p1255_p13), 1, %v929_v26  ;;  %v912_v40 = vld [vmem:[#allocation2 + $0x90] sm:$0xff] (!%p1255_p13) }
 0x14e   : > { %v1341_v45 = vpop.f32.mrb[8].mxu0  ;;  %v1357_v46 = vpop.f32.mrb[8].mxu1 }
 0x14f   : > { %v836_v49 = vadd.f32 %v1341_v45, %v451_v41  ;;  %v852_v50 = vadd.f32 %v1357_v46, %v467_v42  ;;  %v731_v51 = vpop.f32.mrb[9].mxu0  ;;  %v795_v52 = vpop.f32.mrb[9].mxu1  ;;  %v1719_v36 = vrot.slane (!%p1255_p13), %v926_v27, %v930_v31  ;;  %v1721_v37 = vrot.slane (!%p1255_p13), %v926_v27, %v934_v32  ;;  %v897_v41 = vld [vmem:[#allocation2 + $0x18] sm:$0xff] (!%p1255_p13) }
 0x150   : > { %v834_v55 = vadd.f32 %v731_v51, %v449_v43  ;;  %v850_v56 = vadd.f32 %v795_v52, %v465_v44  ;;  %v1342_v57 = vpop.f32.mrb[10].mxu0  ;;  %v1358_v58 = vpop.f32.mrb[10].mxu1  ;;  %v1723_v38 = vrot.slane (!%p1255_p13), %v970_v28, %v930_v31  ;;  %v1725_v39 = vrot.slane (!%p1255_p13), %v970_v28, %v934_v32  ;;  %v913_v42 = vld [vmem:[#allocation2 + $0x98] sm:$0xff] (!%p1255_p13) }
 0x151   : > { %868 = vst [vmem:[#allocation2 + $0x50] sm:$0xff] %v836_v49  ;;  %884 = vst [vmem:[#allocation2 + $0xd0] sm:$0xff] %v852_v50  ;;  %v837_v59 = vadd.f32 %v1342_v57, %v452_v47  ;;  %v853_v60 = vadd.f32 %v1358_v58, %v468_v48  ;;  %v734_v61 = vpop.f32.mrb[11].mxu0  ;;  %v798_v62 = vpop.f32.mrb[11].mxu1  ;;  %v938_v43 = vmul.f32 (!%p1255_p13), %v1719_v36, %v894_v29  ;;  %v898_v51 = vld [vmem:[#allocation2 + $0x20] sm:$0xff] (!%p1255_p13) }
 0x152   : > { %866 = vst [vmem:[#allocation2 + $0x40] sm:$0xff] %v834_v55  ;;  %882 = vst [vmem:[#allocation2 + $0xc0] sm:$0xff] %v850_v56  ;;  %v835_v63 = vadd.f32 %v734_v61, %v450_v53  ;;  %v851_v0 = vadd.f32 %v798_v62, %v466_v54  ;;  %v939_v44 = vmul.f32 (!%p1255_p13), %v1721_v37, %v910_v30  ;;  %v914_v52 = vld [vmem:[#allocation2 + $0xa0] sm:$0xff] (!%p1255_p13) }
 0x153   : > { %869 = vst [vmem:[#allocation2 + $0x58] sm:$0xff] %v837_v59  ;;  %885 = vst [vmem:[#allocation2 + $0xd8] sm:$0xff] %v853_v60  ;;  %v940_v45 = vmul.f32 (!%p1255_p13), %v1719_v36, %v895_v33  ;;  %v941_v46 = vmul.f32 (!%p1255_p13), %v1721_v37, %v911_v34  ;;  %v942_v47 = vmul.f32 (!%p1255_p13), %v1719_v36, %v896_v35  ;;  %v899_v57 = vld [vmem:[#allocation2 + $0x28] sm:$0xff] (!%p1255_p13) }
 0x154   : > { %867 = vst [vmem:[#allocation2 + $0x48] sm:$0xff] %v835_v63  ;;  %883 = vst [vmem:[#allocation2 + $0xc8] sm:$0xff] %v851_v0  ;;  %v943_v48 = vmul.f32 (!%p1255_p13), %v1721_v37, %v912_v40  ;;  %v944_v49 = vmul.f32 (!%p1255_p13), %v1719_v36, %v897_v41  ;;  %v945_v50 = vmul.f32 (!%p1255_p13), %v1721_v37, %v913_v42  ;;  %v915_v58 = vld [vmem:[#allocation2 + $0xa8] sm:$0xff] (!%p1255_p13)  ;;  %v900_v63 = vld [vmem:[#allocation2 + $0x30] sm:$0xff] (!%p1255_p13) }
 0x155   : > { %v982_v53 = vadd.f32 (!%p1255_p13), %v1723_v38, %v938_v43  ;;  %v983_v54 = vadd.f32 (!%p1255_p13), %v1725_v39, %v939_v44  ;;  %v984_v55 = vadd.f32 (!%p1255_p13), %v1723_v38, %v940_v45  ;;  %v985_v56 = vadd.f32 (!%p1255_p13), %v1725_v39, %v941_v46  ;;  %v916_v0 = vld [vmem:[#allocation2 + $0xb0] sm:$0xff] (!%p1255_p13) }
 0x156   : > { %v1345_v5 = vpop.f32.mrb[12].mxu0  ;;  %v1361_v6 = vpop.f32.mrb[12].mxu1  ;;  %893 = sbr.rel (%p1255_p13) target bundleno = 367 (0x16f), region = 85  ;;  %v986_v59 = vadd.f32 (!%p1255_p13), %v1723_v38, %v942_v47  ;;  %v987_v60 = vadd.f32 (!%p1255_p13), %v1725_v39, %v943_v48  ;;  %v988_v61 = vadd.f32 (!%p1255_p13), %v1723_v38, %v944_v49  ;;  %v989_v62 = vadd.f32 (!%p1255_p13), %v1725_v39, %v945_v50 }
 0x157   : > { %v840_v9 = vadd.f32 %v1345_v5, %v455_v1  ;;  %v856_v10 = vadd.f32 %v1361_v6, %v471_v2  ;;  %v747_v11 = vpop.f32.mrb[13].mxu0  ;;  %v811_v12 = vpop.f32.mrb[13].mxu1  ;;  %v1275_v1 = vpack.c.bf16 (!%p1255_p13), %v983_v54, %v982_v53  ;;  %v1276_v2 = vpack.c.bf16 (!%p1255_p13), %v985_v56, %v984_v55  ;;  %v901_v5 = vld [vmem:[#allocation2 + $0x38] sm:$0xff] (!%p1255_p13) }
 0x158   : > { %v838_v15 = vadd.f32 %v747_v11, %v453_v3  ;;  %v854_v16 = vadd.f32 %v811_v12, %v469_v4  ;;  %v1346_v17 = vpop.f32.mrb[14].mxu0  ;;  %v1362_v18 = vpop.f32.mrb[14].mxu1  ;;  %v946_v3 = vmul.f32 (!%p1255_p13), %v1719_v36, %v898_v51  ;;  %v947_v4 = vmul.f32 (!%p1255_p13), %v1721_v37, %v914_v52  ;;  %v917_v6 = vld [vmem:[#allocation2 + $0xb8] sm:$0xff] (!%p1255_p13)  ;;  %v904_v27 = vld [vmem:[#allocation2 + $0x50] sm:$0xff] (!%p1255_p13) }
 0x159   : > { %872 = vst [vmem:[#allocation2 + $0x70] sm:$0xff] %v840_v9  ;;  %888 = vst [vmem:[#allocation2 + $0xf0] sm:$0xff] %v856_v10  ;;  %v841_v19 = vadd.f32 %v1346_v17, %v456_v7  ;;  %v857_v20 = vadd.f32 %v1362_v18, %v472_v8  ;;  %v750_v21 = vpop.f32.mrb[15].mxu0  ;;  %v814_v22 = vpop.f32.mrb[15].mxu1  ;;  %v1277_v7 = vpack.c.bf16 (!%p1255_p13), %v987_v60, %v986_v59  ;;  %v902_v11 = vld [vmem:[#allocation2 + $0x40] sm:$0xff] (!%p1255_p13)  ;;  %v920_v28 = vld [vmem:[#allocation2 + $0xd0] sm:$0xff] (!%p1255_p13) }
 0x15a   : > { %870 = vst [vmem:[#allocation2 + $0x60] sm:$0xff] %v838_v15  ;;  %886 = vst [vmem:[#allocation2 + $0xe0] sm:$0xff] %v854_v16  ;;  %v839_v23 = vadd.f32 %v750_v21, %v454_v13  ;;  %v855_v24 = vadd.f32 %v814_v22, %v470_v14  ;;  %v1278_v8 = vpack.c.bf16 (!%p1255_p13), %v989_v62, %v988_v61  ;;  %v918_v16 = vld [vmem:[#allocation2 + $0xc0] sm:$0xff] (!%p1255_p13)  ;;  %v905_v33 = vld [vmem:[#allocation2 + $0x58] sm:$0xff] (!%p1255_p13) }
 0x15b   : > { %873 = vst [vmem:[#allocation2 + $0x78] sm:$0xff] %v841_v19  ;;  %889 = vst [vmem:[#allocation2 + $0xf8] sm:$0xff] %v857_v20  ;;  %v948_v9 = vmul.f32 (!%p1255_p13), %v1719_v36, %v899_v57  ;;  %v949_v10 = vmul.f32 (!%p1255_p13), %v1721_v37, %v915_v58  ;;  %v990_v12 = vadd.f32 (!%p1255_p13), %v1723_v38, %v946_v3  ;;  %v903_v21 = vld [vmem:[#allocation2 + $0x48] sm:$0xff] (!%p1255_p13)  ;;  %v921_v34 = vld [vmem:[#allocation2 + $0xd8] sm:$0xff] (!%p1255_p13) }
 0x15c   : > { %871 = vst [vmem:[#allocation2 + $0x68] sm:$0xff] %v839_v23  ;;  %887 = vst [vmem:[#allocation2 + $0xe8] sm:$0xff] %v855_v24  ;;  %v991_v13 = vadd.f32 (!%p1255_p13), %v1725_v39, %v947_v4  ;;  %v950_v14 = vmul.f32 (!%p1255_p13), %v1719_v36, %v900_v63  ;;  %v951_v15 = vmul.f32 (!%p1255_p13), %v1721_v37, %v916_v0  ;;  %v919_v22 = vld [vmem:[#allocation2 + $0xc8] sm:$0xff] (!%p1255_p13) }
 0x15d   : > { %1110 = vst [vmem:[%s1683_s7] sm:$0xff] %v1275_v1  ;;  %1111 = vst [vmem:[%s1683_s7 + $0x8] sm:$0xff] %v1276_v2  ;;  %v992_v17 = vadd.f32 %v1723_v38, %v948_v9  ;;  %v993_v18 = vadd.f32 %v1725_v39, %v949_v10  ;;  %v952_v19 = vmul.f32 %v1719_v36, %v901_v5 }
 0x15e   : > { %1112 = vst [vmem:[%s1683_s7 + $0x10] sm:$0xff] %v1277_v7  ;;  %1113 = vst [vmem:[%s1683_s7 + $0x18] sm:$0xff] %v1278_v8  ;;  %v953_v20 = vmul.f32 %v1721_v37, %v917_v6  ;;  %v1279_v23 = vpack.c.bf16 %v991_v13, %v990_v12  ;;  %v994_v24 = vadd.f32 %v1723_v38, %v950_v14 }
 0x15f   : > { %v995_v25 = vadd.f32 %v1725_v39, %v951_v15  ;;  %v954_v26 = vmul.f32 %v1719_v36, %v902_v11  ;;  %v1280_v29 = vpack.c.bf16 %v993_v18, %v992_v17  ;;  %v996_v30 = vadd.f32 %v1723_v38, %v952_v19 }
 0x160   : > { %v997_v31 = vadd.f32 %v1725_v39, %v953_v20  ;;  %v955_v32 = vmul.f32 %v1721_v37, %v918_v16  ;;  %1114 = vst [vmem:[%s1683_s7 + $0x20] sm:$0xff] %v1279_v23  ;;  %v956_v41 = vmul.f32 %v1719_v36, %v903_v21  ;;  %v957_v42 = vmul.f32 %v1721_v37, %v919_v22  ;;  %v908_v59 = vld [vmem:[#allocation2 + $0x70] sm:$0xff] }
 0x161   : > { %v1281_v35 = vpack.c.bf16 %v995_v25, %v994_v24  ;;  %v998_v40 = vadd.f32 %v1723_v38, %v954_v26  ;;  %v906_v43 = vld [vmem:[#allocation2 + $0x60] sm:$0xff]  ;;  %1115 = vst [vmem:[%s1683_s7 + $0x28] sm:$0xff] %v1280_v29  ;;  %v958_v46 = vmul.f32 %v1719_v36, %v904_v27  ;;  %v959_v47 = vmul.f32 %v1721_v37, %v920_v28  ;;  %v924_v60 = vld [vmem:[#allocation2 + $0xf0] sm:$0xff] }
 0x162   : > { %v1282_v44 = vpack.c.bf16 %v997_v31, %v996_v30  ;;  %v999_v45 = vadd.f32 %v1725_v39, %v955_v32  ;;  %v922_v48 = vld [vmem:[#allocation2 + $0xe0] sm:$0xff]  ;;  %v1000_v49 = vadd.f32 %v1723_v38, %v956_v41  ;;  %v1001_v50 = vadd.f32 %v1725_v39, %v957_v42  ;;  %v909_v1 = vld [vmem:[#allocation2 + $0x78] sm:$0xff] }
 0x163   : > { %1116 = vst [vmem:[%s1683_s7 + $0x30] sm:$0xff] %v1281_v35  ;;  %v960_v51 = vmul.f32 %v1719_v36, %v905_v33  ;;  %v961_v52 = vmul.f32 %v1721_v37, %v921_v34  ;;  %v907_v53 = vld [vmem:[#allocation2 + $0x68] sm:$0xff]  ;;  %v1002_v56 = vadd.f32 %v1723_v38, %v958_v46  ;;  %v1003_v57 = vadd.f32 %v1725_v39, %v959_v47  ;;  %v925_v2 = vld [vmem:[#allocation2 + $0xf8] sm:$0xff] }
 0x164   : > { %v923_v54 = vld [vmem:[#allocation2 + $0xe8] sm:$0xff]  ;;  %1117 = vst [vmem:[%s1683_s7 + $0x38] sm:$0xff] %v1282_v44  ;;  %v1283_v55 = vpack.c.bf16 %v999_v45, %v998_v40  ;;  %v962_v58 = vmul.f32 %v1719_v36, %v906_v43  ;;  %v1284_v61 = vpack.c.bf16 %v1001_v50, %v1000_v49  ;;  %v963_v0 = vmul.f32 %v1721_v37, %v922_v48 }
 0x165   : > { %v1004_v62 = vadd.f32 %v1723_v38, %v960_v51  ;;  %v1005_v63 = vadd.f32 %v1725_v39, %v961_v52  ;;  %v1285_v3 = vpack.c.bf16 %v1003_v57, %v1002_v56  ;;  %v964_v5 = vmul.f32 %v1719_v36, %v907_v53 }
 0x166   : > { %1118 = vst [vmem:[%s1683_s7 + $0x40] sm:$0xff] %v1283_v55  ;;  %v1006_v4 = vadd.f32 %v1723_v38, %v962_v58  ;;  %v965_v6 = vmul.f32 %v1721_v37, %v923_v54  ;;  %1119 = vst [vmem:[%s1683_s7 + $0x48] sm:$0xff] %v1284_v61  ;;  %v1007_v8 = vadd.f32 %v1725_v39, %v963_v0 }
 0x167   : > { %v1286_v7 = vpack.c.bf16 %v1005_v63, %v1004_v62  ;;  %v966_v9 = vmul.f32 %v1719_v36, %v908_v59  ;;  %v967_v10 = vmul.f32 %v1721_v37, %v924_v60  ;;  %1120 = vst [vmem:[%s1683_s7 + $0x50] sm:$0xff] %v1285_v3  ;;  %v1008_v11 = vadd.f32 %v1723_v38, %v964_v5 }
 0x168   : > { %v1009_v12 = vadd.f32 %v1725_v39, %v965_v6  ;;  %v968_v13 = vmul.f32 %v1719_v36, %v909_v1  ;;  %v969_v14 = vmul.f32 %v1721_v37, %v925_v2  ;;  %v1287_v15 = vpack.c.bf16 %v1007_v8, %v1006_v4 }
 0x169   : > { %1121 = vst [vmem:[%s1683_s7 + $0x58] sm:$0xff] %v1286_v7  ;;  %v1010_v16 = vadd.f32 %v1723_v38, %v966_v9  ;;  %v1011_v17 = vadd.f32 %v1725_v39, %v967_v10 }
 0x16a   : > { %v1288_v18 = vpack.c.bf16 %v1009_v12, %v1008_v11  ;;  %v1012_v19 = vadd.f32 %v1723_v38, %v968_v13  ;;  %v1013_v20 = vadd.f32 %v1725_v39, %v969_v14  ;;  %1122 = vst [vmem:[%s1683_s7 + $0x60] sm:$0xff] %v1287_v15 }
 0x16b   : > { %v1289_v21 = vpack.c.bf16 %v1011_v17, %v1010_v16 }
 0x16c   : > { %1123 = vst [vmem:[%s1683_s7 + $0x68] sm:$0xff] %v1288_v18  ;;  %v1290_v22 = vpack.c.bf16 %v1013_v20, %v1012_v19 }
 0x16d   : > { %1124 = vst [vmem:[%s1683_s7 + $0x70] sm:$0xff] %v1289_v21 }
 0x16e   : > { %1125 = vst [vmem:[%s1683_s7 + $0x78] sm:$0xff] %v1290_v22 }
 0x16f PF: > { %s14_s21 = sadd.s32 1, %s1514_s21   ;;  %s1833_s15 = smov %s1494_s16 }
 0x170   : > { %p11_p0 = scmp.ge.s32.totalorder %s14_s21, 6   ;;  %s1834_s16 = smov %s1593_s28 }
 0x171   : > { %s1835_s17 = smov %s1506_s19  ;;  %s1836_s18 = smov %s1510_s20 }
 0x172   : > { %s1837_s19 = smov %s1840_s22  ;;  %s1838_s20 = smov %s1844_s23 }
 0x173   :  { %13 = sbr.rel (!%p11_p0) target bundleno = 4 (0x4), region = 123 }

// kernel: h2gcn_forward.6
= control target key start
LH: loop header
LB: loop body
LE: loop exit
PB: predicated region body
PF: predicated region fallthrough
CT: control target
= control target key end

     0   :  { %s1595_s15 = smov 0   ;;  %s1597_s16 = smov 0   ;;  %s1917_s0 = inlined_call_operand.vmem [shape: bf16[2,256,256], index: 0, kind: input, shape index: {}]   ;;  %s1918_s1 = inlined_call_operand.vmem [shape: bf16[256,64], index: 1, kind: input, shape index: {}]   ;;  %s1919_s2 = inlined_call_operand.vmem [shape: f32[1,128], index: 2, kind: input, shape index: {}]   ;;  %s1920_s3 = inlined_call_operand.vmem [shape: f32[1,128], index: 3, kind: input, shape index: {}]   ;;  %s1921_s4 = inlined_call_operand.vmem [shape: bf16[256,128], index: 4, kind: output, shape index: {}]  }
   0x1   :  { %s1599_s17 = smov 0   ;;  %s1601_s18 = smov 0  }
   0x2   :  { %s1603_s19 = smov 0   ;;  %s1605_s20 = smov 0  }
   0x3   :  { %s1607_s21 = smov 0  }
   0x4 LB: > { %s23_s22 = sadd.s32 1, %s1558_s19  ;;  %s26_s23 = sadd.s32 1, %s1562_s20  ;;  %s1566_s21 = sphi %s1607_s21, %s14_s21   ;;  %s1562_s20 = sphi %s1605_s20, %s1927_s20   ;;  %s1558_s19 = sphi %s1603_s19, %s1926_s19   ;;  %s1554_s18 = sphi %s1601_s18, %s1925_s18   ;;  %s1550_s17 = sphi %s1599_s17, %s1924_s17   ;;  %s1546_s16 = sphi %s1597_s16, %s1923_s16   ;;  %s1542_s15 = sphi %s1595_s15, %s1922_s15  }
   0x5   : > { %p24_p0 = scmp.ge.s32.totalorder %s23_s22, 2  ;;  %p42_p1 = scmp.ne.s32.totalorder %s1546_s16, %s1542_s15 }
   0x6   : > { %p43_p2 = scmp.eq.s32.totalorder %s1566_s21, 0  ;;  %s35_s27 = sadd.s32 1, %s1546_s16 }
   0x7   : > { %s1929_s22 = smov (%p24_p0, %s23_s22), 0  ;;  %s1931_s23 = smov (!%p24_p0, %s26_s23), %s1562_s20 }
   0x8   : > { %p44_p3 = por %p43_p2, %p42_p1  ;;  %p28_p4 = scmp.ge.s32.totalorder %s1931_s23, 2 }
   0x9   : > { %s31_s24 = ssub.s32 %s1558_s19, %s1929_s22  ;;  %p1223_p6 = scmp.ge.s32.totalorder %s1566_s21, 4 }
   0xa   : > { %s1933_s23 = smov (%p28_p4, %s1931_s23), 0 }
   0xb   : > { %s30_s25 = ssub.s32 %s1562_s20, %s1933_s23  ;;  %168 = sbr.rel (%p1223_p6) target bundleno = 45 (0x2d), region = 24 }
   0xc   : > { %s32_s26 = sor.u32 %s31_s24, %s30_s25 }
   0xd   : > { %p33_p5 = scmp.eq.s32.totalorder %s32_s26, 0 }
   0xf   : > { %s1646_s28 = scalar_select %p33_p5, %s1546_s16, %s35_s27  }
  0x12   : > { %171 = sbr.rel (!%p44_p3) target bundleno = 45 (0x2d), region = 28  ;;  %s173_s29 = sand.u32 (%p44_p3), 1, %s1546_s16  }
  0x13   : > { %s1225_s30 = sshll.u32 (%p44_p3), %s1562_s20, 6  ;;  %s1224_s5 = sshll.u32 (%p44_p3), %s173_s29, 7 }
  0x14   : > { %s177_s6 = sadd.s32 (%p44_p3), %s1558_s19, %s1225_s30  ;;  %s1660_s11 = scalar_lea.vmem (%p44_p3), [#allocation3], %s1224_s5 }
  0x15   : > { %s1226_s7 = sshll.u32 (%p44_p3), %s177_s6, 2 }
  0x16   : > { %s1655_s10 = scalar_lea.vmem (%p44_p3), %s1917_s0, %s1226_s7 }
  0x17   : > { %v195_v0 = vld [vmem:[%s1655_s10] sm:$0xf] (%p44_p3)  ;;  %v197_v1 = vld [vmem:[%s1655_s10 + $0x8] sm:$0xf] (%p44_p3)  ;;  %v199_v2 = vld [vmem:[%s1655_s10 + $0x10] sm:$0xf] (%p44_p3) }
  0x18   : > { %196 = vst [vmem:[%s1660_s11] sm:$0xf] (%p44_p3), %v195_v0  ;;  %198 = vst [vmem:[%s1660_s11 + $0x4] sm:$0xf] (%p44_p3), %v197_v1  ;;  %v201_v3 = vld [vmem:[%s1655_s10 + $0x18] sm:$0xf] (%p44_p3) }
  0x19   : > { %200 = vst [vmem:[%s1660_s11 + $0x8] sm:$0xf] %v199_v2  ;;  %v203_v4 = vld [vmem:[%s1655_s10 + $0x20] sm:$0xf]  ;;  %v205_v5 = vld [vmem:[%s1655_s10 + $0x28] sm:$0xf] }
  0x1a   : > { %202 = vst [vmem:[%s1660_s11 + $0xc] sm:$0xf] %v201_v3  ;;  %204 = vst [vmem:[%s1660_s11 + $0x10] sm:$0xf] %v203_v4  ;;  %v207_v6 = vld [vmem:[%s1655_s10 + $0x30] sm:$0xf] }
  0x1b   : > { %206 = vst [vmem:[%s1660_s11 + $0x14] sm:$0xf] %v205_v5  ;;  %v209_v7 = vld [vmem:[%s1655_s10 + $0x38] sm:$0xf]  ;;  %v211_v8 = vld [vmem:[%s1655_s10 + $0x40] sm:$0xf] }
  0x1c   : > { %208 = vst [vmem:[%s1660_s11 + $0x18] sm:$0xf] %v207_v6  ;;  %210 = vst [vmem:[%s1660_s11 + $0x1c] sm:$0xf] %v209_v7  ;;  %v213_v9 = vld [vmem:[%s1655_s10 + $0x48] sm:$0xf] }
  0x1d   : > { %212 = vst [vmem:[%s1660_s11 + $0x20] sm:$0xf] %v211_v8  ;;  %v215_v10 = vld [vmem:[%s1655_s10 + $0x50] sm:$0xf]  ;;  %v217_v11 = vld [vmem:[%s1655_s10 + $0x58] sm:$0xf] }
  0x1e   : > { %214 = vst [vmem:[%s1660_s11 + $0x24] sm:$0xf] %v213_v9  ;;  %216 = vst [vmem:[%s1660_s11 + $0x28] sm:$0xf] %v215_v10  ;;  %v219_v12 = vld [vmem:[%s1655_s10 + $0x60] sm:$0xf] }
  0x1f   : > { %218 = vst [vmem:[%s1660_s11 + $0x2c] sm:$0xf] %v217_v11  ;;  %v221_v13 = vld [vmem:[%s1655_s10 + $0x68] sm:$0xf]  ;;  %v223_v14 = vld [vmem:[%s1655_s10 + $0x70] sm:$0xf] }
  0x20   : > { %220 = vst [vmem:[%s1660_s11 + $0x30] sm:$0xf] %v219_v12  ;;  %222 = vst [vmem:[%s1660_s11 + $0x34] sm:$0xf] %v221_v13  ;;  %v225_v15 = vld [vmem:[%s1655_s10 + $0x78] sm:$0xf] }
  0x21   : > { %224 = vst [vmem:[%s1660_s11 + $0x38] sm:$0xf] %v223_v14  ;;  %v227_v16 = vld [vmem:[%s1655_s10 + $0x80] sm:$0xf]  ;;  %v229_v17 = vld [vmem:[%s1655_s10 + $0x88] sm:$0xf] }
  0x22   : > { %226 = vst [vmem:[%s1660_s11 + $0x3c] sm:$0xf] %v225_v15  ;;  %228 = vst [vmem:[%s1660_s11 + $0x40] sm:$0xf] %v227_v16  ;;  %v231_v18 = vld [vmem:[%s1655_s10 + $0x90] sm:$0xf] }
  0x23   : > { %230 = vst [vmem:[%s1660_s11 + $0x44] sm:$0xf] %v229_v17  ;;  %v233_v19 = vld [vmem:[%s1655_s10 + $0x98] sm:$0xf]  ;;  %v235_v20 = vld [vmem:[%s1655_s10 + $0xa0] sm:$0xf] }
  0x24   : > { %232 = vst [vmem:[%s1660_s11 + $0x48] sm:$0xf] %v231_v18  ;;  %234 = vst [vmem:[%s1660_s11 + $0x4c] sm:$0xf] %v233_v19  ;;  %v237_v21 = vld [vmem:[%s1655_s10 + $0xa8] sm:$0xf] }
  0x25   : > { %236 = vst [vmem:[%s1660_s11 + $0x50] sm:$0xf] %v235_v20  ;;  %v239_v22 = vld [vmem:[%s1655_s10 + $0xb0] sm:$0xf]  ;;  %v241_v23 = vld [vmem:[%s1655_s10 + $0xb8] sm:$0xf] }
  0x26   : > { %238 = vst [vmem:[%s1660_s11 + $0x54] sm:$0xf] %v237_v21  ;;  %240 = vst [vmem:[%s1660_s11 + $0x58] sm:$0xf] %v239_v22  ;;  %v243_v24 = vld [vmem:[%s1655_s10 + $0xc0] sm:$0xf] }
  0x27   : > { %242 = vst [vmem:[%s1660_s11 + $0x5c] sm:$0xf] %v241_v23  ;;  %v245_v25 = vld [vmem:[%s1655_s10 + $0xc8] sm:$0xf]  ;;  %v247_v26 = vld [vmem:[%s1655_s10 + $0xd0] sm:$0xf] }
  0x28   : > { %244 = vst [vmem:[%s1660_s11 + $0x60] sm:$0xf] %v243_v24  ;;  %246 = vst [vmem:[%s1660_s11 + $0x64] sm:$0xf] %v245_v25  ;;  %v249_v27 = vld [vmem:[%s1655_s10 + $0xd8] sm:$0xf] }
  0x29   : > { %248 = vst [vmem:[%s1660_s11 + $0x68] sm:$0xf] %v247_v26  ;;  %v251_v28 = vld [vmem:[%s1655_s10 + $0xe0] sm:$0xf]  ;;  %v253_v29 = vld [vmem:[%s1655_s10 + $0xe8] sm:$0xf] }
  0x2a   : > { %250 = vst [vmem:[%s1660_s11 + $0x6c] sm:$0xf] %v249_v27  ;;  %252 = vst [vmem:[%s1660_s11 + $0x70] sm:$0xf] %v251_v28  ;;  %v255_v30 = vld [vmem:[%s1655_s10 + $0xf0] sm:$0xf] }
  0x2b   : > { %254 = vst [vmem:[%s1660_s11 + $0x74] sm:$0xf] %v253_v29  ;;  %v257_v31 = vld [vmem:[%s1655_s10 + $0xf8] sm:$0xf]  ;;  %256 = vst [vmem:[%s1660_s11 + $0x78] sm:$0xf] %v255_v30 }
  0x2c   : > { %258 = vst [vmem:[%s1660_s11 + $0x7c] sm:$0xf] %v257_v31 }
  0x2d PF: > { %p1227_p7 = scmp.ge.s32.totalorder %s1566_s21, 1  ;;  %p353_p8 = scmp.lt.s32.totalorder %s1566_s21, 5 }
  0x2f   : > { %p354_p9 = pnand %p1227_p7, %p353_p8 }
  0x30   : > { %s360_s12 = sand.u32 (!%p354_p9), 1, %s1542_s15   ;;  %s1229_s13 = sshll.u32 (!%p354_p9), %s1550_s17, 4 }
  0x31   : > { %357 = sbr.rel (%p354_p9) target bundleno = 483 (0x1e3), region = 73  ;;  %s1228_s14 = sshll.u32 (!%p354_p9), %s360_s12, 7 }
  0x32   : > { %p391_p10 = scmp.lt.s32.totalorder (!%p354_p9), %s1229_s13, 31  ;;  %s1231_s24 = sshll.u32 (!%p354_p9), %s1554_s18, 4 }
  0x33   : > { %p397_p11 = scmp.lt.s32.totalorder (!%p354_p9), %s1231_s24, 31  ;;  %s1738_s15 = scalar_lea.vmem (!%p354_p9), [#allocation3], %s1228_s14 }
  0x34   : > { %p1233_p12 = scmp.ne.s32.totalorder (!%p354_p9), %s1550_s17, 0 }
  0x38   : > { %s1935_s13 = smov (!%p391_p10, %s1229_s13), 31  ;;  %s1937_s24 = smov (!%p397_p11, %s1231_s24), 31 }
  0x39   : > { %s1230_s25 = sshll.u32 %s1935_s13, 2  ;;  %s1232_s30 = sshll.u32 %s1937_s24, 2  ;;  %vm407_vm0 = vcmask (!%p1233_p12), 523264   ;;  %v1568_v32 = vmov (!%p1233_p12), 0.0  }
  0x3a   : > { %s1731_s29 = scalar_lea.vmem %s1918_s1, %s1230_s25  ;;  %s1736_s7 = scalar_lea.vmem %s1921_s4, %s1232_s30  ;;  %408 = vst.msk [vmem:[#allocation2] sm:$0xff] (!%p1233_p12), %vm407_vm0, %v1568_v32  ;;  %409 = vst.msk [vmem:[#allocation2 + $0x8] sm:$0xff] (!%p1233_p12), %vm407_vm0, %v1568_v32 }
  0x3b   : > { %406 = sbr.rel (%p1233_p12) target bundleno = 74 (0x4a), region = 81  ;;  %410 = vst.msk [vmem:[#allocation2 + $0x10] sm:$0xff] (!%p1233_p12), %vm407_vm0, %v1568_v32  ;;  %411 = vst.msk [vmem:[#allocation2 + $0x18] sm:$0xff] (!%p1233_p12), %vm407_vm0, %v1568_v32 }
  0x3c   : > { %412 = vst.msk [vmem:[#allocation2 + $0x20] sm:$0xff] (!%p1233_p12), %vm407_vm0, %v1568_v32  ;;  %413 = vst.msk [vmem:[#allocation2 + $0x28] sm:$0xff] (!%p1233_p12), %vm407_vm0, %v1568_v32 }
  0x3d   : > { %414 = vst.msk [vmem:[#allocation2 + $0x30] sm:$0xff] (!%p1233_p12), %vm407_vm0, %v1568_v32  ;;  %415 = vst.msk [vmem:[#allocation2 + $0x38] sm:$0xff] (!%p1233_p12), %vm407_vm0, %v1568_v32 }
  0x3e   : > { %416 = vst.msk [vmem:[#allocation2 + $0x40] sm:$0xff] (!%p1233_p12), %vm407_vm0, %v1568_v32  ;;  %417 = vst.msk [vmem:[#allocation2 + $0x48] sm:$0xff] (!%p1233_p12), %vm407_vm0, %v1568_v32 }
  0x3f   : > { %418 = vst.msk [vmem:[#allocation2 + $0x50] sm:$0xff] (!%p1233_p12), %vm407_vm0, %v1568_v32  ;;  %419 = vst.msk [vmem:[#allocation2 + $0x58] sm:$0xff] (!%p1233_p12), %vm407_vm0, %v1568_v32 }
  0x40   : > { %420 = vst.msk [vmem:[#allocation2 + $0x60] sm:$0xff] (!%p1233_p12), %vm407_vm0, %v1568_v32  ;;  %421 = vst.msk [vmem:[#allocation2 + $0x68] sm:$0xff] (!%p1233_p12), %vm407_vm0, %v1568_v32 }
  0x41   : > { %422 = vst.msk [vmem:[#allocation2 + $0x70] sm:$0xff] (!%p1233_p12), %vm407_vm0, %v1568_v32  ;;  %423 = vst.msk [vmem:[#allocation2 + $0x78] sm:$0xff] (!%p1233_p12), %vm407_vm0, %v1568_v32 }
  0x42   : > { %424 = vst.msk [vmem:[#allocation2 + $0x80] sm:$0xff] %vm407_vm0, %v1568_v32  ;;  %425 = vst.msk [vmem:[#allocation2 + $0x88] sm:$0xff] %vm407_vm0, %v1568_v32 }
  0x43   : > { %426 = vst.msk [vmem:[#allocation2 + $0x90] sm:$0xff] %vm407_vm0, %v1568_v32  ;;  %427 = vst.msk [vmem:[#allocation2 + $0x98] sm:$0xff] %vm407_vm0, %v1568_v32 }
  0x44   : > { %428 = vst.msk [vmem:[#allocation2 + $0xa0] sm:$0xff] %vm407_vm0, %v1568_v32  ;;  %429 = vst.msk [vmem:[#allocation2 + $0xa8] sm:$0xff] %vm407_vm0, %v1568_v32 }
  0x45   : > { %430 = vst.msk [vmem:[#allocation2 + $0xb0] sm:$0xff] %vm407_vm0, %v1568_v32  ;;  %431 = vst.msk [vmem:[#allocation2 + $0xb8] sm:$0xff] %vm407_vm0, %v1568_v32 }
  0x46   : > { %432 = vst.msk [vmem:[#allocation2 + $0xc0] sm:$0xff] %vm407_vm0, %v1568_v32  ;;  %433 = vst.msk [vmem:[#allocation2 + $0xc8] sm:$0xff] %vm407_vm0, %v1568_v32 }
  0x47   : > { %434 = vst.msk [vmem:[#allocation2 + $0xd0] sm:$0xff] %vm407_vm0, %v1568_v32  ;;  %435 = vst.msk [vmem:[#allocation2 + $0xd8] sm:$0xff] %vm407_vm0, %v1568_v32 }
  0x48   : > { %436 = vst.msk [vmem:[#allocation2 + $0xe0] sm:$0xff] %vm407_vm0, %v1568_v32  ;;  %437 = vst.msk [vmem:[#allocation2 + $0xe8] sm:$0xff] %vm407_vm0, %v1568_v32 }
  0x49   : > { %438 = vst.msk [vmem:[#allocation2 + $0xf0] sm:$0xff] %vm407_vm0, %v1568_v32  ;;  %439 = vst.msk [vmem:[#allocation2 + $0xf8] sm:$0xff] %vm407_vm0, %v1568_v32 }
  0x4a PF: > { %v1488_v33 = vld [vmem:[%s1731_s29] sm:$0xff]   ;;  %v1489_v34 = vld [vmem:[%s1731_s29 + $0x8] sm:$0xff]   ;;  %v1490_v35 = vld [vmem:[%s1731_s29 + $0x10] sm:$0xff]   ;;  %vm857_vm1 = vcmask 523264   ;;  %p1258_p13 = scmp.ne.s32.totalorder %s1550_s17, 1 }
  0x4b   : > { %1366 = vmatprep.subr.bf16.mxu0 %v1488_v33  ;;  %1414 = vmatprep.subr.bf16.mxu1 %v1488_v33  ;;  %v1491_v36 = vld [vmem:[%s1731_s29 + $0x18] sm:$0xff]   ;;  %v1496_v37 = vld [vmem:[%s1738_s15] sm:$0xff]   ;;  %v1493_v40 = vld [vmem:[%s1731_s29 + $0x28] sm:$0xff]   ;;  %s1569_s18 = smov (!%p1258_p13), 64  }
  0x4c   : > { %1367 = vmatpush3.bf16.msra.mxu0 %v1488_v33  ;;  %1422 = vmatpush3.bf16.msra.mxu1 %v1488_v33  ;;  %v1497_v38 = vld [vmem:[%s1738_s15 + $0x40] sm:$0xff]   ;;  %v1494_v41 = vld [vmem:[%s1731_s29 + $0x30] sm:$0xff]   ;;  %v1495_v42 = vld [vmem:[%s1731_s29 + $0x38] sm:$0xff]  }
  0x4d   : > { %1368 = vmatprep.subr.bf16.mxu0 %v1489_v34  ;;  %1415 = vmatprep.subr.bf16.mxu1 %v1489_v34  ;;  %v1492_v39 = vld [vmem:[%s1731_s29 + $0x20] sm:$0xff]   ;;  %v1498_v43 = vld [vmem:[%s1738_s15 + $0x8] sm:$0xff]   ;;  %v1500_v45 = vld [vmem:[%s1738_s15 + $0x10] sm:$0xff]  }
  0x4e   : > { %1382 = vmatprep.mubr.bf16.mxu0 %v1496_v37  ;;  %1398 = vmatprep.mubr.bf16.mxu1 %v1497_v38  ;;  %v1499_v44 = vld [vmem:[%s1738_s15 + $0x48] sm:$0xff]   ;;  %v1501_v46 = vld [vmem:[%s1738_s15 + $0x50] sm:$0xff]   ;;  %v1502_v47 = vld [vmem:[%s1738_s15 + $0x18] sm:$0xff]  }
  0x4f   : > { %v1503_v48 = vld [vmem:[%s1738_s15 + $0x58] sm:$0xff]   ;;  %v1504_v49 = vld [vmem:[%s1738_s15 + $0x20] sm:$0xff]   ;;  %v1506_v51 = vld [vmem:[%s1738_s15 + $0x28] sm:$0xff]  }
  0x50   : > { %1369 = vmatpush3.bf16.msra.mxu0 %v1489_v34  ;;  %1423 = vmatpush3.bf16.msra.mxu1 %v1489_v34  ;;  %v1505_v50 = vld [vmem:[%s1738_s15 + $0x60] sm:$0xff]   ;;  %v1507_v52 = vld [vmem:[%s1738_s15 + $0x68] sm:$0xff]   ;;  %v1508_v53 = vld [vmem:[%s1738_s15 + $0x30] sm:$0xff]  }
  0x51   : > { %1370 = vmatprep.subr.bf16.mxu0 %v1490_v35  ;;  %1416 = vmatprep.subr.bf16.mxu1 %v1490_v35  ;;  %v1509_v54 = vld [vmem:[%s1738_s15 + $0x70] sm:$0xff]   ;;  %v1510_v55 = vld [vmem:[%s1738_s15 + $0x38] sm:$0xff]   ;;  %v440_v59 = vld [vmem:[#allocation2] sm:$0xff] }
  0x52   : > { %v1511_v56 = vld [vmem:[%s1738_s15 + $0x78] sm:$0xff]   ;;  %v442_v57 = vld [vmem:[#allocation2 + $0x10] sm:$0xff]  ;;  %v456_v60 = vld [vmem:[#allocation2 + $0x80] sm:$0xff] }
  0x53   : > { %v458_v58 = vld [vmem:[#allocation2 + $0x90] sm:$0xff]  ;;  %v443_v63 = vld [vmem:[#allocation2 + $0x18] sm:$0xff]  ;;  %v441_v5 = vld [vmem:[#allocation2 + $0x8] sm:$0xff] }
  0x54   : > { %1371 = vmatpush3.bf16.msra.mxu0 %v1490_v35  ;;  %1424 = vmatpush3.bf16.msra.mxu1 %v1490_v35  ;;  %v459_v0 = vld [vmem:[#allocation2 + $0x98] sm:$0xff]  ;;  %v457_v6 = vld [vmem:[#allocation2 + $0x88] sm:$0xff]  ;;  %v446_v17 = vld [vmem:[#allocation2 + $0x30] sm:$0xff] }
  0x55   : > { %1372 = vmatprep.subr.bf16.mxu0 %v1491_v36  ;;  %1417 = vmatprep.subr.bf16.mxu1 %v1491_v36  ;;  %v462_v18 = vld [vmem:[#allocation2 + $0xb0] sm:$0xff]  ;;  %v444_v19 = vld [vmem:[#allocation2 + $0x20] sm:$0xff]  ;;  %v447_v23 = vld [vmem:[#allocation2 + $0x38] sm:$0xff] }
  0x56   : > { %v460_v20 = vld [vmem:[#allocation2 + $0xa0] sm:$0xff]  ;;  %v463_v24 = vld [vmem:[#allocation2 + $0xb8] sm:$0xff]  ;;  %v445_v29 = vld [vmem:[#allocation2 + $0x28] sm:$0xff] }
  0x57   : > { %v461_v30 = vld [vmem:[#allocation2 + $0xa8] sm:$0xff] }
  0x58   : > { %1373 = vmatpush3.bf16.msra.mxu0 %v1491_v36  ;;  %1425 = vmatpush3.bf16.msra.mxu1 %v1491_v36 }
  0x59   : > { %1374 = vmatprep.subr.bf16.mxu0 %v1492_v39  ;;  %1418 = vmatprep.subr.bf16.mxu1 %v1492_v39 }
  0x5c   : > { %1375 = vmatpush3.bf16.msra.mxu0 %v1492_v39  ;;  %1426 = vmatpush3.bf16.msra.mxu1 %v1492_v39 }
  0x5d   : > { %1376 = vmatprep.subr.bf16.mxu0 %v1493_v40  ;;  %1419 = vmatprep.subr.bf16.mxu1 %v1493_v40 }
  0x60   : > { %1377 = vmatpush3.bf16.msra.mxu0 %v1493_v40  ;;  %1427 = vmatpush3.bf16.msra.mxu1 %v1493_v40 }
  0x61   : > { %1378 = vmatprep.subr.bf16.mxu0 %v1494_v41  ;;  %1420 = vmatprep.subr.bf16.mxu1 %v1494_v41 }
  0x64   : > { %1379 = vmatpush3.bf16.msra.mxu0 %v1494_v41  ;;  %1428 = vmatpush3.bf16.msra.mxu1 %v1494_v41  ;;  %v450_v41 = vld [vmem:[#allocation2 + $0x50] sm:$0xff] }
  0x65   : > { %1380 = vmatprep.subr.bf16.mxu0 %v1495_v42  ;;  %1421 = vmatprep.subr.bf16.mxu1 %v1495_v42 }
  0x68   : > { %1381 = vmatpush3.bf16.msra.mxu0 %v1495_v42  ;;  %1429 = vmatpush3.bf16.msra.mxu1 %v1495_v42  ;;  %v466_v42 = vld [vmem:[#allocation2 + $0xd0] sm:$0xff] }
  0x6b   : > { %1383 = vmatmul.mubr.bf16.vlgmr.msra.gmra.mrb[0].mxu0 %v1498_v43  ;;  %1399 = vmatmul.mubr.bf16.vlgmr.msra.gmra.mrb[0].mxu1 %v1499_v44  ;;  %v448_v43 = vld [vmem:[#allocation2 + $0x40] sm:$0xff] }
  0x6c   : > { %1386 = vmatprep.mubr.bf16.mxu0 %v1500_v45  ;;  %1402 = vmatprep.mubr.bf16.mxu1 %v1501_v46  ;;  %v464_v44 = vld [vmem:[#allocation2 + $0xc0] sm:$0xff] }
  0x73   : > { %1387 = vmatmul.mubr.bf16.gmra.mrb[4].mxu0 %v1502_v47  ;;  %1403 = vmatmul.mubr.bf16.gmra.mrb[4].mxu1 %v1503_v48  ;;  %v451_v47 = vld [vmem:[#allocation2 + $0x58] sm:$0xff] }
  0x74   : > { %1390 = vmatprep.mubr.bf16.mxu0 %v1504_v49  ;;  %1406 = vmatprep.mubr.bf16.mxu1 %v1505_v50  ;;  %v467_v48 = vld [vmem:[#allocation2 + $0xd8] sm:$0xff] }
  0x7b   : > { %1391 = vmatmul.mubr.bf16.gmra.mrb[8].mxu0 %v1506_v51  ;;  %1407 = vmatmul.mubr.bf16.gmra.mrb[8].mxu1 %v1507_v52 }
  0x7c   : > { %1394 = vmatprep.mubr.bf16.mxu0 %v1508_v53  ;;  %1410 = vmatprep.mubr.bf16.mxu1 %v1509_v54  ;;  %v449_v53 = vld [vmem:[#allocation2 + $0x48] sm:$0xff] }
  0x7d   : > { %v465_v54 = vld [vmem:[#allocation2 + $0xc8] sm:$0xff] }
  0x83   : > { %1395 = vmatmul.mubr.bf16.gmra.mrb[12].mxu0 %v1510_v55  ;;  %1411 = vmatmul.mubr.bf16.gmra.mrb[12].mxu1 %v1511_v56 }
 0x13e   : > { %v1384_v61 = vpop.f32.mrb[0].mxu0  ;;  %v1400_v62 = vpop.f32.mrb[0].mxu1 }
 0x13f   : > { %v827_v1 = vadd.f32 %v1384_v61, %v442_v57  ;;  %v843_v2 = vadd.f32 %v1400_v62, %v458_v58  ;;  %v698_v3 = vpop.f32.mrb[1].mxu0  ;;  %v762_v4 = vpop.f32.mrb[1].mxu1 }
 0x140   : > { %v825_v7 = vadd.f32 %v698_v3, %v440_v59  ;;  %v841_v8 = vadd.f32 %v762_v4, %v456_v60  ;;  %v1385_v9 = vpop.f32.mrb[2].mxu0  ;;  %v1401_v10 = vpop.f32.mrb[2].mxu1  ;;  %v452_v3 = vld [vmem:[#allocation2 + $0x60] sm:$0xff] }
 0x141   : > { %860 = vst.msk [vmem:[#allocation2 + $0x10] sm:$0xff] %vm857_vm1, %v827_v1  ;;  %876 = vst.msk [vmem:[#allocation2 + $0x90] sm:$0xff] %vm857_vm1, %v843_v2  ;;  %v828_v11 = vadd.f32 %v1385_v9, %v443_v63  ;;  %v844_v12 = vadd.f32 %v1401_v10, %v459_v0  ;;  %v701_v13 = vpop.f32.mrb[3].mxu0  ;;  %v765_v14 = vpop.f32.mrb[3].mxu1  ;;  %v454_v1 = vld [vmem:[#allocation2 + $0x70] sm:$0xff]  ;;  %v468_v4 = vld [vmem:[#allocation2 + $0xe0] sm:$0xff] }
 0x142   : > { %858 = vst.msk [vmem:[#allocation2] sm:$0xff] %vm857_vm1, %v825_v7  ;;  %874 = vst.msk [vmem:[#allocation2 + $0x80] sm:$0xff] %vm857_vm1, %v841_v8  ;;  %v826_v15 = vadd.f32 %v701_v13, %v441_v5  ;;  %v842_v16 = vadd.f32 %v765_v14, %v457_v6  ;;  %v470_v2 = vld [vmem:[#allocation2 + $0xf0] sm:$0xff]  ;;  %v455_v7 = vld [vmem:[#allocation2 + $0x78] sm:$0xff] }
 0x143   : > { %861 = vst.msk [vmem:[#allocation2 + $0x18] sm:$0xff] %vm857_vm1, %v828_v11  ;;  %877 = vst.msk [vmem:[#allocation2 + $0x98] sm:$0xff] %vm857_vm1, %v844_v12  ;;  %v471_v8 = vld [vmem:[#allocation2 + $0xf8] sm:$0xff]  ;;  %v453_v13 = vld [vmem:[#allocation2 + $0x68] sm:$0xff] }
 0x144   : > { %859 = vst.msk [vmem:[#allocation2 + $0x8] sm:$0xff] %vm857_vm1, %v826_v15  ;;  %875 = vst.msk [vmem:[#allocation2 + $0x88] sm:$0xff] %vm857_vm1, %v842_v16  ;;  %v469_v14 = vld [vmem:[#allocation2 + $0xe8] sm:$0xff] }
 0x146   : > { %v1388_v21 = vpop.f32.mrb[4].mxu0  ;;  %v1404_v22 = vpop.f32.mrb[4].mxu1 }
 0x147   : > { %v831_v25 = vadd.f32 %v1388_v21, %v446_v17  ;;  %v847_v26 = vadd.f32 %v1404_v22, %v462_v18  ;;  %v714_v27 = vpop.f32.mrb[5].mxu0  ;;  %v778_v28 = vpop.f32.mrb[5].mxu1 }
 0x148   : > { %v829_v31 = vadd.f32 %v714_v27, %v444_v19  ;;  %v845_v32 = vadd.f32 %v778_v28, %v460_v20  ;;  %v1389_v33 = vpop.f32.mrb[6].mxu0  ;;  %v1405_v34 = vpop.f32.mrb[6].mxu1 }
 0x149   : > { %864 = vst.msk [vmem:[#allocation2 + $0x30] sm:$0xff] %vm857_vm1, %v831_v25  ;;  %880 = vst.msk [vmem:[#allocation2 + $0xb0] sm:$0xff] %vm857_vm1, %v847_v26  ;;  %v832_v35 = vadd.f32 %v1389_v33, %v447_v23  ;;  %v848_v36 = vadd.f32 %v1405_v34, %v463_v24  ;;  %v717_v37 = vpop.f32.mrb[7].mxu0  ;;  %v781_v38 = vpop.f32.mrb[7].mxu1  ;;  %v912_v25 = vld [vmem:[#allocation2 + $0x90] sm:$0xff] (!%p1258_p13)  ;;  %v910_v26 = vld [vmem:[#allocation2 + $0x80] sm:$0xff] (!%p1258_p13) }
 0x14a   : > { %862 = vst.msk [vmem:[#allocation2 + $0x20] sm:$0xff] %vm857_vm1, %v829_v31  ;;  %878 = vst.msk [vmem:[#allocation2 + $0xa0] sm:$0xff] %vm857_vm1, %v845_v32  ;;  %v830_v39 = vadd.f32 %v717_v37, %v445_v29  ;;  %v846_v40 = vadd.f32 %v781_v38, %v461_v30  ;;  %946 = vrot.lane.b32.xlu1 (!%p1258_p13), %v912_v25, %s1569_s18  ;;  %942 = vrot.lane.b32.xlu0 (!%p1258_p13), %v910_v26, %s1569_s18  ;;  %v913_v27 = vld [vmem:[#allocation2 + $0x98] sm:$0xff] (!%p1258_p13) }
 0x14b   : > { %865 = vst.msk [vmem:[#allocation2 + $0x38] sm:$0xff] %vm857_vm1, %v832_v35  ;;  %881 = vst.msk [vmem:[#allocation2 + $0xb8] sm:$0xff] %vm857_vm1, %v848_v36  ;;  %v911_v28 = vld [vmem:[#allocation2 + $0x88] sm:$0xff] (!%p1258_p13) }
 0x14c   : > { %863 = vst.msk [vmem:[#allocation2 + $0x28] sm:$0xff] %vm857_vm1, %v830_v39  ;;  %879 = vst.msk [vmem:[#allocation2 + $0xa8] sm:$0xff] %vm857_vm1, %v846_v40 }
 0x14e   : > { %v1392_v45 = vpop.f32.mrb[8].mxu0  ;;  %v1408_v46 = vpop.f32.mrb[8].mxu1  ;;  %948 = vrot.lane.b32.xlu1 (!%p1258_p13), %v913_v27, %s1569_s18  ;;  %944 = vrot.lane.b32.xlu0 (!%p1258_p13), %v911_v28, %s1569_s18 }
 0x14f   : > { %v835_v49 = vadd.f32 %v1392_v45, %v450_v41  ;;  %v851_v50 = vadd.f32 %v1408_v46, %v466_v42  ;;  %v730_v51 = vpop.f32.mrb[9].mxu0  ;;  %v794_v52 = vpop.f32.mrb[9].mxu1  ;;  %v896_v41 = vld [vmem:[#allocation2 + $0x10] sm:$0xff] (!%p1258_p13)  ;;  %v894_v42 = vld [vmem:[#allocation2] sm:$0xff] (!%p1258_p13) }
 0x150   : > { %v833_v55 = vadd.f32 %v730_v51, %v448_v43  ;;  %v849_v56 = vadd.f32 %v794_v52, %v464_v44  ;;  %v1393_v57 = vpop.f32.mrb[10].mxu0  ;;  %v1409_v58 = vpop.f32.mrb[10].mxu1  ;;  %v916_v32 = vld [vmem:[#allocation2 + $0xb0] sm:$0xff] (!%p1258_p13)  ;;  %v1833_v45 = vld [vmem:[%s1919_s2] ss:$0 sm:$0xff] (!%p1258_p13) }
 0x151   : > { %868 = vst.msk [vmem:[#allocation2 + $0x50] sm:$0xff] %vm857_vm1, %v835_v49  ;;  %884 = vst.msk [vmem:[#allocation2 + $0xd0] sm:$0xff] %vm857_vm1, %v851_v50  ;;  %v836_v59 = vadd.f32 %v1393_v57, %v451_v47  ;;  %v852_v60 = vadd.f32 %v1409_v58, %v467_v48  ;;  %v733_v61 = vpop.f32.mrb[11].mxu0  ;;  %v797_v62 = vpop.f32.mrb[11].mxu1  ;;  %v914_v30 = vld [vmem:[#allocation2 + $0xa0] sm:$0xff] (!%p1258_p13)  ;;  %v897_v48 = vld [vmem:[#allocation2 + $0x18] sm:$0xff] (!%p1258_p13) }
 0x152   : > { %866 = vst.msk [vmem:[#allocation2 + $0x40] sm:$0xff] %vm857_vm1, %v833_v55  ;;  %882 = vst.msk [vmem:[#allocation2 + $0xc0] sm:$0xff] %vm857_vm1, %v849_v56  ;;  %v834_v63 = vadd.f32 %v733_v61, %v449_v53  ;;  %v850_v0 = vadd.f32 %v797_v62, %v465_v54  ;;  %950 = vrot.lane.b32.xlu0 (!%p1258_p13), %v914_v30, %s1569_s18  ;;  %v917_v31 = vld [vmem:[#allocation2 + $0xb8] sm:$0xff] (!%p1258_p13)  ;;  %v895_v49 = vld [vmem:[#allocation2 + $0x8] sm:$0xff] (!%p1258_p13) }
 0x153   : > { %869 = vst.msk [vmem:[#allocation2 + $0x58] sm:$0xff] %vm857_vm1, %v836_v59  ;;  %885 = vst.msk [vmem:[#allocation2 + $0xd8] sm:$0xff] %vm857_vm1, %v852_v60  ;;  %v915_v29 = vld [vmem:[#allocation2 + $0xa8] sm:$0xff] (!%p1258_p13)  ;;  %v1842_v54 = vld [vmem:[%s1920_s3] ss:$0 sm:$0xff] (!%p1258_p13) }
 0x154   : > { %867 = vst.msk [vmem:[#allocation2 + $0x48] sm:$0xff] %vm857_vm1, %v834_v63  ;;  %883 = vst.msk [vmem:[#allocation2 + $0xc8] sm:$0xff] %vm857_vm1, %v850_v0  ;;  %952 = vrot.lane.b32.xlu1 (!%p1258_p13), %v915_v29, %s1569_s18  ;;  %v899_v59 = vld [vmem:[#allocation2 + $0x28] sm:$0xff] (!%p1258_p13)  ;;  %v898_v60 = vld [vmem:[#allocation2 + $0x20] sm:$0xff] (!%p1258_p13) }
 0x156   : > { %v1396_v5 = vpop.f32.mrb[12].mxu0  ;;  %v1412_v6 = vpop.f32.mrb[12].mxu1  ;;  %893 = sbr.rel (%p1258_p13) target bundleno = 483 (0x1e3), region = 85  ;;  %954 = vrot.lane.b32.xlu0 (!%p1258_p13), %v916_v32, %s1569_s18 }
 0x157   : > { %v839_v9 = vadd.f32 %v1396_v5, %v454_v1  ;;  %v855_v10 = vadd.f32 %v1412_v6, %v470_v2  ;;  %v746_v11 = vpop.f32.mrb[13].mxu0  ;;  %v810_v12 = vpop.f32.mrb[13].mxu1 }
 0x158   : > { %v837_v15 = vadd.f32 %v746_v11, %v452_v3  ;;  %v853_v16 = vadd.f32 %v810_v12, %v468_v4  ;;  %v1397_v17 = vpop.f32.mrb[14].mxu0  ;;  %v1413_v18 = vpop.f32.mrb[14].mxu1  ;;  %956 = vrot.lane.b32.xlu1 (!%p1258_p13), %v917_v31, %s1569_s18  ;;  %v920_v36 = vld [vmem:[#allocation2 + $0xd0] sm:$0xff] (!%p1258_p13) }
 0x159   : > { %872 = vst.msk [vmem:[#allocation2 + $0x70] sm:$0xff] %vm857_vm1, %v839_v9  ;;  %888 = vst.msk [vmem:[#allocation2 + $0xf0] sm:$0xff] %vm857_vm1, %v855_v10  ;;  %v840_v19 = vadd.f32 %v1397_v17, %v455_v7  ;;  %v856_v20 = vadd.f32 %v1413_v18, %v471_v8  ;;  %v749_v21 = vpop.f32.mrb[15].mxu0  ;;  %v813_v22 = vpop.f32.mrb[15].mxu1  ;;  %v918_v34 = vld [vmem:[#allocation2 + $0xc0] sm:$0xff] (!%p1258_p13)  ;;  %v901_v9 = vld [vmem:[#allocation2 + $0x38] sm:$0xff] (!%p1258_p13) }
 0x15a   : > { %870 = vst.msk [vmem:[#allocation2 + $0x60] sm:$0xff] %vm857_vm1, %v837_v15  ;;  %886 = vst.msk [vmem:[#allocation2 + $0xe0] sm:$0xff] %vm857_vm1, %v853_v16  ;;  %v838_v23 = vadd.f32 %v749_v21, %v453_v13  ;;  %v854_v24 = vadd.f32 %v813_v22, %v469_v14  ;;  %958 = vrot.lane.b32.xlu0 (!%p1258_p13), %v918_v34, %s1569_s18  ;;  %v921_v35 = vld [vmem:[#allocation2 + $0xd8] sm:$0xff] (!%p1258_p13)  ;;  %v900_v10 = vld [vmem:[#allocation2 + $0x30] sm:$0xff] (!%p1258_p13) }
 0x15b   : > { %873 = vst.msk [vmem:[#allocation2 + $0x78] sm:$0xff] %vm857_vm1, %v840_v19  ;;  %889 = vst.msk [vmem:[#allocation2 + $0xf8] sm:$0xff] %vm857_vm1, %v856_v20  ;;  %v919_v33 = vld [vmem:[#allocation2 + $0xc8] sm:$0xff] (!%p1258_p13)  ;;  %v902_v21 = vld [vmem:[#allocation2 + $0x40] sm:$0xff] (!%p1258_p13) }
 0x15c   : > { %871 = vst.msk [vmem:[#allocation2 + $0x68] sm:$0xff] %vm857_vm1, %v838_v23  ;;  %887 = vst.msk [vmem:[#allocation2 + $0xe8] sm:$0xff] %vm857_vm1, %v854_v24  ;;  %960 = vrot.lane.b32.xlu1 (!%p1258_p13), %v919_v33, %s1569_s18  ;;  %v903_v20 = vld [vmem:[#allocation2 + $0x48] sm:$0xff] (!%p1258_p13)  ;;  %v905_v31 = vld [vmem:[#allocation2 + $0x58] sm:$0xff] (!%p1258_p13) }
 0x15d   : > { %v904_v32 = vld [vmem:[#allocation2 + $0x50] sm:$0xff] }
 0x15e   : > { %962 = vrot.lane.b32.xlu0 %v920_v36, %s1569_s18 }
 0x160   : > { %964 = vrot.lane.b32.xlu1 %v921_v35, %s1569_s18  ;;  %v924_v40 = vld [vmem:[#allocation2 + $0xf0] sm:$0xff] }
 0x161   : > { %v922_v38 = vld [vmem:[#allocation2 + $0xe0] sm:$0xff] }
 0x162   : > { %966 = vrot.lane.b32.xlu0 %v922_v38, %s1569_s18  ;;  %v925_v39 = vld [vmem:[#allocation2 + $0xf8] sm:$0xff] }
 0x163   : > { %v923_v37 = vld [vmem:[#allocation2 + $0xe8] sm:$0xff] }
 0x164   : > { %968 = vrot.lane.b32.xlu1 %v923_v37, %s1569_s18 }
 0x166   : > { %970 = vrot.lane.b32.xlu0 %v924_v40, %s1569_s18 }
 0x168   : > { %972 = vrot.lane.b32.xlu1 %v925_v39, %s1569_s18 }
 0x1bc   : > { %v947_v43 = vpop.permute.xlu1 %946  ;;  %v943_v44 = vpop.permute.xlu0 %942 }
 0x1bd   : > { %v992_v46 = vsel %vm857_vm1, %v896_v41, %v947_v43  ;;  %v990_v47 = vsel %vm857_vm1, %v894_v42, %v943_v44  ;;  %v907_v42 = vld [vmem:[#allocation2 + $0x68] sm:$0xff]  ;;  %v906_v43 = vld [vmem:[#allocation2 + $0x60] sm:$0xff] }
 0x1be   : > { %v1015_v50 = vmul.f32 %v1833_v45, %v992_v46  ;;  %v1013_v51 = vmul.f32 %v1833_v45, %v990_v47 }
 0x1c0   : > { %v949_v52 = vpop.permute.xlu1 %948  ;;  %v945_v53 = vpop.permute.xlu0 %944  ;;  %v1038_v61 = vadd.f32 %v1842_v54, %v1015_v50  ;;  %v1036_v62 = vadd.f32 %v1842_v54, %v1013_v51 }
 0x1c1   : > { %v993_v55 = vsel %vm857_vm1, %v897_v48, %v949_v52  ;;  %v991_v56 = vsel %vm857_vm1, %v895_v49, %v945_v53 }
 0x1c2   : > { %v1016_v57 = vmul.f32 %v1833_v45, %v993_v55  ;;  %v1014_v58 = vmul.f32 %v1833_v45, %v991_v56  ;;  %v909_v55 = vld [vmem:[#allocation2 + $0x78] sm:$0xff]  ;;  %v908_v56 = vld [vmem:[#allocation2 + $0x70] sm:$0xff] }
 0x1c4   : > { %v1039_v63 = vadd.f32 %v1842_v54, %v1016_v57  ;;  %v1037_v0 = vadd.f32 %v1842_v54, %v1014_v58  ;;  %v951_v2 = vpop.permute.xlu0 %950 }
 0x1c5   : > { %v994_v4 = vsel %vm857_vm1, %v898_v60, %v951_v2 }
 0x1c6   : > { %v953_v1 = vpop.permute.xlu1 %952  ;;  %v1303_v5 = vpack.c.bf16 %v1039_v63, %v1038_v61  ;;  %v1298_v6 = vpack.c.bf16 %v1037_v0, %v1036_v62  ;;  %v1017_v8 = vmul.f32 %v1833_v45, %v994_v4 }
 0x1c7   : > { %v995_v3 = vsel %vm857_vm1, %v899_v59, %v953_v1 }
 0x1c8   : > { %v1018_v7 = vmul.f32 %v1833_v45, %v995_v3  ;;  %1335 = vst [vmem:[%s1736_s7 + $0x8] sm:$0xff] %v1303_v5   ;;  %1299 = vst [vmem:[%s1736_s7] sm:$0xff] %v1298_v6   ;;  %v1040_v12 = vadd.f32 %v1842_v54, %v1017_v8  ;;  %v955_v14 = vpop.permute.xlu0 %954 }
 0x1c9   : > { %v996_v16 = vsel %vm857_vm1, %v900_v10, %v955_v14 }
 0x1ca   : > { %v1041_v11 = vadd.f32 %v1842_v54, %v1018_v7  ;;  %v957_v13 = vpop.permute.xlu1 %956  ;;  %v1019_v19 = vmul.f32 %v1833_v45, %v996_v16 }
 0x1cb   : > { %v997_v15 = vsel %vm857_vm1, %v901_v9, %v957_v13 }
 0x1cc   : > { %v1308_v17 = vpack.c.bf16 %v1041_v11, %v1040_v12  ;;  %v1020_v18 = vmul.f32 %v1833_v45, %v997_v15  ;;  %v1042_v23 = vadd.f32 %v1842_v54, %v1019_v19  ;;  %v959_v25 = vpop.permute.xlu0 %958 }
 0x1cd   : > { %v998_v27 = vsel %vm857_vm1, %v902_v21, %v959_v25 }
 0x1ce   : > { %1336 = vst [vmem:[%s1736_s7 + $0x10] sm:$0xff] %v1308_v17   ;;  %v1043_v22 = vadd.f32 %v1842_v54, %v1020_v18  ;;  %v961_v24 = vpop.permute.xlu1 %960  ;;  %v1021_v30 = vmul.f32 %v1833_v45, %v998_v27 }
 0x1cf   : > { %v999_v26 = vsel %vm857_vm1, %v903_v20, %v961_v24 }
 0x1d0   : > { %v1313_v28 = vpack.c.bf16 %v1043_v22, %v1042_v23  ;;  %v1022_v29 = vmul.f32 %v1833_v45, %v999_v26  ;;  %v1044_v34 = vadd.f32 %v1842_v54, %v1021_v30  ;;  %v963_v36 = vpop.permute.xlu0 %962 }
 0x1d1   : > { %v1000_v38 = vsel %vm857_vm1, %v904_v32, %v963_v36 }
 0x1d2   : > { %1337 = vst [vmem:[%s1736_s7 + $0x18] sm:$0xff] %v1313_v28   ;;  %v1045_v33 = vadd.f32 %v1842_v54, %v1022_v29  ;;  %v965_v35 = vpop.permute.xlu1 %964  ;;  %v1023_v41 = vmul.f32 %v1833_v45, %v1000_v38 }
 0x1d3   : > { %v1001_v37 = vsel %vm857_vm1, %v905_v31, %v965_v35 }
 0x1d4   : > { %v1318_v39 = vpack.c.bf16 %v1045_v33, %v1044_v34  ;;  %v1024_v40 = vmul.f32 %v1833_v45, %v1001_v37  ;;  %v1046_v46 = vadd.f32 %v1842_v54, %v1023_v41  ;;  %v967_v48 = vpop.permute.xlu0 %966 }
 0x1d5   : > { %v1002_v50 = vsel %vm857_vm1, %v906_v43, %v967_v48 }
 0x1d6   : > { %1338 = vst [vmem:[%s1736_s7 + $0x20] sm:$0xff] %v1318_v39   ;;  %v1047_v44 = vadd.f32 %v1842_v54, %v1024_v40  ;;  %v969_v47 = vpop.permute.xlu1 %968  ;;  %v1025_v53 = vmul.f32 %v1833_v45, %v1002_v50 }
 0x1d7   : > { %v1003_v49 = vsel %vm857_vm1, %v907_v42, %v969_v47 }
 0x1d8   : > { %v1323_v51 = vpack.c.bf16 %v1047_v44, %v1046_v46  ;;  %v1026_v52 = vmul.f32 %v1833_v45, %v1003_v49  ;;  %v1048_v58 = vadd.f32 %v1842_v54, %v1025_v53  ;;  %v971_v60 = vpop.permute.xlu0 %970 }
 0x1d9   : > { %v1004_v62 = vsel %vm857_vm1, %v908_v56, %v971_v60 }
 0x1da   : > { %1339 = vst [vmem:[%s1736_s7 + $0x28] sm:$0xff] %v1323_v51   ;;  %v1049_v57 = vadd.f32 %v1842_v54, %v1026_v52  ;;  %v973_v59 = vpop.permute.xlu1 %972  ;;  %v1027_v1 = vmul.f32 %v1833_v45, %v1004_v62 }
 0x1db   : > { %v1005_v61 = vsel %vm857_vm1, %v909_v55, %v973_v59 }
 0x1dc   : > { %v1328_v63 = vpack.c.bf16 %v1049_v57, %v1048_v58  ;;  %v1028_v0 = vmul.f32 %v1833_v45, %v1005_v61  ;;  %v1050_v3 = vadd.f32 %v1842_v54, %v1027_v1 }
 0x1de   : > { %1340 = vst [vmem:[%s1736_s7 + $0x30] sm:$0xff] %v1328_v63   ;;  %v1051_v2 = vadd.f32 %v1842_v54, %v1028_v0 }
 0x1e0   : > { %v1333_v4 = vpack.c.bf16 %v1051_v2, %v1050_v3 }
 0x1e2   : > { %1341 = vst [vmem:[%s1736_s7 + $0x38] sm:$0xff] %v1333_v4  }
 0x1e3 PF: > { %s14_s21 = sadd.s32 1, %s1566_s21   ;;  %s1922_s15 = smov %s1546_s16 }
 0x1e4   : > { %p11_p0 = scmp.ge.s32.totalorder %s14_s21, 6   ;;  %s1923_s16 = smov %s1646_s28 }
 0x1e5   : > { %s1924_s17 = smov %s1558_s19  ;;  %s1925_s18 = smov %s1562_s20 }
 0x1e6   : > { %s1926_s19 = smov %s1929_s22  ;;  %s1927_s20 = smov %s1933_s23 }
 0x1e7   :  { %13 = sbr.rel (!%p11_p0) target bundleno = 4 (0x4), region = 123 }

// kernel: h2gcn_forward.8
= control target key start
LH: loop header
LB: loop body
LE: loop exit
PB: predicated region body
PF: predicated region fallthrough
CT: control target
= control target key end

     0   :  { %s1953_s15 = smov 0   ;;  %s1955_s16 = smov 0   ;;  %s2415_s0 = inlined_call_operand.vmem [shape: bf16[2,256,256], index: 0, kind: input, shape index: {}]   ;;  %s2416_s1 = inlined_call_operand.vmem [shape: bf16[256,256], index: 1, kind: input, shape index: {}]   ;;  %s2417_s2 = inlined_call_operand.vmem [shape: f32[1,512], index: 2, kind: input, shape index: {}]   ;;  %s2418_s3 = inlined_call_operand.vmem [shape: f32[1,512], index: 3, kind: input, shape index: {}]   ;;  %s2419_s4 = inlined_call_operand.vmem [shape: bf16[256,512], index: 4, kind: output, shape index: {}]  }
   0x1   :  { %s1957_s17 = smov 0   ;;  %s1959_s18 = smov 0  }
   0x2   :  { %s1961_s19 = smov 0   ;;  %s1963_s20 = smov 0  }
   0x3   :  { %s1965_s21 = smov 0  }
   0x4 LB: > { %s23_s22 = sadd.s32 1, %s1916_s19  ;;  %s26_s23 = sadd.s32 1, %s1920_s20  ;;  %s1924_s21 = sphi %s1965_s21, %s14_s21   ;;  %s1920_s20 = sphi %s1963_s20, %s2425_s20   ;;  %s1916_s19 = sphi %s1961_s19, %s2424_s19   ;;  %s1912_s18 = sphi %s1959_s18, %s2423_s18   ;;  %s1908_s17 = sphi %s1957_s17, %s2422_s17   ;;  %s1904_s16 = sphi %s1955_s16, %s2421_s16   ;;  %s1900_s15 = sphi %s1953_s15, %s2420_s15  }
   0x5   : > { %p24_p0 = scmp.ge.s32.totalorder %s23_s22, 2  ;;  %p42_p1 = scmp.ne.s32.totalorder %s1904_s16, %s1900_s15 }
   0x6   : > { %p43_p2 = scmp.eq.s32.totalorder %s1924_s21, 0  ;;  %s35_s27 = sadd.s32 1, %s1904_s16 }
   0x7   : > { %s2427_s22 = smov (%p24_p0, %s23_s22), 0  ;;  %s2429_s23 = smov (!%p24_p0, %s26_s23), %s1920_s20 }
   0x8   : > { %p44_p3 = por %p43_p2, %p42_p1  ;;  %p28_p4 = scmp.ge.s32.totalorder %s2429_s23, 2 }
   0x9   : > { %s31_s24 = ssub.s32 %s1916_s19, %s2427_s22  ;;  %p1642_p6 = scmp.ge.s32.totalorder %s1924_s21, 4 }
   0xa   : > { %s2431_s23 = smov (%p28_p4, %s2429_s23), 0 }
   0xb   : > { %s30_s25 = ssub.s32 %s1920_s20, %s2431_s23  ;;  %168 = sbr.rel (%p1642_p6) target bundleno = 45 (0x2d), region = 24 }
   0xc   : > { %s32_s26 = sor.u32 %s31_s24, %s30_s25 }
   0xd   : > { %p33_p5 = scmp.eq.s32.totalorder %s32_s26, 0 }
   0xf   : > { %s2004_s28 = scalar_select %p33_p5, %s1904_s16, %s35_s27  }
  0x12   : > { %171 = sbr.rel (!%p44_p3) target bundleno = 45 (0x2d), region = 28  ;;  %s173_s29 = sand.u32 (%p44_p3), 1, %s1904_s16  }
  0x13   : > { %s1644_s30 = sshll.u32 (%p44_p3), %s1920_s20, 6  ;;  %s1643_s5 = sshll.u32 (%p44_p3), %s173_s29, 7 }
  0x14   : > { %s177_s6 = sadd.s32 (%p44_p3), %s1916_s19, %s1644_s30  ;;  %s2018_s11 = scalar_lea.vmem (%p44_p3), [#allocation3], %s1643_s5 }
  0x15   : > { %s1645_s7 = sshll.u32 (%p44_p3), %s177_s6, 2 }
  0x16   : > { %s2013_s10 = scalar_lea.vmem (%p44_p3), %s2415_s0, %s1645_s7 }
  0x17   : > { %v195_v0 = vld [vmem:[%s2013_s10] sm:$0xf] (%p44_p3)  ;;  %v197_v1 = vld [vmem:[%s2013_s10 + $0x8] sm:$0xf] (%p44_p3)  ;;  %v199_v2 = vld [vmem:[%s2013_s10 + $0x10] sm:$0xf] (%p44_p3) }
  0x18   : > { %196 = vst [vmem:[%s2018_s11] sm:$0xf] (%p44_p3), %v195_v0  ;;  %198 = vst [vmem:[%s2018_s11 + $0x4] sm:$0xf] (%p44_p3), %v197_v1  ;;  %v201_v3 = vld [vmem:[%s2013_s10 + $0x18] sm:$0xf] (%p44_p3) }
  0x19   : > { %200 = vst [vmem:[%s2018_s11 + $0x8] sm:$0xf] %v199_v2  ;;  %v203_v4 = vld [vmem:[%s2013_s10 + $0x20] sm:$0xf]  ;;  %v205_v5 = vld [vmem:[%s2013_s10 + $0x28] sm:$0xf] }
  0x1a   : > { %202 = vst [vmem:[%s2018_s11 + $0xc] sm:$0xf] %v201_v3  ;;  %204 = vst [vmem:[%s2018_s11 + $0x10] sm:$0xf] %v203_v4  ;;  %v207_v6 = vld [vmem:[%s2013_s10 + $0x30] sm:$0xf] }
  0x1b   : > { %206 = vst [vmem:[%s2018_s11 + $0x14] sm:$0xf] %v205_v5  ;;  %v209_v7 = vld [vmem:[%s2013_s10 + $0x38] sm:$0xf]  ;;  %v211_v8 = vld [vmem:[%s2013_s10 + $0x40] sm:$0xf] }
  0x1c   : > { %208 = vst [vmem:[%s2018_s11 + $0x18] sm:$0xf] %v207_v6  ;;  %210 = vst [vmem:[%s2018_s11 + $0x1c] sm:$0xf] %v209_v7  ;;  %v213_v9 = vld [vmem:[%s2013_s10 + $0x48] sm:$0xf] }
  0x1d   : > { %212 = vst [vmem:[%s2018_s11 + $0x20] sm:$0xf] %v211_v8  ;;  %v215_v10 = vld [vmem:[%s2013_s10 + $0x50] sm:$0xf]  ;;  %v217_v11 = vld [vmem:[%s2013_s10 + $0x58] sm:$0xf] }
  0x1e   : > { %214 = vst [vmem:[%s2018_s11 + $0x24] sm:$0xf] %v213_v9  ;;  %216 = vst [vmem:[%s2018_s11 + $0x28] sm:$0xf] %v215_v10  ;;  %v219_v12 = vld [vmem:[%s2013_s10 + $0x60] sm:$0xf] }
  0x1f   : > { %218 = vst [vmem:[%s2018_s11 + $0x2c] sm:$0xf] %v217_v11  ;;  %v221_v13 = vld [vmem:[%s2013_s10 + $0x68] sm:$0xf]  ;;  %v223_v14 = vld [vmem:[%s2013_s10 + $0x70] sm:$0xf] }
  0x20   : > { %220 = vst [vmem:[%s2018_s11 + $0x30] sm:$0xf] %v219_v12  ;;  %222 = vst [vmem:[%s2018_s11 + $0x34] sm:$0xf] %v221_v13  ;;  %v225_v15 = vld [vmem:[%s2013_s10 + $0x78] sm:$0xf] }
  0x21   : > { %224 = vst [vmem:[%s2018_s11 + $0x38] sm:$0xf] %v223_v14  ;;  %v227_v16 = vld [vmem:[%s2013_s10 + $0x80] sm:$0xf]  ;;  %v229_v17 = vld [vmem:[%s2013_s10 + $0x88] sm:$0xf] }
  0x22   : > { %226 = vst [vmem:[%s2018_s11 + $0x3c] sm:$0xf] %v225_v15  ;;  %228 = vst [vmem:[%s2018_s11 + $0x40] sm:$0xf] %v227_v16  ;;  %v231_v18 = vld [vmem:[%s2013_s10 + $0x90] sm:$0xf] }
  0x23   : > { %230 = vst [vmem:[%s2018_s11 + $0x44] sm:$0xf] %v229_v17  ;;  %v233_v19 = vld [vmem:[%s2013_s10 + $0x98] sm:$0xf]  ;;  %v235_v20 = vld [vmem:[%s2013_s10 + $0xa0] sm:$0xf] }
  0x24   : > { %232 = vst [vmem:[%s2018_s11 + $0x48] sm:$0xf] %v231_v18  ;;  %234 = vst [vmem:[%s2018_s11 + $0x4c] sm:$0xf] %v233_v19  ;;  %v237_v21 = vld [vmem:[%s2013_s10 + $0xa8] sm:$0xf] }
  0x25   : > { %236 = vst [vmem:[%s2018_s11 + $0x50] sm:$0xf] %v235_v20  ;;  %v239_v22 = vld [vmem:[%s2013_s10 + $0xb0] sm:$0xf]  ;;  %v241_v23 = vld [vmem:[%s2013_s10 + $0xb8] sm:$0xf] }
  0x26   : > { %238 = vst [vmem:[%s2018_s11 + $0x54] sm:$0xf] %v237_v21  ;;  %240 = vst [vmem:[%s2018_s11 + $0x58] sm:$0xf] %v239_v22  ;;  %v243_v24 = vld [vmem:[%s2013_s10 + $0xc0] sm:$0xf] }
  0x27   : > { %242 = vst [vmem:[%s2018_s11 + $0x5c] sm:$0xf] %v241_v23  ;;  %v245_v25 = vld [vmem:[%s2013_s10 + $0xc8] sm:$0xf]  ;;  %v247_v26 = vld [vmem:[%s2013_s10 + $0xd0] sm:$0xf] }
  0x28   : > { %244 = vst [vmem:[%s2018_s11 + $0x60] sm:$0xf] %v243_v24  ;;  %246 = vst [vmem:[%s2018_s11 + $0x64] sm:$0xf] %v245_v25  ;;  %v249_v27 = vld [vmem:[%s2013_s10 + $0xd8] sm:$0xf] }
  0x29   : > { %248 = vst [vmem:[%s2018_s11 + $0x68] sm:$0xf] %v247_v26  ;;  %v251_v28 = vld [vmem:[%s2013_s10 + $0xe0] sm:$0xf]  ;;  %v253_v29 = vld [vmem:[%s2013_s10 + $0xe8] sm:$0xf] }
  0x2a   : > { %250 = vst [vmem:[%s2018_s11 + $0x6c] sm:$0xf] %v249_v27  ;;  %252 = vst [vmem:[%s2018_s11 + $0x70] sm:$0xf] %v251_v28  ;;  %v255_v30 = vld [vmem:[%s2013_s10 + $0xf0] sm:$0xf] }
  0x2b   : > { %254 = vst [vmem:[%s2018_s11 + $0x74] sm:$0xf] %v253_v29  ;;  %v257_v31 = vld [vmem:[%s2013_s10 + $0xf8] sm:$0xf]  ;;  %256 = vst [vmem:[%s2018_s11 + $0x78] sm:$0xf] %v255_v30 }
  0x2c   : > { %258 = vst [vmem:[%s2018_s11 + $0x7c] sm:$0xf] %v257_v31 }
  0x2d PF: > { %p1646_p7 = scmp.ge.s32.totalorder %s1924_s21, 1  ;;  %p354_p8 = scmp.lt.s32.totalorder %s1924_s21, 5 }
  0x2f   : > { %p355_p9 = pnand %p1646_p7, %p354_p8 }
  0x30   : > { %s361_s12 = sand.u32 (!%p355_p9), 1, %s1900_s15   ;;  %s1648_s13 = sshll.u32 (!%p355_p9), %s1908_s17, 4 }
  0x31   : > { %358 = sbr.rel (%p355_p9) target bundleno = 437 (0x1b5), region = 73  ;;  %s1647_s14 = sshll.u32 (!%p355_p9), %s361_s12, 7 }
  0x32   : > { %p394_p10 = scmp.lt.s32.totalorder (!%p355_p9), %s1648_s13, 31  ;;  %s1651_s24 = sshll.u32 (!%p355_p9), %s1912_s18, 4 }
  0x33   : > { %p401_p11 = scmp.lt.s32.totalorder (!%p355_p9), %s1651_s24, 31  ;;  %s2096_s15 = scalar_lea.vmem (!%p355_p9), [#allocation3], %s1647_s14 }
  0x34   : > { %p1654_p12 = scmp.ne.s32.totalorder (!%p355_p9), %s1908_s17, 0 }
  0x38   : > { %s2433_s13 = smov (!%p394_p10, %s1648_s13), 31  ;;  %s2435_s24 = smov (!%p401_p11, %s1651_s24), 31 }
  0x39   : > { %s1722_s25 = sshll.u32 %s2433_s13, 3  ;;  %s1723_s30 = sshll.u32 %s2435_s24, 4  ;;  %v1926_v32 = vmov (!%p1654_p12), 0.0  }
  0x3a   : > { %s2089_s29 = scalar_lea.vmem %s2416_s1, %s1722_s25  ;;  %s2094_s7 = scalar_lea.vmem %s2419_s4, %s1723_s30  ;;  %412 = vst [vmem:[#allocation2] sm:$0xff] (!%p1654_p12), %v1926_v32  ;;  %413 = vst [vmem:[#allocation2 + $0x8] sm:$0xff] (!%p1654_p12), %v1926_v32 }
  0x3b   : > { %411 = sbr.rel (%p1654_p12) target bundleno = 90 (0x5a), region = 81  ;;  %414 = vst [vmem:[#allocation2 + $0x10] sm:$0xff] (!%p1654_p12), %v1926_v32  ;;  %415 = vst [vmem:[#allocation2 + $0x18] sm:$0xff] (!%p1654_p12), %v1926_v32 }
  0x3c   : > { %416 = vst [vmem:[#allocation2 + $0x20] sm:$0xff] (!%p1654_p12), %v1926_v32  ;;  %417 = vst [vmem:[#allocation2 + $0x28] sm:$0xff] (!%p1654_p12), %v1926_v32 }
  0x3d   : > { %418 = vst [vmem:[#allocation2 + $0x30] sm:$0xff] (!%p1654_p12), %v1926_v32  ;;  %419 = vst [vmem:[#allocation2 + $0x38] sm:$0xff] (!%p1654_p12), %v1926_v32 }
  0x3e   : > { %420 = vst [vmem:[#allocation2 + $0x40] sm:$0xff] (!%p1654_p12), %v1926_v32  ;;  %421 = vst [vmem:[#allocation2 + $0x48] sm:$0xff] (!%p1654_p12), %v1926_v32 }
  0x3f   : > { %422 = vst [vmem:[#allocation2 + $0x50] sm:$0xff] (!%p1654_p12), %v1926_v32  ;;  %423 = vst [vmem:[#allocation2 + $0x58] sm:$0xff] (!%p1654_p12), %v1926_v32 }
  0x40   : > { %424 = vst [vmem:[#allocation2 + $0x60] sm:$0xff] (!%p1654_p12), %v1926_v32  ;;  %425 = vst [vmem:[#allocation2 + $0x68] sm:$0xff] (!%p1654_p12), %v1926_v32 }
  0x41   : > { %426 = vst [vmem:[#allocation2 + $0x70] sm:$0xff] (!%p1654_p12), %v1926_v32  ;;  %427 = vst [vmem:[#allocation2 + $0x78] sm:$0xff] (!%p1654_p12), %v1926_v32 }
  0x42   : > { %428 = vst [vmem:[#allocation2 + $0x80] sm:$0xff] %v1926_v32  ;;  %429 = vst [vmem:[#allocation2 + $0x88] sm:$0xff] %v1926_v32 }
  0x43   : > { %430 = vst [vmem:[#allocation2 + $0x90] sm:$0xff] %v1926_v32  ;;  %431 = vst [vmem:[#allocation2 + $0x98] sm:$0xff] %v1926_v32 }
  0x44   : > { %432 = vst [vmem:[#allocation2 + $0xa0] sm:$0xff] %v1926_v32  ;;  %433 = vst [vmem:[#allocation2 + $0xa8] sm:$0xff] %v1926_v32 }
  0x45   : > { %434 = vst [vmem:[#allocation2 + $0xb0] sm:$0xff] %v1926_v32  ;;  %435 = vst [vmem:[#allocation2 + $0xb8] sm:$0xff] %v1926_v32 }
  0x46   : > { %436 = vst [vmem:[#allocation2 + $0xc0] sm:$0xff] %v1926_v32  ;;  %437 = vst [vmem:[#allocation2 + $0xc8] sm:$0xff] %v1926_v32 }
  0x47   : > { %438 = vst [vmem:[#allocation2 + $0xd0] sm:$0xff] %v1926_v32  ;;  %439 = vst [vmem:[#allocation2 + $0xd8] sm:$0xff] %v1926_v32 }
  0x48   : > { %440 = vst [vmem:[#allocation2 + $0xe0] sm:$0xff] %v1926_v32  ;;  %441 = vst [vmem:[#allocation2 + $0xe8] sm:$0xff] %v1926_v32 }
  0x49   : > { %442 = vst [vmem:[#allocation2 + $0xf0] sm:$0xff] %v1926_v32  ;;  %443 = vst [vmem:[#allocation2 + $0xf8] sm:$0xff] %v1926_v32 }
  0x4a   : > { %444 = vst [vmem:[#allocation2 + $0x100] sm:$0xff] %v1926_v32  ;;  %445 = vst [vmem:[#allocation2 + $0x108] sm:$0xff] %v1926_v32 }
  0x4b   : > { %446 = vst [vmem:[#allocation2 + $0x110] sm:$0xff] %v1926_v32  ;;  %447 = vst [vmem:[#allocation2 + $0x118] sm:$0xff] %v1926_v32 }
  0x4c   : > { %448 = vst [vmem:[#allocation2 + $0x120] sm:$0xff] %v1926_v32  ;;  %449 = vst [vmem:[#allocation2 + $0x128] sm:$0xff] %v1926_v32 }
  0x4d   : > { %450 = vst [vmem:[#allocation2 + $0x130] sm:$0xff] %v1926_v32  ;;  %451 = vst [vmem:[#allocation2 + $0x138] sm:$0xff] %v1926_v32 }
  0x4e   : > { %452 = vst [vmem:[#allocation2 + $0x140] sm:$0xff] %v1926_v32  ;;  %453 = vst [vmem:[#allocation2 + $0x148] sm:$0xff] %v1926_v32 }
  0x4f   : > { %454 = vst [vmem:[#allocation2 + $0x150] sm:$0xff] %v1926_v32  ;;  %455 = vst [vmem:[#allocation2 + $0x158] sm:$0xff] %v1926_v32 }
  0x50   : > { %456 = vst [vmem:[#allocation2 + $0x160] sm:$0xff] %v1926_v32  ;;  %457 = vst [vmem:[#allocation2 + $0x168] sm:$0xff] %v1926_v32 }
  0x51   : > { %458 = vst [vmem:[#allocation2 + $0x170] sm:$0xff] %v1926_v32  ;;  %459 = vst [vmem:[#allocation2 + $0x178] sm:$0xff] %v1926_v32 }
  0x52   : > { %460 = vst [vmem:[#allocation2 + $0x180] sm:$0xff] %v1926_v32  ;;  %461 = vst [vmem:[#allocation2 + $0x188] sm:$0xff] %v1926_v32 }
  0x53   : > { %462 = vst [vmem:[#allocation2 + $0x190] sm:$0xff] %v1926_v32  ;;  %463 = vst [vmem:[#allocation2 + $0x198] sm:$0xff] %v1926_v32 }
  0x54   : > { %464 = vst [vmem:[#allocation2 + $0x1a0] sm:$0xff] %v1926_v32  ;;  %465 = vst [vmem:[#allocation2 + $0x1a8] sm:$0xff] %v1926_v32 }
  0x55   : > { %466 = vst [vmem:[#allocation2 + $0x1b0] sm:$0xff] %v1926_v32  ;;  %467 = vst [vmem:[#allocation2 + $0x1b8] sm:$0xff] %v1926_v32 }
  0x56   : > { %468 = vst [vmem:[#allocation2 + $0x1c0] sm:$0xff] %v1926_v32  ;;  %469 = vst [vmem:[#allocation2 + $0x1c8] sm:$0xff] %v1926_v32 }
  0x57   : > { %470 = vst [vmem:[#allocation2 + $0x1d0] sm:$0xff] %v1926_v32  ;;  %471 = vst [vmem:[#allocation2 + $0x1d8] sm:$0xff] %v1926_v32 }
  0x58   : > { %472 = vst [vmem:[#allocation2 + $0x1e0] sm:$0xff] %v1926_v32  ;;  %473 = vst [vmem:[#allocation2 + $0x1e8] sm:$0xff] %v1926_v32 }
  0x59   : > { %474 = vst [vmem:[#allocation2 + $0x1f0] sm:$0xff] %v1926_v32  ;;  %475 = vst [vmem:[#allocation2 + $0x1f8] sm:$0xff] %v1926_v32 }
  0x5a PF: > { %v1830_v33 = vld [vmem:[%s2089_s29 + $0x4] ss:$8 sps:$4 sm:$0xff]   ;;  %v1832_v34 = vld [vmem:[%s2089_s29] ss:$8 sps:$4 sm:$0xff]   ;;  %v1927_v35 = vmov 0   ;;  %v1858_v54 = vld [vmem:[%s2096_s15 + $0x10] sm:$0xff]  }
  0x5b   : > { %796 = vmatprep.mubr.bf16.mxu0 %v1927_v35  ;;  %876 = vmatprep.mubr.bf16.mxu1 %v1927_v35  ;;  %v1833_v36 = vld [vmem:[%s2089_s29 + $0x14] ss:$8 sps:$4 sm:$0xff]   ;;  %v1835_v37 = vld [vmem:[%s2089_s29 + $0x10] ss:$8 sps:$4 sm:$0xff]   ;;  %v1836_v38 = vld [vmem:[%s2089_s29 + $0x24] ss:$8 sps:$4 sm:$0xff]  }
  0x5c   : > { %764 = vmatprep.subr.bf16.mxu0 %v1830_v33  ;;  %1756 = vmatprep.subr.bf16.mxu1 %v1830_v33  ;;  %v1838_v39 = vld [vmem:[%s2089_s29 + $0x20] ss:$8 sps:$4 sm:$0xff]   ;;  %v1839_v40 = vld [vmem:[%s2089_s29 + $0x34] ss:$8 sps:$4 sm:$0xff]   ;;  %v1841_v41 = vld [vmem:[%s2089_s29 + $0x30] ss:$8 sps:$4 sm:$0xff]  }
  0x5d   : > { %765 = vmatpush1.bf16.msra.mxu0 %v1832_v34  ;;  %1764 = vmatpush1.bf16.msra.mxu1 %v1832_v34  ;;  %v1842_v42 = vld [vmem:[%s2089_s29 + $0x44] ss:$8 sps:$4 sm:$0xff]   ;;  %v1844_v43 = vld [vmem:[%s2089_s29 + $0x40] ss:$8 sps:$4 sm:$0xff]   ;;  %v1845_v44 = vld [vmem:[%s2089_s29 + $0x54] ss:$8 sps:$4 sm:$0xff]  }
  0x5e   : > { %766 = vmatprep.subr.bf16.mxu0 %v1833_v36  ;;  %1757 = vmatprep.subr.bf16.mxu1 %v1833_v36  ;;  %v1847_v45 = vld [vmem:[%s2089_s29 + $0x50] ss:$8 sps:$4 sm:$0xff]   ;;  %v1848_v46 = vld [vmem:[%s2089_s29 + $0x64] ss:$8 sps:$4 sm:$0xff]   ;;  %v1850_v47 = vld [vmem:[%s2089_s29 + $0x60] ss:$8 sps:$4 sm:$0xff]  }
  0x5f   : > { %v1851_v48 = vld [vmem:[%s2089_s29 + $0x74] ss:$8 sps:$4 sm:$0xff]   ;;  %v1853_v49 = vld [vmem:[%s2089_s29 + $0x70] ss:$8 sps:$4 sm:$0xff]   ;;  %v1854_v50 = vld [vmem:[%s2096_s15] sm:$0xff]   ;;  %p1687_p13 = scmp.ne.s32.totalorder %s1908_s17, 1 }
  0x60   : > { %v1855_v51 = vld [vmem:[%s2096_s15 + $0x40] sm:$0xff]   ;;  %v1856_v52 = vld [vmem:[%s2096_s15 + $0x8] sm:$0xff]   ;;  %v1859_v55 = vld [vmem:[%s2096_s15 + $0x50] sm:$0xff]  }
  0x61   : > { %767 = vmatpush1.bf16.msra.mxu0 %v1835_v37  ;;  %1765 = vmatpush1.bf16.msra.mxu1 %v1835_v37  ;;  %v1857_v53 = vld [vmem:[%s2096_s15 + $0x48] sm:$0xff]   ;;  %v1860_v56 = vld [vmem:[%s2096_s15 + $0x18] sm:$0xff]   ;;  %v1862_v58 = vld [vmem:[%s2096_s15 + $0x20] sm:$0xff]  }
  0x62   : > { %768 = vmatprep.subr.bf16.mxu0 %v1836_v38  ;;  %1758 = vmatprep.subr.bf16.mxu1 %v1836_v38  ;;  %v1861_v57 = vld [vmem:[%s2096_s15 + $0x58] sm:$0xff]   ;;  %v1863_v59 = vld [vmem:[%s2096_s15 + $0x60] sm:$0xff]   ;;  %v1864_v60 = vld [vmem:[%s2096_s15 + $0x28] sm:$0xff]  }
  0x63   : > { %v1865_v61 = vld [vmem:[%s2096_s15 + $0x68] sm:$0xff]   ;;  %v1866_v62 = vld [vmem:[%s2096_s15 + $0x30] sm:$0xff]   ;;  %v1868_v0 = vld [vmem:[%s2096_s15 + $0x38] sm:$0xff]  }
  0x64   : > { %v1867_v63 = vld [vmem:[%s2096_s15 + $0x70] sm:$0xff]   ;;  %v1869_v1 = vld [vmem:[%s2096_s15 + $0x78] sm:$0xff]   ;;  %v476_v2 = vld [vmem:[#allocation2] sm:$0xff] }
  0x65   : > { %769 = vmatpush1.bf16.msra.mxu0 %v1838_v39  ;;  %1766 = vmatpush1.bf16.msra.mxu1 %v1838_v39  ;;  %v508_v3 = vld [vmem:[#allocation2 + $0x100] sm:$0xff]  ;;  %v477_v4 = vld [vmem:[#allocation2 + $0x8] sm:$0xff]  ;;  %v478_v8 = vld [vmem:[#allocation2 + $0x10] sm:$0xff] }
  0x66   : > { %770 = vmatprep.subr.bf16.mxu0 %v1839_v40  ;;  %1759 = vmatprep.subr.bf16.mxu1 %v1839_v40  ;;  %v509_v5 = vld [vmem:[#allocation2 + $0x108] sm:$0xff]  ;;  %v510_v9 = vld [vmem:[#allocation2 + $0x110] sm:$0xff]  ;;  %v479_v14 = vld [vmem:[#allocation2 + $0x18] sm:$0xff] }
  0x67   : > { %v511_v15 = vld [vmem:[#allocation2 + $0x118] sm:$0xff]  ;;  %v480_v26 = vld [vmem:[#allocation2 + $0x20] sm:$0xff]  ;;  %v481_v28 = vld [vmem:[#allocation2 + $0x28] sm:$0xff] }
  0x68   : > { %v512_v27 = vld [vmem:[#allocation2 + $0x120] sm:$0xff]  ;;  %v513_v29 = vld [vmem:[#allocation2 + $0x128] sm:$0xff]  ;;  %v482_v32 = vld [vmem:[#allocation2 + $0x30] sm:$0xff] }
  0x69   : > { %771 = vmatpush1.bf16.msra.mxu0 %v1841_v41  ;;  %1767 = vmatpush1.bf16.msra.mxu1 %v1841_v41  ;;  %v514_v33 = vld [vmem:[#allocation2 + $0x130] sm:$0xff]  ;;  %v483_v38 = vld [vmem:[#allocation2 + $0x38] sm:$0xff] }
  0x6a   : > { %772 = vmatprep.subr.bf16.mxu0 %v1842_v42  ;;  %1760 = vmatprep.subr.bf16.mxu1 %v1842_v42  ;;  %v515_v39 = vld [vmem:[#allocation2 + $0x138] sm:$0xff] }
  0x6d   : > { %773 = vmatpush1.bf16.msra.mxu0 %v1844_v43  ;;  %1768 = vmatpush1.bf16.msra.mxu1 %v1844_v43 }
  0x6e   : > { %774 = vmatprep.subr.bf16.mxu0 %v1845_v44  ;;  %1761 = vmatprep.subr.bf16.mxu1 %v1845_v44 }
  0x71   : > { %775 = vmatpush1.bf16.msra.mxu0 %v1847_v45  ;;  %1769 = vmatpush1.bf16.msra.mxu1 %v1847_v45 }
  0x72   : > { %776 = vmatprep.subr.bf16.mxu0 %v1848_v46  ;;  %1762 = vmatprep.subr.bf16.mxu1 %v1848_v46 }
  0x75   : > { %777 = vmatpush1.bf16.msra.mxu0 %v1850_v47  ;;  %1770 = vmatpush1.bf16.msra.mxu1 %v1850_v47 }
  0x76   : > { %778 = vmatprep.subr.bf16.mxu0 %v1851_v48  ;;  %1763 = vmatprep.subr.bf16.mxu1 %v1851_v48 }
  0x79   : > { %779 = vmatpush1.bf16.msra.mxu0 %v1853_v49  ;;  %1771 = vmatpush1.bf16.msra.mxu1 %v1853_v49 }
  0x7c   : > { %797 = vmatmul.mubr.bf16.vlgmr.msra.gmra.mrb[0].mxu0 %v1854_v50  ;;  %877 = vmatmul.mubr.bf16.vlgmr.msra.gmra.mrb[0].mxu1 %v1855_v51  ;;  %v484_v50 = vld [vmem:[#allocation2 + $0x40] sm:$0xff] }
  0x7d   : > { %806 = vmatprep.mubr.bf16.mxu0 %v1927_v35  ;;  %886 = vmatprep.mubr.bf16.mxu1 %v1927_v35  ;;  %v516_v51 = vld [vmem:[#allocation2 + $0x140] sm:$0xff] }
  0x84   : > { %807 = vmatmul.mubr.bf16.gmra.mrb[4].mxu0 %v1856_v52  ;;  %887 = vmatmul.mubr.bf16.gmra.mrb[4].mxu1 %v1857_v53  ;;  %v485_v52 = vld [vmem:[#allocation2 + $0x48] sm:$0xff] }
  0x85   : > { %816 = vmatprep.mubr.bf16.mxu0 %v1927_v35  ;;  %896 = vmatprep.mubr.bf16.mxu1 %v1927_v35  ;;  %v517_v53 = vld [vmem:[#allocation2 + $0x148] sm:$0xff] }
  0x8c   : > { %817 = vmatmul.mubr.bf16.gmra.mrb[8].mxu0 %v1858_v54  ;;  %897 = vmatmul.mubr.bf16.gmra.mrb[8].mxu1 %v1859_v55 }
  0x8d   : > { %826 = vmatprep.mubr.bf16.mxu0 %v1927_v35  ;;  %906 = vmatprep.mubr.bf16.mxu1 %v1927_v35 }
  0x94   : > { %827 = vmatmul.mubr.bf16.gmra.mrb[12].mxu0 %v1860_v56  ;;  %907 = vmatmul.mubr.bf16.gmra.mrb[12].mxu1 %v1861_v57  ;;  %v486_v56 = vld [vmem:[#allocation2 + $0x50] sm:$0xff] }
  0x95   : > { %836 = vmatprep.mubr.bf16.mxu0 %v1927_v35  ;;  %916 = vmatprep.mubr.bf16.mxu1 %v1927_v35  ;;  %v518_v57 = vld [vmem:[#allocation2 + $0x150] sm:$0xff] }
  0x9c   : > { %837 = vmatmul.mubr.bf16.gmra.mrb[16].mxu0 %v1862_v58  ;;  %917 = vmatmul.mubr.bf16.gmra.mrb[16].mxu1 %v1863_v59 }
  0x9d   : > { %846 = vmatprep.mubr.bf16.mxu0 %v1927_v35  ;;  %926 = vmatprep.mubr.bf16.mxu1 %v1927_v35 }
  0xa4   : > { %847 = vmatmul.mubr.bf16.gmra.mrb[20].mxu0 %v1864_v60  ;;  %927 = vmatmul.mubr.bf16.gmra.mrb[20].mxu1 %v1865_v61 }
  0xa5   : > { %856 = vmatprep.mubr.bf16.mxu0 %v1927_v35  ;;  %936 = vmatprep.mubr.bf16.mxu1 %v1927_v35 }
  0xac   : > { %857 = vmatmul.mubr.bf16.gmra.mrb[24].mxu0 %v1866_v62  ;;  %937 = vmatmul.mubr.bf16.gmra.mrb[24].mxu1 %v1867_v63  ;;  %v487_v62 = vld [vmem:[#allocation2 + $0x58] sm:$0xff] }
  0xad   : > { %866 = vmatprep.mubr.bf16.mxu0 %v1927_v35  ;;  %946 = vmatprep.mubr.bf16.mxu1 %v1927_v35  ;;  %v519_v63 = vld [vmem:[#allocation2 + $0x158] sm:$0xff] }
  0xb4   : > { %867 = vmatmul.mubr.bf16.gmra.mrb[28].mxu0 %v1868_v0  ;;  %947 = vmatmul.mubr.bf16.gmra.mrb[28].mxu1 %v1869_v1 }
 0x14f   : > { %v798_v6 = vpop.f32.mrb[0].mxu0  ;;  %v878_v7 = vpop.f32.mrb[0].mxu1 }
 0x150   : > { %v957_v10 = vadd.f32 %v798_v6, %v476_v2  ;;  %v989_v11 = vadd.f32 %v878_v7, %v508_v3  ;;  %v800_v12 = vpop.f32.mrb[1].mxu0  ;;  %v880_v13 = vpop.f32.mrb[1].mxu1 }
 0x151   : > { %v958_v16 = vadd.f32 %v800_v12, %v477_v4  ;;  %v990_v17 = vadd.f32 %v880_v13, %v509_v5  ;;  %v802_v18 = vpop.f32.mrb[2].mxu0  ;;  %v882_v19 = vpop.f32.mrb[2].mxu1  ;;  %v489_v12 = vld [vmem:[#allocation2 + $0x68] sm:$0xff] }
 0x152   : > { %1021 = vst [vmem:[#allocation2] sm:$0xff] %v957_v10  ;;  %1053 = vst [vmem:[#allocation2 + $0x100] sm:$0xff] %v989_v11  ;;  %v959_v20 = vadd.f32 %v802_v18, %v478_v8  ;;  %v991_v21 = vadd.f32 %v882_v19, %v510_v9  ;;  %v804_v22 = vpop.f32.mrb[3].mxu0  ;;  %v884_v23 = vpop.f32.mrb[3].mxu1  ;;  %v488_v10 = vld [vmem:[#allocation2 + $0x60] sm:$0xff]  ;;  %v521_v13 = vld [vmem:[#allocation2 + $0x168] sm:$0xff] }
 0x153   : > { %1022 = vst [vmem:[#allocation2 + $0x8] sm:$0xff] %v958_v16  ;;  %1054 = vst [vmem:[#allocation2 + $0x108] sm:$0xff] %v990_v17  ;;  %v960_v24 = vadd.f32 %v804_v22, %v479_v14  ;;  %v992_v25 = vadd.f32 %v884_v23, %v511_v15  ;;  %v520_v11 = vld [vmem:[#allocation2 + $0x160] sm:$0xff]  ;;  %v490_v16 = vld [vmem:[#allocation2 + $0x70] sm:$0xff] }
 0x154   : > { %1023 = vst [vmem:[#allocation2 + $0x10] sm:$0xff] %v959_v20  ;;  %1055 = vst [vmem:[#allocation2 + $0x110] sm:$0xff] %v991_v21  ;;  %v522_v17 = vld [vmem:[#allocation2 + $0x170] sm:$0xff]  ;;  %v491_v22 = vld [vmem:[#allocation2 + $0x78] sm:$0xff] }
 0x155   : > { %1024 = vst [vmem:[#allocation2 + $0x18] sm:$0xff] %v960_v24  ;;  %1056 = vst [vmem:[#allocation2 + $0x118] sm:$0xff] %v992_v25  ;;  %v523_v23 = vld [vmem:[#allocation2 + $0x178] sm:$0xff] }
 0x157   : > { %v808_v30 = vpop.f32.mrb[4].mxu0  ;;  %v888_v31 = vpop.f32.mrb[4].mxu1 }
 0x158   : > { %v961_v34 = vadd.f32 %v808_v30, %v480_v26  ;;  %v993_v35 = vadd.f32 %v888_v31, %v512_v27  ;;  %v810_v36 = vpop.f32.mrb[5].mxu0  ;;  %v890_v37 = vpop.f32.mrb[5].mxu1 }
 0x159   : > { %v962_v40 = vadd.f32 %v810_v36, %v481_v28  ;;  %v994_v41 = vadd.f32 %v890_v37, %v513_v29  ;;  %v812_v42 = vpop.f32.mrb[6].mxu0  ;;  %v892_v43 = vpop.f32.mrb[6].mxu1  ;;  %v493_v36 = vld [vmem:[#allocation2 + $0x88] sm:$0xff] }
 0x15a   : > { %1025 = vst [vmem:[#allocation2 + $0x20] sm:$0xff] %v961_v34  ;;  %1057 = vst [vmem:[#allocation2 + $0x120] sm:$0xff] %v993_v35  ;;  %v963_v44 = vadd.f32 %v812_v42, %v482_v32  ;;  %v995_v45 = vadd.f32 %v892_v43, %v514_v33  ;;  %v814_v46 = vpop.f32.mrb[7].mxu0  ;;  %v894_v47 = vpop.f32.mrb[7].mxu1  ;;  %v492_v34 = vld [vmem:[#allocation2 + $0x80] sm:$0xff]  ;;  %v525_v37 = vld [vmem:[#allocation2 + $0x188] sm:$0xff] }
 0x15b   : > { %1026 = vst [vmem:[#allocation2 + $0x28] sm:$0xff] %v962_v40  ;;  %1058 = vst [vmem:[#allocation2 + $0x128] sm:$0xff] %v994_v41  ;;  %v964_v48 = vadd.f32 %v814_v46, %v483_v38  ;;  %v996_v49 = vadd.f32 %v894_v47, %v515_v39  ;;  %v524_v35 = vld [vmem:[#allocation2 + $0x180] sm:$0xff]  ;;  %v494_v40 = vld [vmem:[#allocation2 + $0x90] sm:$0xff] }
 0x15c   : > { %1027 = vst [vmem:[#allocation2 + $0x30] sm:$0xff] %v963_v44  ;;  %1059 = vst [vmem:[#allocation2 + $0x130] sm:$0xff] %v995_v45  ;;  %v526_v41 = vld [vmem:[#allocation2 + $0x190] sm:$0xff]  ;;  %v495_v46 = vld [vmem:[#allocation2 + $0x98] sm:$0xff] }
 0x15d   : > { %1028 = vst [vmem:[#allocation2 + $0x38] sm:$0xff] %v964_v48  ;;  %1060 = vst [vmem:[#allocation2 + $0x138] sm:$0xff] %v996_v49  ;;  %v527_v47 = vld [vmem:[#allocation2 + $0x198] sm:$0xff] }
 0x15f   : > { %v818_v54 = vpop.f32.mrb[8].mxu0  ;;  %v898_v55 = vpop.f32.mrb[8].mxu1 }
 0x160   : > { %v965_v58 = vadd.f32 %v818_v54, %v484_v50  ;;  %v997_v59 = vadd.f32 %v898_v55, %v516_v51  ;;  %v820_v60 = vpop.f32.mrb[9].mxu0  ;;  %v900_v61 = vpop.f32.mrb[9].mxu1 }
 0x161   : > { %v966_v0 = vadd.f32 %v820_v60, %v485_v52  ;;  %v998_v1 = vadd.f32 %v900_v61, %v517_v53  ;;  %v822_v2 = vpop.f32.mrb[10].mxu0  ;;  %v902_v3 = vpop.f32.mrb[10].mxu1  ;;  %v497_v60 = vld [vmem:[#allocation2 + $0xa8] sm:$0xff] }
 0x162   : > { %1029 = vst [vmem:[#allocation2 + $0x40] sm:$0xff] %v965_v58  ;;  %1061 = vst [vmem:[#allocation2 + $0x140] sm:$0xff] %v997_v59  ;;  %v967_v4 = vadd.f32 %v822_v2, %v486_v56  ;;  %v999_v5 = vadd.f32 %v902_v3, %v518_v57  ;;  %v824_v6 = vpop.f32.mrb[11].mxu0  ;;  %v904_v7 = vpop.f32.mrb[11].mxu1  ;;  %v496_v58 = vld [vmem:[#allocation2 + $0xa0] sm:$0xff]  ;;  %v529_v61 = vld [vmem:[#allocation2 + $0x1a8] sm:$0xff] }
 0x163   : > { %1030 = vst [vmem:[#allocation2 + $0x48] sm:$0xff] %v966_v0  ;;  %1062 = vst [vmem:[#allocation2 + $0x148] sm:$0xff] %v998_v1  ;;  %v968_v8 = vadd.f32 %v824_v6, %v487_v62  ;;  %v1000_v9 = vadd.f32 %v904_v7, %v519_v63  ;;  %v528_v59 = vld [vmem:[#allocation2 + $0x1a0] sm:$0xff]  ;;  %v498_v0 = vld [vmem:[#allocation2 + $0xb0] sm:$0xff] }
 0x164   : > { %1031 = vst [vmem:[#allocation2 + $0x50] sm:$0xff] %v967_v4  ;;  %1063 = vst [vmem:[#allocation2 + $0x150] sm:$0xff] %v999_v5  ;;  %v530_v1 = vld [vmem:[#allocation2 + $0x1b0] sm:$0xff]  ;;  %v499_v6 = vld [vmem:[#allocation2 + $0xb8] sm:$0xff] }
 0x165   : > { %1032 = vst [vmem:[#allocation2 + $0x58] sm:$0xff] %v968_v8  ;;  %1064 = vst [vmem:[#allocation2 + $0x158] sm:$0xff] %v1000_v9  ;;  %v531_v7 = vld [vmem:[#allocation2 + $0x1b8] sm:$0xff] }
 0x167   : > { %v828_v14 = vpop.f32.mrb[12].mxu0  ;;  %v908_v15 = vpop.f32.mrb[12].mxu1 }
 0x168   : > { %v969_v18 = vadd.f32 %v828_v14, %v488_v10  ;;  %v1001_v19 = vadd.f32 %v908_v15, %v520_v11  ;;  %v830_v20 = vpop.f32.mrb[13].mxu0  ;;  %v910_v21 = vpop.f32.mrb[13].mxu1 }
 0x169   : > { %v970_v24 = vadd.f32 %v830_v20, %v489_v12  ;;  %v1002_v25 = vadd.f32 %v910_v21, %v521_v13  ;;  %v832_v26 = vpop.f32.mrb[14].mxu0  ;;  %v912_v27 = vpop.f32.mrb[14].mxu1  ;;  %v501_v20 = vld [vmem:[#allocation2 + $0xc8] sm:$0xff] }
 0x16a   : > { %1033 = vst [vmem:[#allocation2 + $0x60] sm:$0xff] %v969_v18  ;;  %1065 = vst [vmem:[#allocation2 + $0x160] sm:$0xff] %v1001_v19  ;;  %v971_v28 = vadd.f32 %v832_v26, %v490_v16  ;;  %v1003_v29 = vadd.f32 %v912_v27, %v522_v17  ;;  %v834_v30 = vpop.f32.mrb[15].mxu0  ;;  %v914_v31 = vpop.f32.mrb[15].mxu1  ;;  %v500_v18 = vld [vmem:[#allocation2 + $0xc0] sm:$0xff]  ;;  %v533_v21 = vld [vmem:[#allocation2 + $0x1c8] sm:$0xff] }
 0x16b   : > { %1034 = vst [vmem:[#allocation2 + $0x68] sm:$0xff] %v970_v24  ;;  %1066 = vst [vmem:[#allocation2 + $0x168] sm:$0xff] %v1002_v25  ;;  %v972_v32 = vadd.f32 %v834_v30, %v491_v22  ;;  %v1004_v33 = vadd.f32 %v914_v31, %v523_v23  ;;  %v532_v19 = vld [vmem:[#allocation2 + $0x1c0] sm:$0xff]  ;;  %v502_v24 = vld [vmem:[#allocation2 + $0xd0] sm:$0xff] }
 0x16c   : > { %1035 = vst [vmem:[#allocation2 + $0x70] sm:$0xff] %v971_v28  ;;  %1067 = vst [vmem:[#allocation2 + $0x170] sm:$0xff] %v1003_v29  ;;  %v534_v25 = vld [vmem:[#allocation2 + $0x1d0] sm:$0xff]  ;;  %v503_v30 = vld [vmem:[#allocation2 + $0xd8] sm:$0xff] }
 0x16d   : > { %1036 = vst [vmem:[#allocation2 + $0x78] sm:$0xff] %v972_v32  ;;  %1068 = vst [vmem:[#allocation2 + $0x178] sm:$0xff] %v1004_v33  ;;  %v535_v31 = vld [vmem:[#allocation2 + $0x1d8] sm:$0xff] }
 0x16f   : > { %v838_v38 = vpop.f32.mrb[16].mxu0  ;;  %v918_v39 = vpop.f32.mrb[16].mxu1 }
 0x170   : > { %v973_v42 = vadd.f32 %v838_v38, %v492_v34  ;;  %v1005_v43 = vadd.f32 %v918_v39, %v524_v35  ;;  %v840_v44 = vpop.f32.mrb[17].mxu0  ;;  %v920_v45 = vpop.f32.mrb[17].mxu1 }
 0x171   : > { %v974_v48 = vadd.f32 %v840_v44, %v493_v36  ;;  %v1006_v49 = vadd.f32 %v920_v45, %v525_v37  ;;  %v842_v50 = vpop.f32.mrb[18].mxu0  ;;  %v922_v51 = vpop.f32.mrb[18].mxu1  ;;  %v505_v44 = vld [vmem:[#allocation2 + $0xe8] sm:$0xff] }
 0x172   : > { %1037 = vst [vmem:[#allocation2 + $0x80] sm:$0xff] %v973_v42  ;;  %1069 = vst [vmem:[#allocation2 + $0x180] sm:$0xff] %v1005_v43  ;;  %v975_v52 = vadd.f32 %v842_v50, %v494_v40  ;;  %v1007_v53 = vadd.f32 %v922_v51, %v526_v41  ;;  %v844_v54 = vpop.f32.mrb[19].mxu0  ;;  %v924_v55 = vpop.f32.mrb[19].mxu1  ;;  %v504_v42 = vld [vmem:[#allocation2 + $0xe0] sm:$0xff]  ;;  %v537_v45 = vld [vmem:[#allocation2 + $0x1e8] sm:$0xff] }
 0x173   : > { %1038 = vst [vmem:[#allocation2 + $0x88] sm:$0xff] %v974_v48  ;;  %1070 = vst [vmem:[#allocation2 + $0x188] sm:$0xff] %v1006_v49  ;;  %v976_v56 = vadd.f32 %v844_v54, %v495_v46  ;;  %v1008_v57 = vadd.f32 %v924_v55, %v527_v47  ;;  %v536_v43 = vld [vmem:[#allocation2 + $0x1e0] sm:$0xff]  ;;  %v506_v48 = vld [vmem:[#allocation2 + $0xf0] sm:$0xff] }
 0x174   : > { %1039 = vst [vmem:[#allocation2 + $0x90] sm:$0xff] %v975_v52  ;;  %1071 = vst [vmem:[#allocation2 + $0x190] sm:$0xff] %v1007_v53  ;;  %v538_v49 = vld [vmem:[#allocation2 + $0x1f0] sm:$0xff]  ;;  %v507_v54 = vld [vmem:[#allocation2 + $0xf8] sm:$0xff] }
 0x175   : > { %1040 = vst [vmem:[#allocation2 + $0x98] sm:$0xff] %v976_v56  ;;  %1072 = vst [vmem:[#allocation2 + $0x198] sm:$0xff] %v1008_v57  ;;  %v539_v55 = vld [vmem:[#allocation2 + $0x1f8] sm:$0xff] }
 0x177   : > { %v848_v62 = vpop.f32.mrb[20].mxu0  ;;  %v928_v63 = vpop.f32.mrb[20].mxu1 }
 0x178   : > { %v977_v2 = vadd.f32 %v848_v62, %v496_v58  ;;  %v1009_v3 = vadd.f32 %v928_v63, %v528_v59  ;;  %v850_v4 = vpop.f32.mrb[21].mxu0  ;;  %v930_v5 = vpop.f32.mrb[21].mxu1 }
 0x179   : > { %v978_v8 = vadd.f32 %v850_v4, %v497_v60  ;;  %v1010_v9 = vadd.f32 %v930_v5, %v529_v61  ;;  %v852_v10 = vpop.f32.mrb[22].mxu0  ;;  %v932_v11 = vpop.f32.mrb[22].mxu1  ;;  %v1153_v4 = vld [vmem:[%s2417_s2] sm:$0xf] (!%p1687_p13) }
 0x17a   : > { %1041 = vst [vmem:[#allocation2 + $0xa0] sm:$0xff] %v977_v2  ;;  %1073 = vst [vmem:[#allocation2 + $0x1a0] sm:$0xff] %v1009_v3  ;;  %v979_v12 = vadd.f32 %v852_v10, %v498_v0  ;;  %v1011_v13 = vadd.f32 %v932_v11, %v530_v1  ;;  %v854_v14 = vpop.f32.mrb[23].mxu0  ;;  %v934_v15 = vpop.f32.mrb[23].mxu1  ;;  %v1155_v2 = vlaneseq (!%p1687_p13)  ;;  %v1239_v5 = vld [vmem:[%s2418_s3] sm:$0xf] (!%p1687_p13) }
 0x17b   : > { %1042 = vst [vmem:[#allocation2 + $0xa8] sm:$0xff] %v978_v8  ;;  %1074 = vst [vmem:[#allocation2 + $0x1a8] sm:$0xff] %v1010_v9  ;;  %v980_v16 = vadd.f32 %v854_v14, %v499_v6  ;;  %v1012_v17 = vadd.f32 %v934_v15, %v531_v7  ;;  %v1089_v6 = vld [vmem:[#allocation2] sm:$0xff] (!%p1687_p13)  ;;  %v1090_v7 = vld [vmem:[#allocation2 + $0x8] sm:$0xff] (!%p1687_p13) }
 0x17c   : > { %1043 = vst [vmem:[#allocation2 + $0xb0] sm:$0xff] %v979_v12  ;;  %1075 = vst [vmem:[#allocation2 + $0x1b0] sm:$0xff] %v1011_v13  ;;  %v1156_v3 = vshrl.u32 (!%p1687_p13), %v1155_v2, 7  ;;  %v1121_v12 = vld [vmem:[#allocation2 + $0x100] sm:$0xff] (!%p1687_p13)  ;;  %v1091_v13 = vld [vmem:[#allocation2 + $0x10] sm:$0xff] (!%p1687_p13) }
 0x17d   : > { %1044 = vst [vmem:[#allocation2 + $0xb8] sm:$0xff] %v980_v16  ;;  %1076 = vst [vmem:[#allocation2 + $0x1b8] sm:$0xff] %v1012_v17  ;;  %v1092_v14 = vld [vmem:[#allocation2 + $0x18] sm:$0xff] (!%p1687_p13) }
 0x17e   : > { %v1157_v8 = vsub.s32 (!%p1687_p13), 0, %v1156_v3  ;;  %v1161_v9 = vsub.s32 (!%p1687_p13), 1, %v1156_v3  ;;  %v1165_v10 = vsub.s32 (!%p1687_p13), 2, %v1156_v3  ;;  %v1169_v11 = vsub.s32 (!%p1687_p13), 3, %v1156_v3 }
 0x17f   : > { %v858_v22 = vpop.f32.mrb[24].mxu0  ;;  %v938_v23 = vpop.f32.mrb[24].mxu1 }
 0x180   : > { %v981_v26 = vadd.f32 %v858_v22, %v500_v18  ;;  %v1013_v27 = vadd.f32 %v938_v23, %v532_v19  ;;  %v860_v28 = vpop.f32.mrb[25].mxu0  ;;  %v940_v29 = vpop.f32.mrb[25].mxu1  ;;  %v2218_v15 = vrot.slane (!%p1687_p13), %v1153_v4, %v1157_v8  ;;  %v2220_v16 = vrot.slane (!%p1687_p13), %v1153_v4, %v1161_v9  ;;  %v1122_v19 = vld [vmem:[#allocation2 + $0x108] sm:$0xff] (!%p1687_p13) }
 0x181   : > { %v982_v32 = vadd.f32 %v860_v28, %v501_v20  ;;  %v1014_v33 = vadd.f32 %v940_v29, %v533_v21  ;;  %v862_v34 = vpop.f32.mrb[26].mxu0  ;;  %v942_v35 = vpop.f32.mrb[26].mxu1  ;;  %v2222_v17 = vrot.slane (!%p1687_p13), %v1239_v5, %v1157_v8  ;;  %v2224_v18 = vrot.slane (!%p1687_p13), %v1239_v5, %v1161_v9  ;;  %v1123_v20 = vld [vmem:[#allocation2 + $0x110] sm:$0xff] (!%p1687_p13)  ;;  %v1124_v21 = vld [vmem:[#allocation2 + $0x118] sm:$0xff] (!%p1687_p13) }
 0x182   : > { %1045 = vst [vmem:[#allocation2 + $0xc0] sm:$0xff] %v981_v26  ;;  %1077 = vst [vmem:[#allocation2 + $0x1c0] sm:$0xff] %v1013_v27  ;;  %v983_v36 = vadd.f32 %v862_v34, %v502_v24  ;;  %v1015_v37 = vadd.f32 %v942_v35, %v534_v25  ;;  %v864_v38 = vpop.f32.mrb[27].mxu0  ;;  %v944_v39 = vpop.f32.mrb[27].mxu1  ;;  %v2226_v22 = vrot.slane (!%p1687_p13), %v1153_v4, %v1165_v10  ;;  %v1093_v34 = vld [vmem:[#allocation2 + $0x20] sm:$0xff] (!%p1687_p13)  ;;  %v1094_v35 = vld [vmem:[#allocation2 + $0x28] sm:$0xff] (!%p1687_p13) }
 0x183   : > { %1046 = vst [vmem:[#allocation2 + $0xc8] sm:$0xff] %v982_v32  ;;  %1078 = vst [vmem:[#allocation2 + $0x1c8] sm:$0xff] %v1014_v33  ;;  %v984_v40 = vadd.f32 %v864_v38, %v503_v30  ;;  %v1016_v41 = vadd.f32 %v944_v39, %v535_v31  ;;  %v2228_v23 = vrot.slane (!%p1687_p13), %v1153_v4, %v1169_v11  ;;  %v1129_v4 = vld [vmem:[#allocation2 + $0x140] sm:$0xff] (!%p1687_p13) }
 0x184   : > { %1047 = vst [vmem:[#allocation2 + $0xd0] sm:$0xff] %v983_v36  ;;  %1079 = vst [vmem:[#allocation2 + $0x1d0] sm:$0xff] %v1015_v37  ;;  %v2230_v24 = vrot.slane (!%p1687_p13), %v1239_v5, %v1165_v10  ;;  %v2232_v25 = vrot.slane (!%p1687_p13), %v1239_v5, %v1169_v11  ;;  %v1175_v26 = vmul.f32 (!%p1687_p13), %v2218_v15, %v1089_v6  ;;  %v1130_v5 = vld [vmem:[#allocation2 + $0x148] sm:$0xff] (!%p1687_p13)  ;;  %v1099_v10 = vld [vmem:[#allocation2 + $0x50] sm:$0xff] (!%p1687_p13) }
 0x185   : > { %1048 = vst [vmem:[#allocation2 + $0xd8] sm:$0xff] %v984_v40  ;;  %1080 = vst [vmem:[#allocation2 + $0x1d8] sm:$0xff] %v1016_v41  ;;  %v1176_v27 = vmul.f32 (!%p1687_p13), %v2220_v16, %v1090_v7  ;;  %v1179_v28 = vmul.f32 (!%p1687_p13), %v2218_v15, %v1091_v13  ;;  %v1180_v29 = vmul.f32 (!%p1687_p13), %v2220_v16, %v1092_v14  ;;  %v1125_v40 = vld [vmem:[#allocation2 + $0x120] sm:$0xff] (!%p1687_p13)  ;;  %v1126_v41 = vld [vmem:[#allocation2 + $0x128] sm:$0xff] (!%p1687_p13) }
 0x186   : > { %v1177_v30 = vmul.f32 (!%p1687_p13), %v2226_v22, %v1121_v12  ;;  %v1178_v31 = vmul.f32 (!%p1687_p13), %v2228_v23, %v1122_v19  ;;  %v1181_v32 = vmul.f32 (!%p1687_p13), %v2226_v22, %v1123_v20  ;;  %v1182_v33 = vmul.f32 (!%p1687_p13), %v2228_v23, %v1124_v21  ;;  %v1100_v11 = vld [vmem:[#allocation2 + $0x58] sm:$0xff] (!%p1687_p13)  ;;  %v1131_v20 = vld [vmem:[#allocation2 + $0x150] sm:$0xff] (!%p1687_p13) }
 0x187   : > { %v868_v46 = vpop.f32.mrb[28].mxu0  ;;  %v948_v47 = vpop.f32.mrb[28].mxu1  ;;  %1088 = sbr.rel (%p1687_p13) target bundleno = 437 (0x1b5), region = 85  ;;  %v1261_v36 = vadd.f32 (!%p1687_p13), %v2222_v17, %v1175_v26  ;;  %v1262_v37 = vadd.f32 (!%p1687_p13), %v2224_v18, %v1176_v27  ;;  %v1265_v38 = vadd.f32 (!%p1687_p13), %v2222_v17, %v1179_v28  ;;  %v1266_v39 = vadd.f32 (!%p1687_p13), %v2224_v18, %v1180_v29  ;;  %v1132_v21 = vld [vmem:[#allocation2 + $0x158] sm:$0xff] (!%p1687_p13) }
 0x188   : > { %v985_v50 = vadd.f32 %v868_v46, %v504_v42  ;;  %v1017_v51 = vadd.f32 %v948_v47, %v536_v43  ;;  %v870_v52 = vpop.f32.mrb[29].mxu0  ;;  %v950_v53 = vpop.f32.mrb[29].mxu1  ;;  %v1263_v42 = vadd.f32 (!%p1687_p13), %v2230_v24, %v1177_v30  ;;  %v1264_v43 = vadd.f32 (!%p1687_p13), %v2232_v25, %v1178_v31  ;;  %v1095_v46 = vld [vmem:[#allocation2 + $0x30] sm:$0xff] (!%p1687_p13)  ;;  %v1096_v47 = vld [vmem:[#allocation2 + $0x38] sm:$0xff] (!%p1687_p13)  ;;  %v1101_v30 = vld [vmem:[#allocation2 + $0x60] sm:$0xff] (!%p1687_p13) }
 0x189   : > { %v986_v56 = vadd.f32 %v870_v52, %v505_v44  ;;  %v1018_v57 = vadd.f32 %v950_v53, %v537_v45  ;;  %v872_v58 = vpop.f32.mrb[30].mxu0  ;;  %v952_v59 = vpop.f32.mrb[30].mxu1  ;;  %v1267_v44 = vadd.f32 (!%p1687_p13), %v2230_v24, %v1181_v32  ;;  %v1268_v45 = vadd.f32 (!%p1687_p13), %v2232_v25, %v1182_v33  ;;  %v1127_v52 = vld [vmem:[#allocation2 + $0x130] sm:$0xff] (!%p1687_p13)  ;;  %v1128_v53 = vld [vmem:[#allocation2 + $0x138] sm:$0xff] (!%p1687_p13) }
 0x18a   : > { %1049 = vst [vmem:[#allocation2 + $0xe0] sm:$0xff] %v985_v50  ;;  %1081 = vst [vmem:[#allocation2 + $0x1e0] sm:$0xff] %v1017_v51  ;;  %v987_v60 = vadd.f32 %v872_v58, %v506_v48  ;;  %v1019_v61 = vadd.f32 %v952_v59, %v538_v49  ;;  %v874_v62 = vpop.f32.mrb[31].mxu0  ;;  %v954_v63 = vpop.f32.mrb[31].mxu1  ;;  %v1724_v48 = vpack.c.bf16 (!%p1687_p13), %v1262_v37, %v1261_v36  ;;  %v1097_v58 = vld [vmem:[#allocation2 + $0x40] sm:$0xff] (!%p1687_p13) }
 0x18b   : > { %1050 = vst [vmem:[#allocation2 + $0xe8] sm:$0xff] %v986_v56  ;;  %1082 = vst [vmem:[#allocation2 + $0x1e8] sm:$0xff] %v1018_v57  ;;  %v988_v0 = vadd.f32 %v874_v62, %v507_v54  ;;  %v1020_v1 = vadd.f32 %v954_v63, %v539_v55  ;;  %v1726_v49 = vpack.c.bf16 (!%p1687_p13), %v1266_v39, %v1265_v38  ;;  %v1098_v63 = vld [vmem:[#allocation2 + $0x48] sm:$0xff] (!%p1687_p13) }
 0x18c   : > { %1051 = vst [vmem:[#allocation2 + $0xf0] sm:$0xff] %v987_v60  ;;  %1083 = vst [vmem:[#allocation2 + $0x1f0] sm:$0xff] %v1019_v61  ;;  %v1183_v50 = vmul.f32 (!%p1687_p13), %v2218_v15, %v1093_v34  ;;  %v1184_v51 = vmul.f32 (!%p1687_p13), %v2220_v16, %v1094_v35  ;;  %v1725_v54 = vpack.c.bf16 (!%p1687_p13), %v1264_v43, %v1263_v42  ;;  %v1102_v35 = vld [vmem:[#allocation2 + $0x68] sm:$0xff] (!%p1687_p13) }
 0x18d   : > { %1052 = vst [vmem:[#allocation2 + $0xf8] sm:$0xff] %v988_v0  ;;  %1084 = vst [vmem:[#allocation2 + $0x1f8] sm:$0xff] %v1020_v1  ;;  %v1727_v55 = vpack.c.bf16 (!%p1687_p13), %v1268_v45, %v1267_v44  ;;  %v1185_v56 = vmul.f32 (!%p1687_p13), %v2226_v22, %v1125_v40  ;;  %v1186_v57 = vmul.f32 (!%p1687_p13), %v2228_v23, %v1126_v41  ;;  %v1133_v40 = vld [vmem:[#allocation2 + $0x160] sm:$0xff] (!%p1687_p13)  ;;  %v1134_v41 = vld [vmem:[#allocation2 + $0x168] sm:$0xff] (!%p1687_p13) }
 0x18e   : > { %1517 = vst [vmem:[%s2094_s7] sm:$0xff] %v1724_v48  ;;  %1519 = vst [vmem:[%s2094_s7 + $0x10] sm:$0xff] %v1726_v49  ;;  %v1269_v59 = vadd.f32 %v2222_v17, %v1183_v50  ;;  %v1270_v60 = vadd.f32 %v2224_v18, %v1184_v51  ;;  %v1187_v61 = vmul.f32 %v2218_v15, %v1095_v46  ;;  %v1103_v46 = vld [vmem:[#allocation2 + $0x70] sm:$0xff] }
 0x18f   : > { %v1188_v62 = vmul.f32 %v2220_v16, %v1096_v47  ;;  %1518 = vst [vmem:[%s2094_s7 + $0x8] sm:$0xff] %v1725_v54  ;;  %1520 = vst [vmem:[%s2094_s7 + $0x18] sm:$0xff] %v1727_v55  ;;  %v1271_v0 = vadd.f32 %v2230_v24, %v1185_v56  ;;  %v1272_v1 = vadd.f32 %v2232_v25, %v1186_v57  ;;  %v1104_v47 = vld [vmem:[#allocation2 + $0x78] sm:$0xff] }
 0x190   : > { %v1189_v2 = vmul.f32 %v2226_v22, %v1127_v52  ;;  %v1190_v3 = vmul.f32 %v2228_v23, %v1128_v53  ;;  %v1728_v6 = vpack.c.bf16 %v1270_v60, %v1269_v59  ;;  %v1273_v7 = vadd.f32 %v2222_v17, %v1187_v61  ;;  %v1135_v52 = vld [vmem:[#allocation2 + $0x170] sm:$0xff]  ;;  %v1136_v53 = vld [vmem:[#allocation2 + $0x178] sm:$0xff] }
 0x191   : > { %v1274_v8 = vadd.f32 %v2224_v18, %v1188_v62  ;;  %v1191_v9 = vmul.f32 %v2218_v15, %v1097_v58  ;;  %v1729_v12 = vpack.c.bf16 %v1272_v1, %v1271_v0  ;;  %v1192_v19 = vmul.f32 %v2220_v16, %v1098_v63  ;;  %v1105_v58 = vld [vmem:[#allocation2 + $0x80] sm:$0xff]  ;;  %v1106_v63 = vld [vmem:[#allocation2 + $0x88] sm:$0xff] }
 0x192   : > { %v1275_v13 = vadd.f32 %v2230_v24, %v1189_v2  ;;  %v1276_v14 = vadd.f32 %v2232_v25, %v1190_v3  ;;  %1521 = vst [vmem:[%s2094_s7 + $0x20] sm:$0xff] %v1728_v6  ;;  %v1193_v28 = vmul.f32 %v2226_v22, %v1129_v4  ;;  %v1194_v29 = vmul.f32 %v2228_v23, %v1130_v5  ;;  %v1137_v4 = vld [vmem:[#allocation2 + $0x180] sm:$0xff]  ;;  %v1138_v5 = vld [vmem:[#allocation2 + $0x188] sm:$0xff] }
 0x193   : > { %v1730_v26 = vpack.c.bf16 %v1274_v8, %v1273_v7  ;;  %v1277_v27 = vadd.f32 %v2222_v17, %v1191_v9  ;;  %1522 = vst [vmem:[%s2094_s7 + $0x28] sm:$0xff] %v1729_v12  ;;  %v1278_v32 = vadd.f32 %v2224_v18, %v1192_v19  ;;  %v1195_v33 = vmul.f32 %v2218_v15, %v1099_v10  ;;  %v1107_v10 = vld [vmem:[#allocation2 + $0x90] sm:$0xff] }
 0x194   : > { %v1731_v31 = vpack.c.bf16 %v1276_v14, %v1275_v13  ;;  %v1196_v34 = vmul.f32 %v2220_v16, %v1100_v11  ;;  %v1279_v36 = vadd.f32 %v2230_v24, %v1193_v28  ;;  %v1280_v37 = vadd.f32 %v2232_v25, %v1194_v29  ;;  %v1108_v11 = vld [vmem:[#allocation2 + $0x98] sm:$0xff] }
 0x195   : > { %1523 = vst [vmem:[%s2094_s7 + $0x30] sm:$0xff] %v1730_v26  ;;  %v1197_v38 = vmul.f32 %v2226_v22, %v1131_v20  ;;  %v1198_v39 = vmul.f32 %v2228_v23, %v1132_v21  ;;  %v1732_v42 = vpack.c.bf16 %v1278_v32, %v1277_v27  ;;  %v1281_v43 = vadd.f32 %v2222_v17, %v1195_v33  ;;  %v1139_v20 = vld [vmem:[#allocation2 + $0x190] sm:$0xff]  ;;  %v1140_v21 = vld [vmem:[#allocation2 + $0x198] sm:$0xff] }
 0x196   : > { %1524 = vst [vmem:[%s2094_s7 + $0x38] sm:$0xff] %v1731_v31  ;;  %v1282_v44 = vadd.f32 %v2224_v18, %v1196_v34  ;;  %v1199_v45 = vmul.f32 %v2218_v15, %v1101_v30  ;;  %v1733_v48 = vpack.c.bf16 %v1280_v37, %v1279_v36  ;;  %v1200_v51 = vmul.f32 %v2220_v16, %v1102_v35  ;;  %v1109_v30 = vld [vmem:[#allocation2 + $0xa0] sm:$0xff]  ;;  %v1110_v35 = vld [vmem:[#allocation2 + $0xa8] sm:$0xff] }
 0x197   : > { %v1283_v49 = vadd.f32 %v2230_v24, %v1197_v38  ;;  %v1284_v50 = vadd.f32 %v2232_v25, %v1198_v39  ;;  %1525 = vst [vmem:[%s2094_s7 + $0x40] sm:$0xff] %v1732_v42  ;;  %v1201_v56 = vmul.f32 %v2226_v22, %v1133_v40  ;;  %v1202_v57 = vmul.f32 %v2228_v23, %v1134_v41  ;;  %v1141_v40 = vld [vmem:[#allocation2 + $0x1a0] sm:$0xff]  ;;  %v1142_v41 = vld [vmem:[#allocation2 + $0x1a8] sm:$0xff] }
 0x198   : > { %v1734_v54 = vpack.c.bf16 %v1282_v44, %v1281_v43  ;;  %v1285_v55 = vadd.f32 %v2222_v17, %v1199_v45  ;;  %1526 = vst [vmem:[%s2094_s7 + $0x48] sm:$0xff] %v1733_v48  ;;  %v1286_v60 = vadd.f32 %v2224_v18, %v1200_v51  ;;  %v1203_v61 = vmul.f32 %v2218_v15, %v1103_v46  ;;  %v1111_v46 = vld [vmem:[#allocation2 + $0xb0] sm:$0xff] }
 0x199   : > { %v1735_v59 = vpack.c.bf16 %v1284_v50, %v1283_v49  ;;  %v1204_v62 = vmul.f32 %v2220_v16, %v1104_v47  ;;  %v1287_v0 = vadd.f32 %v2230_v24, %v1201_v56  ;;  %v1288_v1 = vadd.f32 %v2232_v25, %v1202_v57  ;;  %v1112_v47 = vld [vmem:[#allocation2 + $0xb8] sm:$0xff] }
 0x19a   : > { %1527 = vst [vmem:[%s2094_s7 + $0x50] sm:$0xff] %v1734_v54  ;;  %v1205_v2 = vmul.f32 %v2226_v22, %v1135_v52  ;;  %v1206_v3 = vmul.f32 %v2228_v23, %v1136_v53  ;;  %v1736_v6 = vpack.c.bf16 %v1286_v60, %v1285_v55  ;;  %v1289_v7 = vadd.f32 %v2222_v17, %v1203_v61  ;;  %v1143_v52 = vld [vmem:[#allocation2 + $0x1b0] sm:$0xff]  ;;  %v1144_v53 = vld [vmem:[#allocation2 + $0x1b8] sm:$0xff] }
 0x19b   : > { %1528 = vst [vmem:[%s2094_s7 + $0x58] sm:$0xff] %v1735_v59  ;;  %v1290_v8 = vadd.f32 %v2224_v18, %v1204_v62  ;;  %v1207_v9 = vmul.f32 %v2218_v15, %v1105_v58  ;;  %v1737_v12 = vpack.c.bf16 %v1288_v1, %v1287_v0  ;;  %v1208_v19 = vmul.f32 %v2220_v16, %v1106_v63  ;;  %v1113_v58 = vld [vmem:[#allocation2 + $0xc0] sm:$0xff]  ;;  %v1114_v63 = vld [vmem:[#allocation2 + $0xc8] sm:$0xff] }
 0x19c   : > { %v1291_v13 = vadd.f32 %v2230_v24, %v1205_v2  ;;  %v1292_v14 = vadd.f32 %v2232_v25, %v1206_v3  ;;  %1529 = vst [vmem:[%s2094_s7 + $0x60] sm:$0xff] %v1736_v6  ;;  %v1209_v28 = vmul.f32 %v2226_v22, %v1137_v4  ;;  %v1210_v29 = vmul.f32 %v2228_v23, %v1138_v5  ;;  %v1145_v4 = vld [vmem:[#allocation2 + $0x1c0] sm:$0xff]  ;;  %v1146_v5 = vld [vmem:[#allocation2 + $0x1c8] sm:$0xff] }
 0x19d   : > { %v1738_v26 = vpack.c.bf16 %v1290_v8, %v1289_v7  ;;  %v1293_v27 = vadd.f32 %v2222_v17, %v1207_v9  ;;  %1530 = vst [vmem:[%s2094_s7 + $0x68] sm:$0xff] %v1737_v12  ;;  %v1294_v32 = vadd.f32 %v2224_v18, %v1208_v19  ;;  %v1211_v33 = vmul.f32 %v2218_v15, %v1107_v10  ;;  %v1115_v10 = vld [vmem:[#allocation2 + $0xd0] sm:$0xff] }
 0x19e   : > { %v1739_v31 = vpack.c.bf16 %v1292_v14, %v1291_v13  ;;  %v1212_v34 = vmul.f32 %v2220_v16, %v1108_v11  ;;  %v1295_v36 = vadd.f32 %v2230_v24, %v1209_v28  ;;  %v1296_v37 = vadd.f32 %v2232_v25, %v1210_v29  ;;  %v1116_v11 = vld [vmem:[#allocation2 + $0xd8] sm:$0xff] }
 0x19f   : > { %1531 = vst [vmem:[%s2094_s7 + $0x70] sm:$0xff] %v1738_v26  ;;  %v1213_v38 = vmul.f32 %v2226_v22, %v1139_v20  ;;  %v1214_v39 = vmul.f32 %v2228_v23, %v1140_v21  ;;  %v1740_v42 = vpack.c.bf16 %v1294_v32, %v1293_v27  ;;  %v1297_v43 = vadd.f32 %v2222_v17, %v1211_v33  ;;  %v1147_v20 = vld [vmem:[#allocation2 + $0x1d0] sm:$0xff]  ;;  %v1148_v21 = vld [vmem:[#allocation2 + $0x1d8] sm:$0xff] }
 0x1a0   : > { %1532 = vst [vmem:[%s2094_s7 + $0x78] sm:$0xff] %v1739_v31  ;;  %v1298_v44 = vadd.f32 %v2224_v18, %v1212_v34  ;;  %v1215_v45 = vmul.f32 %v2218_v15, %v1109_v30  ;;  %v1741_v48 = vpack.c.bf16 %v1296_v37, %v1295_v36  ;;  %v1216_v51 = vmul.f32 %v2220_v16, %v1110_v35  ;;  %v1117_v30 = vld [vmem:[#allocation2 + $0xe0] sm:$0xff]  ;;  %v1118_v35 = vld [vmem:[#allocation2 + $0xe8] sm:$0xff] }
 0x1a1   : > { %v1299_v49 = vadd.f32 %v2230_v24, %v1213_v38  ;;  %v1300_v50 = vadd.f32 %v2232_v25, %v1214_v39  ;;  %1533 = vst [vmem:[%s2094_s7 + $0x80] sm:$0xff] %v1740_v42  ;;  %v1217_v56 = vmul.f32 %v2226_v22, %v1141_v40  ;;  %v1218_v57 = vmul.f32 %v2228_v23, %v1142_v41  ;;  %v1149_v40 = vld [vmem:[#allocation2 + $0x1e0] sm:$0xff]  ;;  %v1150_v41 = vld [vmem:[#allocation2 + $0x1e8] sm:$0xff] }
 0x1a2   : > { %v1742_v54 = vpack.c.bf16 %v1298_v44, %v1297_v43  ;;  %v1301_v55 = vadd.f32 %v2222_v17, %v1215_v45  ;;  %1534 = vst [vmem:[%s2094_s7 + $0x88] sm:$0xff] %v1741_v48  ;;  %v1302_v60 = vadd.f32 %v2224_v18, %v1216_v51  ;;  %v1219_v61 = vmul.f32 %v2218_v15, %v1111_v46  ;;  %v1119_v46 = vld [vmem:[#allocation2 + $0xf0] sm:$0xff] }
 0x1a3   : > { %v1743_v59 = vpack.c.bf16 %v1300_v50, %v1299_v49  ;;  %v1220_v62 = vmul.f32 %v2220_v16, %v1112_v47  ;;  %v1303_v0 = vadd.f32 %v2230_v24, %v1217_v56  ;;  %v1304_v1 = vadd.f32 %v2232_v25, %v1218_v57  ;;  %v1120_v47 = vld [vmem:[#allocation2 + $0xf8] sm:$0xff] }
 0x1a4   : > { %1535 = vst [vmem:[%s2094_s7 + $0x90] sm:$0xff] %v1742_v54  ;;  %v1221_v2 = vmul.f32 %v2226_v22, %v1143_v52  ;;  %v1222_v3 = vmul.f32 %v2228_v23, %v1144_v53  ;;  %v1744_v6 = vpack.c.bf16 %v1302_v60, %v1301_v55  ;;  %v1305_v7 = vadd.f32 %v2222_v17, %v1219_v61  ;;  %v1151_v52 = vld [vmem:[#allocation2 + $0x1f0] sm:$0xff]  ;;  %v1152_v53 = vld [vmem:[#allocation2 + $0x1f8] sm:$0xff] }
 0x1a5   : > { %1536 = vst [vmem:[%s2094_s7 + $0x98] sm:$0xff] %v1743_v59  ;;  %v1306_v8 = vadd.f32 %v2224_v18, %v1220_v62  ;;  %v1223_v9 = vmul.f32 %v2218_v15, %v1113_v58  ;;  %v1745_v12 = vpack.c.bf16 %v1304_v1, %v1303_v0  ;;  %v1224_v19 = vmul.f32 %v2220_v16, %v1114_v63 }
 0x1a6   : > { %v1307_v13 = vadd.f32 %v2230_v24, %v1221_v2  ;;  %v1308_v14 = vadd.f32 %v2232_v25, %v1222_v3  ;;  %1537 = vst [vmem:[%s2094_s7 + $0xa0] sm:$0xff] %v1744_v6  ;;  %v1225_v28 = vmul.f32 %v2226_v22, %v1145_v4  ;;  %v1226_v29 = vmul.f32 %v2228_v23, %v1146_v5 }
 0x1a7   : > { %v1746_v26 = vpack.c.bf16 %v1306_v8, %v1305_v7  ;;  %v1309_v27 = vadd.f32 %v2222_v17, %v1223_v9  ;;  %1538 = vst [vmem:[%s2094_s7 + $0xa8] sm:$0xff] %v1745_v12  ;;  %v1310_v32 = vadd.f32 %v2224_v18, %v1224_v19  ;;  %v1227_v33 = vmul.f32 %v2218_v15, %v1115_v10 }
 0x1a8   : > { %v1747_v31 = vpack.c.bf16 %v1308_v14, %v1307_v13  ;;  %v1228_v34 = vmul.f32 %v2220_v16, %v1116_v11  ;;  %v1311_v36 = vadd.f32 %v2230_v24, %v1225_v28  ;;  %v1312_v37 = vadd.f32 %v2232_v25, %v1226_v29 }
 0x1a9   : > { %1539 = vst [vmem:[%s2094_s7 + $0xb0] sm:$0xff] %v1746_v26  ;;  %v1229_v38 = vmul.f32 %v2226_v22, %v1147_v20  ;;  %v1230_v39 = vmul.f32 %v2228_v23, %v1148_v21  ;;  %v1748_v42 = vpack.c.bf16 %v1310_v32, %v1309_v27  ;;  %v1313_v43 = vadd.f32 %v2222_v17, %v1227_v33 }
 0x1aa   : > { %1540 = vst [vmem:[%s2094_s7 + $0xb8] sm:$0xff] %v1747_v31  ;;  %v1314_v44 = vadd.f32 %v2224_v18, %v1228_v34  ;;  %v1231_v45 = vmul.f32 %v2218_v15, %v1117_v30  ;;  %v1749_v48 = vpack.c.bf16 %v1312_v37, %v1311_v36  ;;  %v1232_v51 = vmul.f32 %v2220_v16, %v1118_v35 }
 0x1ab   : > { %v1315_v49 = vadd.f32 %v2230_v24, %v1229_v38  ;;  %v1316_v50 = vadd.f32 %v2232_v25, %v1230_v39  ;;  %1541 = vst [vmem:[%s2094_s7 + $0xc0] sm:$0xff] %v1748_v42  ;;  %v1233_v56 = vmul.f32 %v2226_v22, %v1149_v40  ;;  %v1234_v57 = vmul.f32 %v2228_v23, %v1150_v41 }
 0x1ac   : > { %v1750_v54 = vpack.c.bf16 %v1314_v44, %v1313_v43  ;;  %v1317_v55 = vadd.f32 %v2222_v17, %v1231_v45  ;;  %1542 = vst [vmem:[%s2094_s7 + $0xc8] sm:$0xff] %v1749_v48  ;;  %v1318_v59 = vadd.f32 %v2224_v18, %v1232_v51  ;;  %v1235_v60 = vmul.f32 %v2218_v15, %v1119_v46 }
 0x1ad   : > { %v1751_v58 = vpack.c.bf16 %v1316_v50, %v1315_v49  ;;  %v1236_v61 = vmul.f32 %v2220_v16, %v1120_v47  ;;  %v1319_v62 = vadd.f32 %v2230_v24, %v1233_v56  ;;  %v1320_v63 = vadd.f32 %v2232_v25, %v1234_v57 }
 0x1ae   : > { %1543 = vst [vmem:[%s2094_s7 + $0xd0] sm:$0xff] %v1750_v54  ;;  %v1237_v0 = vmul.f32 %v2226_v22, %v1151_v52  ;;  %v1238_v1 = vmul.f32 %v2228_v23, %v1152_v53  ;;  %v1752_v2 = vpack.c.bf16 %v1318_v59, %v1317_v55  ;;  %v1321_v3 = vadd.f32 %v2222_v17, %v1235_v60 }
 0x1af   : > { %1544 = vst [vmem:[%s2094_s7 + $0xd8] sm:$0xff] %v1751_v58  ;;  %v1322_v15 = vadd.f32 %v2224_v18, %v1236_v61  ;;  %v1753_v4 = vpack.c.bf16 %v1320_v63, %v1319_v62 }
 0x1b0   : > { %v1323_v16 = vadd.f32 %v2230_v24, %v1237_v0  ;;  %v1324_v5 = vadd.f32 %v2232_v25, %v1238_v1  ;;  %1545 = vst [vmem:[%s2094_s7 + $0xe0] sm:$0xff] %v1752_v2 }
 0x1b1   : > { %v1754_v6 = vpack.c.bf16 %v1322_v15, %v1321_v3  ;;  %1546 = vst [vmem:[%s2094_s7 + $0xe8] sm:$0xff] %v1753_v4 }
 0x1b2   : > { %v1755_v7 = vpack.c.bf16 %v1324_v5, %v1323_v16 }
 0x1b3   : > { %1547 = vst [vmem:[%s2094_s7 + $0xf0] sm:$0xff] %v1754_v6 }
 0x1b4   : > { %1548 = vst [vmem:[%s2094_s7 + $0xf8] sm:$0xff] %v1755_v7 }
 0x1b5 PF: > { %s14_s21 = sadd.s32 1, %s1924_s21   ;;  %s2420_s15 = smov %s1904_s16 }
 0x1b6   : > { %p11_p0 = scmp.ge.s32.totalorder %s14_s21, 6   ;;  %s2421_s16 = smov %s2004_s28 }
 0x1b7   : > { %s2422_s17 = smov %s1916_s19  ;;  %s2423_s18 = smov %s1920_s20 }
 0x1b8   : > { %s2424_s19 = smov %s2427_s22  ;;  %s2425_s20 = smov %s2431_s23 }
 0x1b9   :  { %13 = sbr.rel (!%p11_p0) target bundleno = 4 (0x4), region = 123 }

// kernel: h2gcn_forward.9
= control target key start
LH: loop header
LB: loop body
LE: loop exit
PB: predicated region body
PF: predicated region fallthrough
CT: control target
= control target key end

     0   :  { %s2631_s30 = smov 0   ;;  %s3033_s0 = inlined_call_operand.vmem [shape: bf16[256,64], index: 0, kind: input, shape index: {}]   ;;  %s3034_s1 = inlined_call_operand.vmem [shape: bf16[256,128], index: 1, kind: input, shape index: {}]   ;;  %s3035_s2 = inlined_call_operand.vmem [shape: bf16[256,256], index: 2, kind: input, shape index: {}]   ;;  %s3036_s3 = inlined_call_operand.vmem [shape: bf16[256,512], index: 3, kind: input, shape index: {}]   ;;  %s3037_s4 = inlined_call_operand.vmem [shape: bf16[64,8], index: 4, kind: input, shape index: {}]   ;;  %s3038_s5 = inlined_call_operand.vmem [shape: bf16[128,8], index: 5, kind: input, shape index: {}]   ;;  %s3039_s6 = inlined_call_operand.vmem [shape: bf16[256,8], index: 6, kind: input, shape index: {}]   ;;  %s3040_s7 = inlined_call_operand.vmem [shape: bf16[512,8], index: 7, kind: input, shape index: {}]   ;;  %s3041_s8 = inlined_call_operand.vmem [shape: f32[1,8], index: 8, kind: input, shape index: {}]   ;;  %s3042_s9 = inlined_call_operand.vmem [shape: f32[256,8], index: 9, kind: output, shape index: {}]  }
   0x1 LB: > { %s1971_s10 = sadd.s32 4294967295, %s2579_s30   ;;  %p1975_p0 = scmp.ge.s32.totalorder %s2579_s30, 1  ;;  %s2579_s30 = sphi %s2631_s30, %s19_s30  }
   0x2   : > { %p323_p1 = scmp.lt.s32.totalorder %s2579_s30, 3 }
   0x4   : > { %p324_p2 = pnand %p1975_p0, %p323_p1 }
   0x5   : > { %v2425_v0 = vld [vmem:[%s3038_s5] sm:$0xff] (!%p324_p2)   ;;  %v2428_v3 = vld [vmem:[%s3038_s5 + $0x8] sm:$0xff] (!%p324_p2)   ;;  %v2431_v6 = vld [vmem:[%s3038_s5 + $0x10] sm:$0xff] (!%p324_p2)   ;;  %s1976_s27 = sshll.u32 (!%p324_p2), %s1971_s10, 4  ;;  %vm722_vm0 = vcmask (!%p324_p2), 523264   ;;  %vm1862_vm1 = vcmask (!%p324_p2), 64512  }
   0x6   : > { %327 = sbr.rel (%p324_p2) target bundleno = 383 (0x17f), region = 56  ;;  %v2426_v1 = vld [vmem:[%s3039_s6 + $0x40] sm:$0xff] (!%p324_p2)   ;;  %2345 = vmatprep.subr.bf16.mxu0 (!%p324_p2), %v2425_v0  ;;  %v2429_v4 = vld [vmem:[%s3039_s6 + $0x48] sm:$0xff] (!%p324_p2)   ;;  %v2432_v7 = vld [vmem:[%s3039_s6 + $0x50] sm:$0xff] (!%p324_p2)   ;;  %p377_p3 = scmp.lt.s32.totalorder (!%p324_p2), %s1976_s27, 31 }
   0x7   : > { %v2427_v2 = vld [vmem:[%s3039_s6] sm:$0xff] (!%p324_p2)   ;;  %2153 = vmatprep.subr.bf16.mxu1 (!%p324_p2), %v2426_v1  ;;  %2346 = vmatpush3.bf16.msra.mxu0 (!%p324_p2), %v2425_v0  ;;  %v2430_v5 = vld [vmem:[%s3039_s6 + $0x8] sm:$0xff] (!%p324_p2)   ;;  %v2433_v8 = vld [vmem:[%s3039_s6 + $0x10] sm:$0xff] (!%p324_p2)  }
   0x8   : > { %2154 = vmatpush3.bf16.msra.mxu1 (!%p324_p2), %v2427_v2  ;;  %2347 = vmatprep.subr.bf16.mxu0 (!%p324_p2), %v2428_v3  ;;  %v2434_v9 = vld [vmem:[%s3038_s5 + $0x18] sm:$0xff] (!%p324_p2)   ;;  %v2437_v12 = vld [vmem:[%s3038_s5 + $0x20] sm:$0xff] (!%p324_p2)   ;;  %v2440_v15 = vld [vmem:[%s3038_s5 + $0x28] sm:$0xff] (!%p324_p2)  }
   0x9   : > { %2155 = vmatprep.subr.bf16.mxu1 (!%p324_p2), %v2429_v4  ;;  %v2435_v10 = vld [vmem:[%s3039_s6 + $0x58] sm:$0xff] (!%p324_p2)   ;;  %v2438_v13 = vld [vmem:[%s3039_s6 + $0x60] sm:$0xff] (!%p324_p2)   ;;  %v2441_v16 = vld [vmem:[%s3039_s6 + $0x68] sm:$0xff] (!%p324_p2)  }
   0xa   : > { %v2436_v11 = vld [vmem:[%s3039_s6 + $0x18] sm:$0xff] (!%p324_p2)   ;;  %v2439_v14 = vld [vmem:[%s3039_s6 + $0x20] sm:$0xff] (!%p324_p2)   ;;  %v2442_v17 = vld [vmem:[%s3039_s6 + $0x28] sm:$0xff] (!%p324_p2)  }
   0xb   : > { %2348 = vmatpush3.bf16.msra.mxu0 (!%p324_p2), %v2428_v3  ;;  %v2443_v18 = vld [vmem:[%s3038_s5 + $0x30] sm:$0xff] (!%p324_p2)   ;;  %v2446_v21 = vld [vmem:[%s3038_s5 + $0x38] sm:$0xff] (!%p324_p2)   ;;  %v2454_v26 = vld [vmem:[%s3037_s4] sm:$0xff] (!%p324_p2)  }
   0xc   : > { %2156 = vmatpush3.bf16.msra.mxu1 (!%p324_p2), %v2430_v5  ;;  %2349 = vmatprep.subr.bf16.mxu0 (!%p324_p2), %v2431_v6  ;;  %v2444_v19 = vld [vmem:[%s3039_s6 + $0x70] sm:$0xff] (!%p324_p2)   ;;  %v2447_v23 = vld [vmem:[%s3039_s6 + $0x78] sm:$0xff] (!%p324_p2)   ;;  %v2455_v28 = vld [vmem:[%s3040_s7 + $0xc0] sm:$0xff] (!%p324_p2)  }
   0xd   : > { %2157 = vmatprep.subr.bf16.mxu1 %v2432_v7  ;;  %s3044_s27 = smov (!%p377_p3, %s1976_s27), 31  ;;  %v2445_v20 = vld [vmem:[%s3039_s6 + $0x30] sm:$0xff]   ;;  %v2448_v25 = vld [vmem:[%s3039_s6 + $0x38] sm:$0xff]   ;;  %v2456_v30 = vld [vmem:[%s3040_s7 + $0x80] sm:$0xff]  }
   0xe   : > { %s1977_s26 = sshll.u32 %s3044_s27, 2  ;;  %s2123_s13 = sshll.u32 %s3044_s27, 3  ;;  %v2461_v33 = vld [vmem:[%s3037_s4 + $0x8] sm:$0xff]   ;;  %v2469_v40 = vld [vmem:[%s3037_s4 + $0x10] sm:$0xff]   ;;  %v2477_v46 = vld [vmem:[%s3037_s4 + $0x18] sm:$0xff]  }
   0xf   : > { %2350 = vmatpush3.bf16.msra.mxu0 %v2431_v6  ;;  %s2708_s17 = scalar_lea.vmem %s3034_s1, %s1977_s26  ;;  %s2721_s24 = scalar_lea.vmem %s3035_s2, %s2123_s13  ;;  %v2463_v34 = vld [vmem:[%s3040_s7 + $0xc8] sm:$0xff]   ;;  %v2471_v41 = vld [vmem:[%s3040_s7 + $0xd0] sm:$0xff]   ;;  %v2479_v48 = vld [vmem:[%s3040_s7 + $0xd8] sm:$0xff]  }
  0x10   : > { %2158 = vmatpush3.bf16.msra.mxu1 %v2433_v8  ;;  %2351 = vmatprep.subr.bf16.mxu0 %v2434_v9  ;;  %v2449_v22 = vld [vmem:[%s2708_s17] sm:$0xff]   ;;  %v2453_v29 = vld [vmem:[%s2708_s17 + $0x8] sm:$0xff]   ;;  %v2457_v31 = vld [vmem:[%s2708_s17 + $0x10] sm:$0xff]   ;;  %s2778_s20 = scalar_lea.vmem %s3033_s0, %s1977_s26  ;;  %s2965_s14 = scalar_lea.vmem %s3042_s9, %s2123_s13 }
  0x11   : > { %2159 = vmatprep.subr.bf16.mxu1 %v2435_v10  ;;  %2361 = vmatprep.mubr.bf16.mxu0 %v2449_v22  ;;  %v2452_v24 = vld [vmem:[%s2721_s24 + $0x4] ss:$8 sps:$4 sm:$0xff]   ;;  %v2450_v27 = vld [vmem:[%s2721_s24] ss:$8 sps:$4 sm:$0xff]   ;;  %v2458_v32 = vld [vmem:[%s2721_s24 + $0x14] ss:$8 sps:$4 sm:$0xff]  }
  0x12   : > { %1100 = vmatprep.mubr.bf16.mxu1 %v2452_v24  ;;  %v2464_v35 = vld [vmem:[%s3040_s7 + $0x88] sm:$0xff]   ;;  %v2460_v36 = vld [vmem:[%s2708_s17 + $0x18] sm:$0xff]   ;;  %v2465_v38 = vld [vmem:[%s2708_s17 + $0x20] sm:$0xff]  }
  0x13   : > { %2352 = vmatpush3.bf16.msra.mxu0 %v2434_v9  ;;  %v2462_v37 = vld [vmem:[%s2721_s24 + $0x10] ss:$8 sps:$4 sm:$0xff]   ;;  %v2466_v39 = vld [vmem:[%s2721_s24 + $0x24] ss:$8 sps:$4 sm:$0xff]   ;;  %v2470_v44 = vld [vmem:[%s2721_s24 + $0x20] ss:$8 sps:$4 sm:$0xff]  }
  0x14   : > { %2160 = vmatpush3.bf16.msra.mxu1 %v2436_v11  ;;  %2353 = vmatprep.subr.bf16.mxu0 %v2437_v12  ;;  %v2472_v42 = vld [vmem:[%s3040_s7 + $0x90] sm:$0xff]   ;;  %v2468_v43 = vld [vmem:[%s2708_s17 + $0x28] sm:$0xff]   ;;  %v2480_v49 = vld [vmem:[%s3040_s7 + $0x98] sm:$0xff]  }
  0x15   : > { %2161 = vmatprep.subr.bf16.mxu1 %v2438_v13  ;;  %v2473_v45 = vld [vmem:[%s2708_s17 + $0x30] sm:$0xff]   ;;  %v2476_v50 = vld [vmem:[%s2708_s17 + $0x38] sm:$0xff]   ;;  %v2481_v52 = vld [vmem:[%s2778_s20] sm:$0xff]   ;;  %s2124_s17 = sshll.u32 %s3044_s27, 4 }
  0x16   : > { %v2474_v47 = vld [vmem:[%s2721_s24 + $0x34] ss:$8 sps:$4 sm:$0xff]   ;;  %v2478_v51 = vld [vmem:[%s2721_s24 + $0x30] ss:$8 sps:$4 sm:$0xff]   ;;  %v2486_v53 = vld [vmem:[%s3040_s7 + $0x40] sm:$0xff]   ;;  %s2876_s22 = scalar_lea.vmem %s3036_s3, %s2124_s17 }
  0x17   : > { %2354 = vmatpush3.bf16.msra.mxu0 %v2437_v12  ;;  %v2487_v54 = vld [vmem:[%s3040_s7 + $0xe0] sm:$0xff]   ;;  %v2484_v57 = vld [vmem:[%s2778_s20 + $0x8] sm:$0xff]   ;;  %v2492_v61 = vld [vmem:[%s2778_s20 + $0x10] sm:$0xff]  }
  0x18   : > { %2162 = vmatpush3.bf16.msra.mxu1 %v2439_v14  ;;  %2355 = vmatprep.subr.bf16.mxu0 %v2440_v15  ;;  %v2482_v55 = vld [vmem:[%s2721_s24 + $0x44] ss:$8 sps:$4 sm:$0xff]   ;;  %v2485_v58 = vld [vmem:[%s2721_s24 + $0x40] ss:$8 sps:$4 sm:$0xff]   ;;  %v2493_v63 = vld [vmem:[%s2721_s24 + $0x54] ss:$8 sps:$4 sm:$0xff]  }
  0x19   : > { %2163 = vmatprep.subr.bf16.mxu1 %v2441_v16  ;;  %v2489_v56 = vld [vmem:[%s3040_s7 + $0xa0] sm:$0xff]   ;;  %v2490_v60 = vld [vmem:[%s3040_s7 + $0x48] sm:$0xff]   ;;  %v2495_v2 = vld [vmem:[%s2778_s20 + $0x18] sm:$0xff]  }
  0x1a   : > { %v2488_v59 = vld [vmem:[%s3040_s7] sm:$0xff]   ;;  %v2498_v62 = vld [vmem:[%s3040_s7 + $0xe8] sm:$0xff]   ;;  %v2497_v3 = vld [vmem:[%s3040_s7 + $0x50] sm:$0xff]  }
  0x1b   : > { %2356 = vmatpush3.bf16.msra.mxu0 %v2440_v15  ;;  %v2500_v0 = vld [vmem:[%s3040_s7 + $0xa8] sm:$0xff]   ;;  %v2496_v4 = vld [vmem:[%s2721_s24 + $0x50] ss:$8 sps:$4 sm:$0xff]   ;;  %v2503_v7 = vld [vmem:[%s2778_s20 + $0x20] sm:$0xff]  }
  0x1c   : > { %2164 = vmatpush3.bf16.msra.mxu1 %v2442_v17  ;;  %2357 = vmatprep.subr.bf16.mxu0 %v2443_v18  ;;  %v2491_v1 = vld [vmem:[%s3040_s7 + $0x8] sm:$0xff]   ;;  %v2499_v5 = vld [vmem:[%s3040_s7 + $0x10] sm:$0xff]   ;;  %v2501_v6 = vld [vmem:[%s3040_s7 + $0x58] sm:$0xff]  }
  0x1d   : > { %2165 = vmatprep.subr.bf16.mxu1 %v2444_v19  ;;  %v2504_v8 = vld [vmem:[%s2721_s24 + $0x64] ss:$8 sps:$4 sm:$0xff]   ;;  %v2509_v9 = vld [vmem:[%s3040_s7 + $0xf0] sm:$0xff]   ;;  %v2502_v10 = vld [vmem:[%s3040_s7 + $0x18] sm:$0xff]  }
  0x1e   : > { %v2511_v11 = vld [vmem:[%s3040_s7 + $0xb0] sm:$0xff]   ;;  %v2508_v12 = vld [vmem:[%s3040_s7 + $0x60] sm:$0xff]   ;;  %v2506_v13 = vld [vmem:[%s2778_s20 + $0x28] sm:$0xff]  }
  0x1f   : > { %2358 = vmatpush3.bf16.msra.mxu0 %v2443_v18  ;;  %v2507_v14 = vld [vmem:[%s2721_s24 + $0x60] ss:$8 sps:$4 sm:$0xff]   ;;  %v2514_v17 = vld [vmem:[%s2778_s20 + $0x30] sm:$0xff]   ;;  %v2522_v22 = vld [vmem:[%s3040_s7 + $0xb8] sm:$0xff]  }
  0x20   : > { %2166 = vmatpush3.bf16.msra.mxu1 %v2445_v20  ;;  %2359 = vmatprep.subr.bf16.mxu0 %v2446_v21  ;;  %v2510_v15 = vld [vmem:[%s3040_s7 + $0x20] sm:$0xff]   ;;  %v2512_v16 = vld [vmem:[%s3040_s7 + $0x68] sm:$0xff]   ;;  %v2515_v19 = vld [vmem:[%s2721_s24 + $0x74] ss:$8 sps:$4 sm:$0xff]  }
  0x21   : > { %2167 = vmatprep.subr.bf16.mxu1 %v2447_v23  ;;  %v2513_v18 = vld [vmem:[%s3040_s7 + $0x28] sm:$0xff]   ;;  %v2520_v20 = vld [vmem:[%s3040_s7 + $0xf8] sm:$0xff]  }
  0x22   : > { %v2517_v23 = vld [vmem:[%s2778_s20 + $0x38] sm:$0xff]  }
  0x23   : > { %2360 = vmatpush3.bf16.msra.mxu0 %v2446_v21  ;;  %v2519_v21 = vld [vmem:[%s3040_s7 + $0x70] sm:$0xff]  }
  0x24   : > { %2168 = vmatpush3.bf16.msra.mxu1 %v2448_v25  ;;  %2377 = vmatprep.subr.bf16.mxu0 %v2454_v26  ;;  %v2518_v24 = vld [vmem:[%s2721_s24 + $0x70] ss:$8 sps:$4 sm:$0xff]  }
  0x25   : > { %2281 = vmatprep.subr.bf16.mxu1 %v2455_v28  ;;  %v2521_v25 = vld [vmem:[%s3040_s7 + $0x30] sm:$0xff]   ;;  %v2530_v28 = vld [vmem:[%s2876_s22 + $0xc] ss:$16 sps:$4 sm:$0xff]  }
  0x26   : > { %2362 = vmatmul.mubr.bf16.vlgmr.msra.gmra.mrb[0].mxu0 %v2453_v29  ;;  %v2524_v29 = vld [vmem:[%s3040_s7 + $0x38] sm:$0xff]  }
  0x27   : > { %1101 = vmatmul.mubr.bf16.vlgmr.msra.gmra.mrb[0].mxu1 %v2450_v27  ;;  %2378 = vmatpush3.bf16.msra.mxu0 %v2454_v26  ;;  %v2523_v26 = vld [vmem:[%s3040_s7 + $0x78] sm:$0xff]   ;;  %v2527_v27 = vld [vmem:[%s2876_s22 + $0x4] ss:$16 sps:$4 sm:$0xff]  }
  0x28   : > { %2282 = vmatpush3.bf16.msra.mxu1 %v2456_v30  ;;  %2365 = vmatprep.mubr.bf16.mxu0 %v2457_v31  ;;  %v2525_v30 = vld [vmem:[%s2876_s22] ss:$16 sps:$4 sm:$0xff]   ;;  %v2528_v31 = vld [vmem:[%s2876_s22 + $0x8] ss:$16 sps:$4 sm:$0xff]  }
  0x29   : > { %1108 = vmatprep.mubr.bf16.mxu1 %v2458_v32  ;;  %2379 = vmatprep.subr.bf16.mxu0 %v2461_v33  ;;  %v2531_v32 = vld [vmem:[%s2876_s22 + $0x24] ss:$16 sps:$4 sm:$0xff]  }
  0x2a   : > { %2283 = vmatprep.subr.bf16.mxu1 %v2463_v34  ;;  %v2535_v34 = vld [vmem:[%s2876_s22 + $0x20] ss:$16 sps:$4 sm:$0xff]  }
  0x2b   : > { %2380 = vmatpush3.bf16.msra.mxu0 %v2461_v33  ;;  %v2533_v33 = vld [vmem:[%s2876_s22 + $0x2c] ss:$16 sps:$4 sm:$0xff]  }
  0x2c   : > { %2284 = vmatpush3.bf16.msra.mxu1 %v2464_v35  ;;  %2381 = vmatprep.subr.bf16.mxu0 %v2469_v40  ;;  %v2536_v35 = vld [vmem:[%s2876_s22 + $0x28] ss:$16 sps:$4 sm:$0xff]  }
  0x2d   : > { %2285 = vmatprep.subr.bf16.mxu1 %v2471_v41  ;;  %v2545_v41 = vld [vmem:[%s2876_s22 + $0x6c] ss:$16 sps:$4 sm:$0xff]  }
  0x2e   : > { %2366 = vmatmul.mubr.bf16.gmra.mrb[4].mxu0 %v2460_v36  ;;  %v2537_v36 = vld [vmem:[%s2876_s22 + $0x44] ss:$16 sps:$4 sm:$0xff]  }
  0x2f   : > { %1109 = vmatmul.mubr.bf16.gmra.mrb[4].mxu1 %v2462_v37  ;;  %2369 = vmatprep.mubr.bf16.mxu0 %v2465_v38  ;;  %v2539_v37 = vld [vmem:[%s2876_s22 + $0x4c] ss:$16 sps:$4 sm:$0xff]   ;;  %v2541_v38 = vld [vmem:[%s2876_s22 + $0x40] ss:$16 sps:$4 sm:$0xff]  }
  0x30   : > { %1116 = vmatprep.mubr.bf16.mxu1 %v2466_v39  ;;  %2382 = vmatpush3.bf16.msra.mxu0 %v2469_v40  ;;  %v2542_v39 = vld [vmem:[%s2876_s22 + $0x48] ss:$16 sps:$4 sm:$0xff]   ;;  %v2543_v40 = vld [vmem:[%s2876_s22 + $0x64] ss:$16 sps:$4 sm:$0xff]  }
  0x31   : > { %2286 = vmatpush3.bf16.msra.mxu1 %v2472_v42  ;;  %2383 = vmatprep.subr.bf16.mxu0 %v2477_v46  ;;  %v2547_v42 = vld [vmem:[%s2876_s22 + $0x60] ss:$16 sps:$4 sm:$0xff]  }
  0x32   : > { %2287 = vmatprep.subr.bf16.mxu1 %v2479_v48  ;;  %v2555_v48 = vld [vmem:[%s2876_s22 + $0xa4] ss:$16 sps:$4 sm:$0xff]  }
  0x34   : > { %2384 = vmatpush3.bf16.msra.mxu0 %v2477_v46  ;;  %v2553_v46 = vld [vmem:[%s2876_s22 + $0x80] ss:$16 sps:$4 sm:$0xff]  }
  0x35   : > { %2288 = vmatpush3.bf16.msra.mxu1 %v2480_v49  ;;  %2217 = vmatprep.subr.bf16.mxu0 %v2486_v53  ;;  %v2557_v49 = vld [vmem:[%s2876_s22 + $0xac] ss:$16 sps:$4 sm:$0xff]  }
  0x36   : > { %2370 = vmatmul.mubr.bf16.gmra.mrb[8].mxu0 %v2468_v43  ;;  %2289 = vmatprep.subr.bf16.mxu1 %v2487_v54  ;;  %v2548_v43 = vld [vmem:[%s2876_s22 + $0x68] ss:$16 sps:$4 sm:$0xff]   ;;  %v2563_v53 = vld [vmem:[%s2876_s22 + $0xcc] ss:$16 sps:$4 sm:$0xff]   ;;  %v2565_v54 = vld [vmem:[%s2876_s22 + $0xc0] ss:$16 sps:$4 sm:$0xff]  }
  0x37   : > { %1117 = vmatmul.mubr.bf16.gmra.mrb[8].mxu1 %v2470_v44  ;;  %2373 = vmatprep.mubr.bf16.mxu0 %v2473_v45  ;;  %v2549_v44 = vld [vmem:[%s2876_s22 + $0x84] ss:$16 sps:$4 sm:$0xff]   ;;  %v2551_v45 = vld [vmem:[%s2876_s22 + $0x8c] ss:$16 sps:$4 sm:$0xff]  }
  0x38   : > { %1124 = vmatprep.mubr.bf16.mxu1 %v2474_v47  ;;  %v2554_v47 = vld [vmem:[%s2876_s22 + $0x88] ss:$16 sps:$4 sm:$0xff]  }
  0x39   : > { %2290 = vmatpush3.bf16.msra.mxu1 %v2489_v56  ;;  %v2567_v56 = vld [vmem:[%s2876_s22 + $0xe4] ss:$16 sps:$4 sm:$0xff]  }
  0x3a   : > { %2291 = vmatprep.subr.bf16.mxu1 %v2498_v62 }
  0x3d   : > { %2292 = vmatpush3.bf16.msra.mxu1 %v2500_v0 }
  0x3e   : > { %2374 = vmatmul.mubr.bf16.gmra.mrb[12].mxu0 %v2476_v50  ;;  %2293 = vmatprep.subr.bf16.mxu1 %v2509_v9  ;;  %v2559_v50 = vld [vmem:[%s2876_s22 + $0xa0] ss:$16 sps:$4 sm:$0xff]  }
  0x3f   : > { %1125 = vmatmul.mubr.bf16.gmra.mrb[12].mxu1 %v2478_v51  ;;  %2385 = vmatprep.mubr.msk.bf16.mxu0 %vm722_vm0, %v2481_v52  ;;  %v2560_v51 = vld [vmem:[%s2876_s22 + $0xa8] ss:$16 sps:$4 sm:$0xff]   ;;  %v2561_v52 = vld [vmem:[%s2876_s22 + $0xc4] ss:$16 sps:$4 sm:$0xff]  }
  0x40   : > { %1132 = vmatprep.mubr.bf16.mxu1 %v2482_v55  ;;  %v2566_v55 = vld [vmem:[%s2876_s22 + $0xc8] ss:$16 sps:$4 sm:$0xff]  }
  0x41   : > { %2294 = vmatpush3.bf16.msra.mxu1 %v2511_v11 }
  0x42   : > { %2295 = vmatprep.subr.bf16.mxu1 %v2520_v20 }
  0x45   : > { %2296 = vmatpush3.bf16.msra.mxu1 %v2522_v22 }
  0x46   : > { %2386 = vmatmul.mubr.msk.bf16.vlgmr.msra.gmra.mrb[0].mxu0 %vm722_vm0, %v2484_v57  ;;  %v2569_v57 = vld [vmem:[%s2876_s22 + $0xec] ss:$16 sps:$4 sm:$0xff]  }
  0x47   : > { %1133 = vmatmul.mubr.bf16.gmra.mrb[16].mxu1 %v2485_v58  ;;  %2218 = vmatpush3.bf16.msra.mxu0 %v2488_v59  ;;  %v2571_v58 = vld [vmem:[%s2876_s22 + $0xe0] ss:$16 sps:$4 sm:$0xff]   ;;  %v2572_v59 = vld [vmem:[%s2876_s22 + $0xe8] ss:$16 sps:$4 sm:$0xff]  }
  0x48   : > { %2219 = vmatprep.subr.bf16.mxu0 %v2490_v60  ;;  %2389 = vmatprep.mubr.msk.bf16.mxu0 %vm722_vm0, %v2492_v61 }
  0x49   : > { %1140 = vmatprep.mubr.bf16.mxu1 %v2493_v63 }
  0x4b   : > { %2220 = vmatpush3.bf16.msra.mxu0 %v2491_v1 }
  0x4c   : > { %2221 = vmatprep.subr.bf16.mxu0 %v2497_v3 }
  0x4e   : > { %2390 = vmatmul.mubr.msk.bf16.gmra.mrb[4].mxu0 %vm722_vm0, %v2495_v2 }
  0x4f   : > { %1141 = vmatmul.mubr.bf16.gmra.mrb[20].mxu1 %v2496_v4  ;;  %2222 = vmatpush3.bf16.msra.mxu0 %v2499_v5 }
  0x50   : > { %2223 = vmatprep.subr.bf16.mxu0 %v2501_v6  ;;  %2393 = vmatprep.mubr.msk.bf16.mxu0 %vm722_vm0, %v2503_v7 }
  0x51   : > { %1148 = vmatprep.mubr.bf16.mxu1 %v2504_v8 }
  0x53   : > { %2224 = vmatpush3.bf16.msra.mxu0 %v2502_v10 }
  0x54   : > { %2225 = vmatprep.subr.bf16.mxu0 %v2508_v12 }
  0x56   : > { %2394 = vmatmul.mubr.msk.bf16.gmra.mrb[8].mxu0 %vm722_vm0, %v2506_v13 }
  0x57   : > { %1149 = vmatmul.mubr.bf16.gmra.mrb[24].mxu1 %v2507_v14  ;;  %2226 = vmatpush3.bf16.msra.mxu0 %v2510_v15 }
  0x58   : > { %2227 = vmatprep.subr.bf16.mxu0 %v2512_v16  ;;  %2397 = vmatprep.mubr.msk.bf16.mxu0 %vm722_vm0, %v2514_v17 }
  0x59   : > { %1156 = vmatprep.mubr.bf16.mxu1 %v2515_v19 }
  0x5b   : > { %2228 = vmatpush3.bf16.msra.mxu0 %v2513_v18 }
  0x5c   : > { %2229 = vmatprep.subr.bf16.mxu0 %v2519_v21 }
  0x5e   : > { %2398 = vmatmul.mubr.msk.bf16.gmra.mrb[12].mxu0 %vm722_vm0, %v2517_v23 }
  0x5f   : > { %1157 = vmatmul.mubr.bf16.gmra.mrb[28].mxu1 %v2518_v24  ;;  %2230 = vmatpush3.bf16.msra.mxu0 %v2521_v25 }
  0x60   : > { %2231 = vmatprep.subr.bf16.mxu0 %v2523_v26  ;;  %1661 = vmatprep.mubr.bf16.mxu0 %v2527_v27 }
  0x61   : > { %1758 = vmatprep.mubr.bf16.mxu1 %v2530_v28 }
  0x63   : > { %2232 = vmatpush3.bf16.msra.mxu0 %v2524_v29 }
  0x66   : > { %1662 = vmatmul.mubr.bf16.vlgmr.msra.gmra.mrb[16].mxu0 %v2525_v30 }
  0x67   : > { %1759 = vmatmul.mubr.bf16.vlgmr.msra.gmra.mrb[32].mxu1 %v2528_v31  ;;  %1669 = vmatprep.mubr.bf16.mxu0 %v2531_v32 }
  0x68   : > { %1766 = vmatprep.mubr.bf16.mxu1 %v2533_v33 }
  0x6e   : > { %1670 = vmatmul.mubr.bf16.gmra.mrb[20].mxu0 %v2535_v34 }
  0x6f   : > { %1767 = vmatmul.mubr.bf16.gmra.mrb[36].mxu1 %v2536_v35  ;;  %1677 = vmatprep.mubr.bf16.mxu0 %v2537_v36 }
  0x70   : > { %1774 = vmatprep.mubr.bf16.mxu1 %v2539_v37 }
  0x76   : > { %1678 = vmatmul.mubr.bf16.gmra.mrb[24].mxu0 %v2541_v38 }
  0x77   : > { %1775 = vmatmul.mubr.bf16.gmra.mrb[40].mxu1 %v2542_v39  ;;  %1685 = vmatprep.mubr.bf16.mxu0 %v2543_v40 }
  0x78   : > { %1782 = vmatprep.mubr.bf16.mxu1 %v2545_v41 }
  0x7e   : > { %1686 = vmatmul.mubr.bf16.gmra.mrb[28].mxu0 %v2547_v42 }
  0x7f   : > { %1783 = vmatmul.mubr.bf16.gmra.mrb[44].mxu1 %v2548_v43  ;;  %1693 = vmatprep.mubr.bf16.mxu0 %v2549_v44 }
  0x80   : > { %1790 = vmatprep.mubr.bf16.mxu1 %v2551_v45 }
  0x86   : > { %1694 = vmatmul.mubr.bf16.gmra.mrb[32].mxu0 %v2553_v46 }
  0x87   : > { %1791 = vmatmul.mubr.bf16.gmra.mrb[48].mxu1 %v2554_v47  ;;  %1701 = vmatprep.mubr.bf16.mxu0 %v2555_v48 }
  0x88   : > { %1798 = vmatprep.mubr.bf16.mxu1 %v2557_v49 }
  0x8e   : > { %1702 = vmatmul.mubr.bf16.gmra.mrb[36].mxu0 %v2559_v50 }
  0x8f   : > { %1799 = vmatmul.mubr.bf16.gmra.mrb[52].mxu1 %v2560_v51  ;;  %1709 = vmatprep.mubr.bf16.mxu0 %v2561_v52 }
  0x90   : > { %1806 = vmatprep.mubr.bf16.mxu1 %v2563_v53 }
  0x96   : > { %1710 = vmatmul.mubr.bf16.gmra.mrb[40].mxu0 %v2565_v54 }
  0x97   : > { %1807 = vmatmul.mubr.bf16.gmra.mrb[56].mxu1 %v2566_v55  ;;  %1717 = vmatprep.mubr.bf16.mxu0 %v2567_v56 }
  0x98   : > { %1814 = vmatprep.mubr.bf16.mxu1 %v2569_v57 }
  0x9e   : > { %1718 = vmatmul.mubr.bf16.gmra.mrb[44].mxu0 %v2571_v58 }
  0x9f   : > { %1815 = vmatmul.mubr.bf16.gmra.mrb[60].mxu1 %v2572_v59 }
  0xfa   : > { %v2169_v60 = vpop.f32.mrb[0].mxu1 }
  0xfb   : > { %v2170_v61 = vpop.f32.mrb[1].mxu1 }
  0xfc   : > { %v2171_v62 = vadd.f32 %v2170_v61, %v2169_v60  ;;  %v2172_v63 = vpop.f32.mrb[2].mxu1 }
  0xfd   : > { %v2173_v0 = vpop.f32.mrb[3].mxu1 }
  0xfe   : > { %v2174_v1 = vadd.f32 %v2173_v0, %v2172_v63 }
 0x102   : > { %v2175_v2 = vpop.f32.mrb[4].mxu1 }
 0x103   : > { %v2176_v3 = vpop.f32.mrb[5].mxu1 }
 0x104   : > { %v2177_v4 = vadd.f32 %v2176_v3, %v2175_v2  ;;  %v2178_v5 = vpop.f32.mrb[6].mxu1 }
 0x105   : > { %v2179_v6 = vpop.f32.mrb[7].mxu1 }
 0x106   : > { %v2180_v7 = vadd.f32 %v2179_v6, %v2178_v5 }
 0x10a   : > { %v2181_v8 = vpop.f32.mrb[8].mxu1 }
 0x10b   : > { %v2182_v9 = vpop.f32.mrb[9].mxu1 }
 0x10c   : > { %v2183_v10 = vadd.f32 %v2182_v9, %v2181_v8  ;;  %v2184_v11 = vpop.f32.mrb[10].mxu1 }
 0x10d   : > { %v2185_v12 = vpop.f32.mrb[11].mxu1 }
 0x10e   : > { %v2186_v13 = vadd.f32 %v2185_v12, %v2184_v11 }
 0x112   : > { %v2187_v14 = vpop.f32.mrb[12].mxu1 }
 0x113   : > { %v2188_v15 = vpop.f32.mrb[13].mxu1 }
 0x114   : > { %v2189_v16 = vadd.f32 %v2188_v15, %v2187_v14  ;;  %v2190_v17 = vpop.f32.mrb[14].mxu1 }
 0x115   : > { %v2191_v18 = vpop.f32.mrb[15].mxu1 }
 0x116   : > { %v2192_v19 = vadd.f32 %v2191_v18, %v2190_v17 }
 0x119   : > { %v2387_v20 = vpop.f32.mrb[0].mxu0 }
 0x11a   : > { %v2922_v21 = vadd.f32 %v2387_v20, %v2177_v4  ;;  %v2193_v22 = vpop.f32.mrb[16].mxu1  ;;  %v781_v23 = vpop.f32.mrb[1].mxu0 }
 0x11b   : > { %v2924_v24 = vadd.f32 %v2171_v62, %v781_v23  ;;  %v2194_v25 = vpop.f32.mrb[17].mxu1  ;;  %v2388_v26 = vpop.f32.mrb[2].mxu0 }
 0x11c   : > { %v2195_v27 = vadd.f32 %v2194_v25, %v2193_v22  ;;  %v2926_v28 = vadd.f32 %v2388_v26, %v2180_v7  ;;  %v2196_v29 = vpop.f32.mrb[18].mxu1  ;;  %v784_v30 = vpop.f32.mrb[3].mxu0 }
 0x11d   : > { %v2928_v31 = vadd.f32 %v2174_v1, %v784_v30  ;;  %v2197_v32 = vpop.f32.mrb[19].mxu1 }
 0x11e   : > { %v2198_v33 = vadd.f32 %v2197_v32, %v2196_v29 }
 0x121   : > { %v2391_v34 = vpop.f32.mrb[4].mxu0 }
 0x122   : > { %v2930_v35 = vadd.f32 %v2391_v34, %v2189_v16  ;;  %v2199_v36 = vpop.f32.mrb[20].mxu1  ;;  %v797_v37 = vpop.f32.mrb[5].mxu0 }
 0x123   : > { %v2932_v38 = vadd.f32 %v2183_v10, %v797_v37  ;;  %v2200_v39 = vpop.f32.mrb[21].mxu1  ;;  %v2392_v40 = vpop.f32.mrb[6].mxu0 }
 0x124   : > { %v2201_v41 = vadd.f32 %v2200_v39, %v2199_v36  ;;  %v2934_v42 = vadd.f32 %v2392_v40, %v2192_v19  ;;  %v2202_v43 = vpop.f32.mrb[22].mxu1  ;;  %v800_v44 = vpop.f32.mrb[7].mxu0 }
 0x125   : > { %v2936_v45 = vadd.f32 %v2186_v13, %v800_v44  ;;  %v2203_v46 = vpop.f32.mrb[23].mxu1 }
 0x126   : > { %v2204_v47 = vadd.f32 %v2203_v46, %v2202_v43 }
 0x129   : > { %v2395_v48 = vpop.f32.mrb[8].mxu0 }
 0x12a   : > { %v2938_v49 = vadd.f32 %v2395_v48, %v2201_v41  ;;  %v2205_v50 = vpop.f32.mrb[24].mxu1  ;;  %v813_v51 = vpop.f32.mrb[9].mxu0 }
 0x12b   : > { %v2940_v52 = vadd.f32 %v2195_v27, %v813_v51  ;;  %v2206_v53 = vpop.f32.mrb[25].mxu1  ;;  %v2396_v54 = vpop.f32.mrb[10].mxu0  ;;  %v2957_v27 = vld [vmem:[%s3041_s8] ss:$0 sm:$0xff] }
 0x12c   : > { %v2207_v55 = vadd.f32 %v2206_v53, %v2205_v50  ;;  %v2942_v56 = vadd.f32 %v2396_v54, %v2204_v47  ;;  %v2208_v57 = vpop.f32.mrb[26].mxu1  ;;  %v816_v58 = vpop.f32.mrb[11].mxu0 }
 0x12d   : > { %v2944_v59 = vadd.f32 %v2198_v33, %v816_v58  ;;  %v2209_v60 = vpop.f32.mrb[27].mxu1 }
 0x12e   : > { %v2210_v61 = vadd.f32 %v2209_v60, %v2208_v57 }
 0x131   : > { %v2399_v62 = vpop.f32.mrb[12].mxu0 }
 0x132   : > { %v2211_v63 = vpop.f32.mrb[28].mxu1  ;;  %v829_v0 = vpop.f32.mrb[13].mxu0 }
 0x133   : > { %v2946_v1 = vadd.f32 %v2207_v55, %v829_v0  ;;  %v2212_v2 = vpop.f32.mrb[29].mxu1  ;;  %v2400_v3 = vpop.f32.mrb[14].mxu0 }
 0x134   : > { %v2213_v4 = vadd.f32 %v2212_v2, %v2211_v63  ;;  %v2214_v5 = vpop.f32.mrb[30].mxu1  ;;  %v832_v6 = vpop.f32.mrb[15].mxu0 }
 0x135   : > { %v2948_v7 = vadd.f32 %v2210_v61, %v832_v6  ;;  %v2215_v8 = vpop.f32.mrb[31].mxu1 }
 0x136   : > { %v2950_v9 = vadd.f32 %v2399_v62, %v2213_v4  ;;  %v2216_v10 = vadd.f32 %v2215_v8, %v2214_v5 }
 0x138   : > { %v2952_v11 = vadd.f32 %v2400_v3, %v2216_v10 }
 0x139   : > { %v2233_v12 = vpop.f32.mrb[16].mxu0 }
 0x13a   : > { %v2297_v13 = vpop.f32.mrb[32].mxu1  ;;  %v2234_v14 = vpop.f32.mrb[17].mxu0 }
 0x13b   : > { %v2235_v15 = vadd.f32 %v2234_v14, %v2233_v12  ;;  %v2298_v16 = vpop.f32.mrb[33].mxu1  ;;  %v2236_v17 = vpop.f32.mrb[18].mxu0 }
 0x13c   : > { %v2299_v18 = vadd.f32 %v2298_v16, %v2297_v13  ;;  %v2300_v19 = vpop.f32.mrb[34].mxu1  ;;  %v2237_v20 = vpop.f32.mrb[19].mxu0 }
 0x13d   : > { %v2238_v22 = vadd.f32 %v2237_v20, %v2236_v17  ;;  %v2301_v23 = vpop.f32.mrb[35].mxu1 }
 0x13e   : > { %v1761_v25 = vadd.f32 %v2299_v18, %v2235_v15  ;;  %v2302_v26 = vadd.f32 %v2301_v23, %v2300_v19 }
 0x140   : > { %v1823_v29 = vadd.f32 %v1761_v25, %v2924_v24  ;;  %v1764_v30 = vadd.f32 %v2302_v26, %v2238_v22 }
 0x141   : > { %v2239_v32 = vpop.f32.mrb[20].mxu0 }
 0x142   : > { %v1846_v33 = vadd.f32 %v2957_v27, %v1823_v29  ;;  %v1824_v34 = vadd.f32 %v1764_v30, %v2928_v31  ;;  %v2303_v36 = vpop.f32.mrb[36].mxu1  ;;  %v2240_v37 = vpop.f32.mrb[21].mxu0 }
 0x143   : > { %v2241_v39 = vadd.f32 %v2240_v37, %v2239_v32  ;;  %v2304_v40 = vpop.f32.mrb[37].mxu1  ;;  %v2242_v24 = vpop.f32.mrb[22].mxu0 }
 0x144   : > { %1863 = vst.msk [vmem:[%s2965_s14] sm:$0xff] %vm1862_vm1, %v1846_v33  ;;  %v1847_v41 = vadd.f32 %v2957_v27, %v1824_v34  ;;  %v2305_v43 = vadd.f32 %v2304_v40, %v2303_v36  ;;  %v2306_v44 = vpop.f32.mrb[38].mxu1  ;;  %v2243_v46 = vpop.f32.mrb[23].mxu0 }
 0x145   : > { %v2244_v47 = vadd.f32 %v2243_v46, %v2242_v24  ;;  %v2307_v48 = vpop.f32.mrb[39].mxu1 }
 0x146   : > { %1864 = vst.msk [vmem:[%s2965_s14 + $0x8] sm:$0xff] %vm1862_vm1, %v1847_v41  ;;  %v1769_v50 = vadd.f32 %v2305_v43, %v2241_v39  ;;  %v2308_v51 = vadd.f32 %v2307_v48, %v2306_v44 }
 0x148   : > { %v1825_v31 = vadd.f32 %v1769_v50, %v2922_v21  ;;  %v1772_v53 = vadd.f32 %v2308_v51, %v2244_v47 }
 0x149   : > { %v2245_v54 = vpop.f32.mrb[24].mxu0 }
 0x14a   : > { %v1848_v55 = vadd.f32 %v2957_v27, %v1825_v31  ;;  %v1826_v57 = vadd.f32 %v1772_v53, %v2926_v28  ;;  %v2309_v58 = vpop.f32.mrb[40].mxu1  ;;  %v2246_v60 = vpop.f32.mrb[25].mxu0 }
 0x14b   : > { %v2247_v61 = vadd.f32 %v2246_v60, %v2245_v54  ;;  %v2310_v62 = vpop.f32.mrb[41].mxu1  ;;  %v2248_v63 = vpop.f32.mrb[26].mxu0 }
 0x14c   : > { %1865 = vst.msk [vmem:[%s2965_s14 + $0x10] sm:$0xff] %vm1862_vm1, %v1848_v55  ;;  %v1849_v0 = vadd.f32 %v2957_v27, %v1826_v57  ;;  %v2311_v2 = vadd.f32 %v2310_v62, %v2309_v58  ;;  %v2312_v3 = vpop.f32.mrb[42].mxu1  ;;  %v2249_v4 = vpop.f32.mrb[27].mxu0 }
 0x14d   : > { %v2250_v21 = vadd.f32 %v2249_v4, %v2248_v63  ;;  %v2313_v5 = vpop.f32.mrb[43].mxu1 }
 0x14e   : > { %1866 = vst.msk [vmem:[%s2965_s14 + $0x18] sm:$0xff] %vm1862_vm1, %v1849_v0  ;;  %v1777_v6 = vadd.f32 %v2311_v2, %v2247_v61  ;;  %v2314_v8 = vadd.f32 %v2313_v5, %v2312_v3 }
 0x150   : > { %v1827_v28 = vadd.f32 %v1777_v6, %v2932_v38  ;;  %v1780_v10 = vadd.f32 %v2314_v8, %v2250_v21 }
 0x151   : > { %v2251_v12 = vpop.f32.mrb[28].mxu0 }
 0x152   : > { %v1850_v13 = vadd.f32 %v2957_v27, %v1827_v28  ;;  %v1828_v14 = vadd.f32 %v1780_v10, %v2936_v45  ;;  %v2315_v15 = vpop.f32.mrb[44].mxu1  ;;  %v2252_v16 = vpop.f32.mrb[29].mxu0 }
 0x153   : > { %v2253_v17 = vadd.f32 %v2252_v16, %v2251_v12  ;;  %v2316_v18 = vpop.f32.mrb[45].mxu1  ;;  %v2254_v19 = vpop.f32.mrb[30].mxu0 }
 0x154   : > { %1867 = vst.msk [vmem:[%s2965_s14 + $0x20] sm:$0xff] %vm1862_vm1, %v1850_v13  ;;  %v1851_v20 = vadd.f32 %v2957_v27, %v1828_v14  ;;  %v2317_v22 = vadd.f32 %v2316_v18, %v2315_v15  ;;  %v2318_v23 = vpop.f32.mrb[46].mxu1  ;;  %v2255_v25 = vpop.f32.mrb[31].mxu0 }
 0x155   : > { %v2256_v38 = vadd.f32 %v2255_v25, %v2254_v19  ;;  %v2319_v26 = vpop.f32.mrb[47].mxu1 }
 0x156   : > { %1868 = vst.msk [vmem:[%s2965_s14 + $0x28] sm:$0xff] %vm1862_vm1, %v1851_v20  ;;  %v1785_v29 = vadd.f32 %v2317_v22, %v2253_v17  ;;  %v2320_v30 = vadd.f32 %v2319_v26, %v2318_v23 }
 0x158   : > { %v1829_v45 = vadd.f32 %v1785_v29, %v2930_v35  ;;  %v1788_v32 = vadd.f32 %v2320_v30, %v2256_v38 }
 0x159   : > { %v2257_v33 = vpop.f32.mrb[32].mxu0 }
 0x15a   : > { %v1852_v34 = vadd.f32 %v2957_v27, %v1829_v45  ;;  %v1830_v36 = vadd.f32 %v1788_v32, %v2934_v42  ;;  %v2321_v37 = vpop.f32.mrb[48].mxu1  ;;  %v2258_v39 = vpop.f32.mrb[33].mxu0 }
 0x15b   : > { %v2259_v40 = vadd.f32 %v2258_v39, %v2257_v33  ;;  %v2322_v24 = vpop.f32.mrb[49].mxu1  ;;  %v2260_v41 = vpop.f32.mrb[34].mxu0 }
 0x15c   : > { %1869 = vst.msk [vmem:[%s2965_s14 + $0x30] sm:$0xff] %vm1862_vm1, %v1852_v34  ;;  %v1853_v43 = vadd.f32 %v2957_v27, %v1830_v36  ;;  %v2323_v44 = vadd.f32 %v2322_v24, %v2321_v37  ;;  %v2324_v46 = vpop.f32.mrb[50].mxu1  ;;  %v2261_v47 = vpop.f32.mrb[35].mxu0 }
 0x15d   : > { %v2262_v35 = vadd.f32 %v2261_v47, %v2260_v41  ;;  %v2325_v48 = vpop.f32.mrb[51].mxu1 }
 0x15e   : > { %1870 = vst.msk [vmem:[%s2965_s14 + $0x38] sm:$0xff] %vm1862_vm1, %v1853_v43  ;;  %v1793_v50 = vadd.f32 %v2323_v44, %v2259_v40  ;;  %v2326_v51 = vadd.f32 %v2325_v48, %v2324_v46 }
 0x160   : > { %v1831_v42 = vadd.f32 %v1793_v50, %v2940_v52  ;;  %v1796_v31 = vadd.f32 %v2326_v51, %v2262_v35 }
 0x161   : > { %v2263_v53 = vpop.f32.mrb[36].mxu0 }
 0x162   : > { %v1854_v54 = vadd.f32 %v2957_v27, %v1831_v42  ;;  %v1832_v55 = vadd.f32 %v1796_v31, %v2944_v59  ;;  %v2327_v57 = vpop.f32.mrb[52].mxu1  ;;  %v2264_v58 = vpop.f32.mrb[37].mxu0 }
 0x163   : > { %v2265_v60 = vadd.f32 %v2264_v58, %v2263_v53  ;;  %v2328_v61 = vpop.f32.mrb[53].mxu1  ;;  %v2266_v62 = vpop.f32.mrb[38].mxu0 }
 0x164   : > { %1871 = vst.msk [vmem:[%s2965_s14 + $0x40] sm:$0xff] %vm1862_vm1, %v1854_v54  ;;  %v1855_v63 = vadd.f32 %v2957_v27, %v1832_v55  ;;  %v2329_v0 = vadd.f32 %v2328_v61, %v2327_v57  ;;  %v2330_v2 = vpop.f32.mrb[54].mxu1  ;;  %v2267_v3 = vpop.f32.mrb[39].mxu0 }
 0x165   : > { %v2268_v52 = vadd.f32 %v2267_v3, %v2266_v62  ;;  %v2331_v4 = vpop.f32.mrb[55].mxu1 }
 0x166   : > { %1872 = vst.msk [vmem:[%s2965_s14 + $0x48] sm:$0xff] %vm1862_vm1, %v1855_v63  ;;  %v1801_v21 = vadd.f32 %v2329_v0, %v2265_v60  ;;  %v2332_v5 = vadd.f32 %v2331_v4, %v2330_v2 }
 0x168   : > { %v1833_v59 = vadd.f32 %v1801_v21, %v2938_v49  ;;  %v1804_v6 = vadd.f32 %v2332_v5, %v2268_v52 }
 0x169   : > { %v2269_v8 = vpop.f32.mrb[40].mxu0 }
 0x16a   : > { %v1856_v28 = vadd.f32 %v2957_v27, %v1833_v59  ;;  %v1834_v10 = vadd.f32 %v1804_v6, %v2942_v56  ;;  %v2333_v12 = vpop.f32.mrb[56].mxu1  ;;  %v2270_v13 = vpop.f32.mrb[41].mxu0 }
 0x16b   : > { %v2271_v14 = vadd.f32 %v2270_v13, %v2269_v8  ;;  %v2334_v15 = vpop.f32.mrb[57].mxu1  ;;  %v2272_v16 = vpop.f32.mrb[42].mxu0 }
 0x16c   : > { %1873 = vst.msk [vmem:[%s2965_s14 + $0x50] sm:$0xff] %vm1862_vm1, %v1856_v28  ;;  %v1857_v17 = vadd.f32 %v2957_v27, %v1834_v10  ;;  %v2335_v18 = vadd.f32 %v2334_v15, %v2333_v12  ;;  %v2336_v19 = vpop.f32.mrb[58].mxu1  ;;  %v2273_v20 = vpop.f32.mrb[43].mxu0 }
 0x16d   : > { %v2274_v49 = vadd.f32 %v2273_v20, %v2272_v16  ;;  %v2337_v22 = vpop.f32.mrb[59].mxu1 }
 0x16e   : > { %1874 = vst.msk [vmem:[%s2965_s14 + $0x58] sm:$0xff] %vm1862_vm1, %v1857_v17  ;;  %v1809_v23 = vadd.f32 %v2335_v18, %v2271_v14  ;;  %v2338_v25 = vadd.f32 %v2337_v22, %v2336_v19 }
 0x170   : > { %v1835_v56 = vadd.f32 %v1809_v23, %v2946_v1  ;;  %v1812_v38 = vadd.f32 %v2338_v25, %v2274_v49 }
 0x171   : > { %v2275_v26 = vpop.f32.mrb[44].mxu0 }
 0x172   : > { %v1858_v29 = vadd.f32 %v2957_v27, %v1835_v56  ;;  %v1836_v30 = vadd.f32 %v1812_v38, %v2948_v7  ;;  %v2339_v45 = vpop.f32.mrb[60].mxu1  ;;  %v2276_v32 = vpop.f32.mrb[45].mxu0 }
 0x173   : > { %v2277_v33 = vadd.f32 %v2276_v32, %v2275_v26  ;;  %v2340_v34 = vpop.f32.mrb[61].mxu1  ;;  %v2278_v36 = vpop.f32.mrb[46].mxu0 }
 0x174   : > { %1875 = vst.msk [vmem:[%s2965_s14 + $0x60] sm:$0xff] %vm1862_vm1, %v1858_v29  ;;  %v1859_v37 = vadd.f32 %v2957_v27, %v1836_v30  ;;  %v2341_v39 = vadd.f32 %v2340_v34, %v2339_v45  ;;  %v2342_v1 = vpop.f32.mrb[62].mxu1  ;;  %v2279_v40 = vpop.f32.mrb[47].mxu0 }
 0x175   : > { %v2280_v24 = vadd.f32 %v2279_v40, %v2278_v36  ;;  %v2343_v41 = vpop.f32.mrb[63].mxu1 }
 0x176   : > { %1876 = vst.msk [vmem:[%s2965_s14 + $0x68] sm:$0xff] %vm1862_vm1, %v1859_v37  ;;  %v1817_v43 = vadd.f32 %v2341_v39, %v2277_v33  ;;  %v2344_v7 = vadd.f32 %v2343_v41, %v2342_v1 }
 0x178   : > { %v1837_v44 = vadd.f32 %v1817_v43, %v2950_v9  ;;  %v1820_v46 = vadd.f32 %v2344_v7, %v2280_v24 }
 0x17a   : > { %v1860_v47 = vadd.f32 %v2957_v27, %v1837_v44  ;;  %v1838_v35 = vadd.f32 %v1820_v46, %v2952_v11 }
 0x17c   : > { %1877 = vst.msk [vmem:[%s2965_s14 + $0x70] sm:$0xff] %vm1862_vm1, %v1860_v47  ;;  %v1861_v48 = vadd.f32 %v2957_v27, %v1838_v35 }
 0x17e   : > { %1878 = vst.msk [vmem:[%s2965_s14 + $0x78] sm:$0xff] %vm1862_vm1, %v1861_v48 }
 0x17f PF: > { %s19_s30 = sadd.s32 1, %s2579_s30  }
 0x180   : > { %p16_p4 = scmp.ge.s32.totalorder %s19_s30, 4  }
 0x182   :  { %18 = sbr.rel (!%p16_p4) target bundleno = 1 (0x1), region = 95 }

</bundles_post_ra>
